<compile_context>
chip_gen: v6e
topology: v6e:2x2x1
jax: 0.10.0
libtpu: 0.0.40
codegen_flags: <defaults>
</compile_context>

<pallas_src>
import numpy as np
import jax
import jax.numpy as jnp
from jax.experimental import pallas as pl
from jax.experimental.pallas import tpu as pltpu

BN_EPS = 1e-5
T_IN = 120          # forward hard-codes inp.view(-1, 1, 120)
K_PAD = 128         # input length padded to one full lane group
LANE = 128
OUTPUT_SIZE = 10    # synthetic output_size

# (c_out, kernel_size, stride, has_pool) for block1..block4
_CONV_SPECS = ((128, 64, 32, False), (64, 32, 2, True), (8, 4, 2, True), (4, 2, 1, True))


def _bn_fold(gamma, beta, mean, var, eps=BN_EPS):
    s = gamma / jnp.sqrt(var + eps)
    t = beta - mean * s
    return s, t


def _round_up(x, m):
    return ((x + m - 1) // m) * m


# ---------------------------------------------------------------------------
# Fused forward kernel (one pallas_call, grid over the batch)
# ---------------------------------------------------------------------------
def _make_fused_kernel(meta):
    """meta: per-branch dict(off, width, c, pool) describing the Toeplitz layout."""

    def kernel(x_ref, wt_ref, bt_ref, w1_ref, b1_ref, w2_ref, b2_ref,
               w3_ref, b3_ref, o_ref):
        x = x_ref[...]                                         # (Bt, 128) bf16
        # All four Conv1d branches (+ folded bias/BN) as ONE lane-dense matmul.
        y = jnp.dot(x, wt_ref[...], preferred_element_type=jnp.float32)
        y = y + bt_ref[...]                                    # (Bt, 4096) f32

        slabs = []
        for info in meta:
            off, w, c = info['off'], info['width'], info['c']
            if not info['pool']:
                slabs.append(y[:, off:off + w])                # branch1: already flat
            else:
                # Columns are [even positions | odd positions] x c_out, so
                # MaxPool1d(4,2) = max(even, odd) followed by a +1-pair lane shift
                # (XLU roll by c, rolled[j] == pairs[(j + c) % w]) and another max.
                pairs = jnp.maximum(y[:, off:off + w], y[:, off + w:off + 2 * w])
                shifted = pltpu.roll(pairs, w - c, axis=1)
                slabs.append(jnp.maximum(pairs, shifted))
        slabs = [s.astype(jnp.bfloat16) for s in slabs] + [x]
        # Implicit torch.cat: every slab is a multiple of 128 lanes wide, so this is
        # plain aligned vreg copies; junk/pad lanes are killed by zero rows in W1.
        conc = jnp.concatenate(slabs, axis=-1)                 # (Bt, 2304) bf16

        h = jnp.dot(conc, w1_ref[...],
                    preferred_element_type=jnp.float32) + b1_ref[...]
        h = jnp.maximum(h, 0.0)                                # fc1 + bn1 + relu1
        h = jnp.dot(h.astype(jnp.bfloat16), w2_ref[...],
                    preferred_element_type=jnp.float32) + b2_ref[...]
        h = jnp.maximum(h, 0.0)                                # fc2 + bn2 + relu2
        logits = jnp.dot(h.astype(jnp.bfloat16), w3_ref[...],
                         preferred_element_type=jnp.float32) + b3_ref[...]
        # Softmax over 128 padded lanes (pad bias = -1e30 -> exp == 0).
        mx = jnp.max(logits, axis=-1, keepdims=True)
        e = jnp.exp(logits - mx)
        s = jnp.sum(e, axis=-1, keepdims=True)
        inv = pl.reciprocal(s, approx=True)                    # EUP slot (free)
        inv = inv * (2.0 - s * inv)                            # Newton step -> ~f32
        o_ref[...] = e * inv

    return kernel


# ---------------------------------------------------------------------------
# Deterministic parameter construction (PyTorch-default-like uniform init)
# ---------------------------------------------------------------------------
def _uniform(key, shape, fan_in):
    bound = 1.0 / (fan_in ** 0.5)
    return jax.random.uniform(key, shape, jnp.float32, -bound, bound)


class CNNPallas:
    def __init__(self, key, output_size=OUTPUT_SIZE):
        self.output_size = output_size
        self.out_pad = _round_up(max(output_size, LANE), LANE)
        ks = jax.random.split(key, 7)

        # ---- raw parameters (BatchNorm eval mode: identity running stats) ----
        self.raw_convs = []
        for k_rng, (c, k, s, pool) in zip(ks[:4], _CONV_SPECS):
            kw, kb = jax.random.split(k_rng)
            w = _uniform(kw, (c, 1, k), fan_in=k)
            b = _uniform(kb, (c,), fan_in=k)
            ones, zeros = jnp.ones((c,), jnp.float32), jnp.zeros((c,), jnp.float32)
            self.raw_convs.append((w, b, ones, zeros, zeros, ones))

        def linear(k_rng, d_in, d_out):
            kw, kb = jax.random.split(k_rng)
            return (_uniform(kw, (d_in, d_out), fan_in=d_in),
                    _uniform(kb, (d_out,), fan_in=d_in))

        w1, b1 = linear(ks[4], 2176, 512)
        w2, b2 = linear(ks[5], 512, 128)
        w3, b3 = linear(ks[6], 128, output_size)
        o512, z512 = jnp.ones((512,), jnp.float32), jnp.zeros((512,), jnp.float32)
        o128, z128 = jnp.ones((128,), jnp.float32), jnp.zeros((128,), jnp.float32)
        self.raw_mlp = (w1, b1, o512, z512, z512, o512,
                        w2, b2, o128, z128, z128, o128, w3, b3)
        # TODO(synk): the PyTorch try/except fc1_1 (2970->512) branch is dead code
        # for 120-sample inputs (concat width is exactly 2176); not implemented.

        self._prepare()
        self._jit_forward = jax.jit(self._forward)

    # ---- one-time folding / Toeplitz + layout prep (free wrapper math) ----
    def _prepare(self):
        wt_blocks, bt_blocks, meta = [], [], []
        col_off = 0
        for (w, b, g, be, mu, var), (c, k, s, pool) in zip(self.raw_convs, _CONV_SPECS):
            l_out = (T_IN - k) // s + 1
            sc, tt = _bn_fold(g, be, mu, var)
            w_eff = np.asarray(w).reshape(c, k) * np.asarray(sc)[:, None]   # (c, k)
            b_eff = np.asarray(b) * np.asarray(sc) + np.asarray(tt)          # (c,)
            if pool:
                l_feat = (l_out - 4) // 2 + 1          # MaxPool1d(4, 2) output length
                n_pos = l_feat + 1
                pos_blocks = (np.arange(n_pos) * 2, np.arange(n_pos) * 2 + 1)
            else:
                l_feat = l_out
                n_pos = l_out
                pos_blocks = (np.arange(n_pos),)
            width = _round_up(n_pos * c, LANE)          # 128-aligned region per block
            for positions in pos_blocks:
                blk = np.zeros((K_PAD, width), np.float32)
                bia = np.zeros((width,), np.float32)
                for q, p in enumerate(positions):
                    blk[p * s:p * s + k, q * c:(q + 1) * c] = w_eff.T
                    bia[q * c:(q + 1) * c] = b_eff
                wt_blocks.append(blk)
                bt_blocks.append(bia)
            meta.append(dict(off=col_off, width=width, c=c, pool=pool, l_feat=l_feat))
            col_off += width * len(pos_blocks)

        wt = np.concatenate(wt_blocks, axis=1)           # (128, 4096)
        bt = np.concatenate(bt_blocks)[None, :]          # (1, 4096)
        self._wt = jnp.asarray(wt, jnp.bfloat16)
        self._bt = jnp.asarray(bt, jnp.float32)
        self._meta = tuple(meta)

        (w1, b1, g1, be1, m1, v1, w2, b2, g2, be2, m2, v2, w3, b3) = self.raw_mlp
        s1, t1 = _bn_fold(g1, be1, m1, v1)
        s2, t2 = _bn_fold(g2, be2, m2, v2)
        w1f = np.asarray(w1) * np.asarray(s1)[None, :]   # (2176, 512), bn1 folded

        # Padded/permuted W1: rows follow the kernel's concat layout
        # [b1 | pool2 | pool3 | pool4 | x], each region 128-aligned, junk rows = 0.
        c_cat = sum(m['width'] for m in meta) + K_PAD    # 2304
        w1_rows = np.zeros((c_cat, w1f.shape[1]), np.float32)
        t_off = 0    # row offset in PyTorch Flatten/concat order (channel-major)
        c_off = 0    # lane offset in the kernel's concat layout ((pos, ch) order)
        for m in meta:
            c, l_feat, width = m['c'], m['l_feat'], m['width']
            size = c * l_feat
            blk = w1f[t_off:t_off + size].reshape(c, l_feat, -1)
            w1_rows[c_off:c_off + size] = blk.transpose(1, 0, 2).reshape(size, -1)
            t_off += size
            c_off += width
        w1_rows[c_off:c_off + T_IN] = w1f[t_off:t_off + T_IN]   # raw-input skip block
        t_off += T_IN
        c_off += K_PAD
        assert t_off == w1f.shape[0] and c_off == c_cat

        self._w1 = jnp.asarray(w1_rows, jnp.bfloat16)
        self._b1 = jnp.asarray(np.asarray(b1 * s1 + t1)[None, :], jnp.float32)
        self._w2 = jnp.asarray(np.asarray(w2) * np.asarray(s2)[None, :], jnp.bfloat16)
        self._b2 = jnp.asarray(np.asarray(b2 * s2 + t2)[None, :], jnp.float32)
        w3p = np.zeros((np.asarray(w3).shape[0], self.out_pad), np.float32)
        w3p[:, :self.output_size] = np.asarray(w3)
        self._w3 = jnp.asarray(w3p, jnp.bfloat16)        # pad cols exactly 0 (bf16 too)
        b3p = np.full((1, self.out_pad), -1e30, np.float32)
        b3p[0, :self.output_size] = np.asarray(b3)
        self._b3 = jnp.asarray(b3p, jnp.float32)

        self._kernel = _make_fused_kernel(self._meta)

    # ---- forward ----
    def _forward(self, inp):
        x2d = inp.reshape(-1, T_IN).astype(jnp.float32)   # == view(-1, 1, 120), C_in = 1
        B = x2d.shape[0]
        bt_rows = 256 if B >= 256 else _round_up(B, 8)    # batch tile (v7x megacore OK)
        b_pad = _round_up(B, bt_rows)
        xp = jnp.pad(x2d, ((0, b_pad - B), (0, K_PAD - T_IN))).astype(jnp.bfloat16)

        grid = (b_pad // bt_rows,)

        def resident(shape):          # constant index_map -> DMA once, stays in VMEM
            return pl.BlockSpec(shape, lambda i: (0, 0))

        n_toep = self._wt.shape[1]
        c_cat, n_hid1 = self._w1.shape
        n_hid2 = self._w2.shape[1]
        flops = 2 * b_pad * (K_PAD * n_toep + c_cat * n_hid1
                             + n_hid1 * n_hid2 + n_hid2 * self.out_pad)
        bytes_accessed = int(
            xp.size * 2 + b_pad * self.out_pad * 4
            + (self._wt.size + self._w1.size + self._w2.size + self._w3.size) * 2
            + (self._bt.size + self._b1.size + self._b2.size + self._b3.size) * 4)

        out = pl.pallas_call(
            self._kernel,
            out_shape=jax.ShapeDtypeStruct((b_pad, self.out_pad), jnp.float32),
            grid=grid,
            in_specs=[
                pl.BlockSpec((bt_rows, K_PAD), lambda i: (i, 0)),   # x tile
                resident(self._wt.shape), resident(self._bt.shape),
                resident(self._w1.shape), resident(self._b1.shape),
                resident(self._w2.shape), resident(self._b2.shape),
                resident(self._w3.shape), resident(self._b3.shape),
            ],
            out_specs=pl.BlockSpec((bt_rows, self.out_pad), lambda i: (i, 0)),
            compiler_params=pltpu.CompilerParams(
                dimension_semantics=("parallel",),
                vmem_limit_bytes=48 * 1024 * 1024),
            cost_estimate=pl.CostEstimate(
                flops=flops,
                transcendentals=b_pad * self.out_pad,
                bytes_accessed=bytes_accessed),
        )(xp, self._wt, self._bt, self._w1, self._b1,
          self._w2, self._b2, self._w3, self._b3)
        return out[:B, :self.output_size]

    def __call__(self, inp):
        return self._jit_forward(inp)


# ---------------------------------------------------------------------------
# Pure-JAX reference of the PyTorch forward (for verification only)
# ---------------------------------------------------------------------------
def reference_forward(model, inp):
    x2d = inp.reshape(-1, T_IN).astype(jnp.float32)
    B = x2d.shape[0]
    feats = []
    for (w, b, g, be, m, v), (c, k, s, pool) in zip(model.raw_convs, _CONV_SPECS):
        l_out = (T_IN - k) // s + 1
        idx = jnp.arange(l_out)[:, None] * s + jnp.arange(k)[None, :]
        p = x2d[:, idx]                                          # (B, l_out, k)
        y = jnp.einsum('blk,ck->bcl', p, w.reshape(c, k)) + b[None, :, None]
        sc, tt = _bn_fold(g, be, m, v)
        y = y * sc[None, :, None] + tt[None, :, None]
        if pool:
            l_pool = (l_out - 4) // 2 + 1
            widx = jnp.arange(l_pool)[:, None] * 2 + jnp.arange(4)[None, :]
            y = jnp.max(y[:, :, widx], axis=-1)
        feats.append(y.reshape(B, -1))
    feats.append(x2d)
    x = jnp.concatenate(feats, axis=-1)
    (w1, b1, g1, be1, m1, v1, w2, b2, g2, be2, m2, v2, w3, b3) = model.raw_mlp
    s1, t1 = _bn_fold(g1, be1, m1, v1)
    s2, t2 = _bn_fold(g2, be2, m2, v2)
    h = jnp.maximum((x @ w1 + b1) * s1 + t1, 0.0)
    h = jnp.maximum((h @ w2 + b2) * s2 + t2, 0.0)
    return jax.nn.softmax(h @ w3 + b3, axis=-1)


if __name__ == "__main__":
    key = jax.random.PRNGKey(0)
    pkey, xkey = jax.random.split(key)
    model = CNNPallas(pkey, output_size=OUTPUT_SIZE)

    B = 2
    x = jax.random.normal(xkey, (B, T_IN), dtype=jnp.float32)   # view(-1,1,120) -> B=2

    out = jax.block_until_ready(model(x))

    assert out.shape == (B, OUTPUT_SIZE), out.shape
    assert bool(jnp.all(jnp.isfinite(out)))
    assert bool(jnp.all(jnp.abs(jnp.sum(out, axis=-1) - 1.0) < 1e-4))   # softmax rows
    ref = reference_forward(model, x)
    err = float(jnp.max(jnp.abs(out - ref)))
    assert err < 3e-2, err                                               # bf16 MXU path
    print("KERNEL_OK")
</pallas_src>

<mosaic_0001>
module attributes {stable_mosaic.version = 11 : i64} {
  func.func @kernel(%arg0: i32, %arg1: memref<8x128xbf16, #tpu.memory_space<vmem>>, %arg2: memref<128x4096xbf16, #tpu.memory_space<vmem>>, %arg3: memref<1x4096xf32, #tpu.memory_space<vmem>>, %arg4: memref<2304x512xbf16, #tpu.memory_space<vmem>>, %arg5: memref<1x512xf32, #tpu.memory_space<vmem>>, %arg6: memref<512x128xbf16, #tpu.memory_space<vmem>>, %arg7: memref<1x128xf32, #tpu.memory_space<vmem>>, %arg8: memref<128x128xbf16, #tpu.memory_space<vmem>>, %arg9: memref<1x128xf32, #tpu.memory_space<vmem>>, %arg10: memref<8x128xf32, #tpu.memory_space<vmem>>) attributes {dimension_semantics = [#tpu.dimension_semantics<parallel>], iteration_bounds = array<i64: 1>, scalar_prefetch = 0 : i64, scratch_operands = 0 : i64, tpu.core_type = #tpu.core_type<tc>, window_params = [{transform_indices = @transform_0, window_bounds = array<i64: 8, 128>}, {pipeline_mode = #tpu.pipeline_mode<synchronous>, transform_indices = @transform_1, window_bounds = array<i64: 128, 4096>}, {pipeline_mode = #tpu.pipeline_mode<synchronous>, transform_indices = @transform_2, window_bounds = array<i64: 1, 4096>}, {pipeline_mode = #tpu.pipeline_mode<synchronous>, transform_indices = @transform_3, window_bounds = array<i64: 2304, 512>}, {pipeline_mode = #tpu.pipeline_mode<synchronous>, transform_indices = @transform_4, window_bounds = array<i64: 1, 512>}, {pipeline_mode = #tpu.pipeline_mode<synchronous>, transform_indices = @transform_5, window_bounds = array<i64: 512, 128>}, {pipeline_mode = #tpu.pipeline_mode<synchronous>, transform_indices = @transform_6, window_bounds = array<i64: 1, 128>}, {pipeline_mode = #tpu.pipeline_mode<synchronous>, transform_indices = @transform_7, window_bounds = array<i64: 128, 128>}, {pipeline_mode = #tpu.pipeline_mode<synchronous>, transform_indices = @transform_8, window_bounds = array<i64: 1, 128>}, {transform_indices = @transform_9, window_bounds = array<i64: 8, 128>}]} {
    %c0 = arith.constant 0 : index
    %c0_0 = arith.constant 0 : index
    %0 = vector.load %arg1[%c0, %c0_0] : memref<8x128xbf16, #tpu.memory_space<vmem>>, vector<8x128xbf16>
    %c0_1 = arith.constant 0 : index
    %c0_2 = arith.constant 0 : index
    %1 = vector.load %arg2[%c0_1, %c0_2] : memref<128x4096xbf16, #tpu.memory_space<vmem>>, vector<128x4096xbf16>
    %cst = arith.constant dense<0.000000e+00> : vector<8x4096xf32>
    %2 = tpu.matmul %0, %1, %cst {dimension_numbers = #tpu.dot_dimension_numbers<[1], [0], [0], [1], [0, 0, 1, 1], [], []>} : vector<8x128xbf16>, vector<128x4096xbf16>, vector<8x4096xf32> -> vector<8x4096xf32>
    %c0_3 = arith.constant 0 : index
    %c0_4 = arith.constant 0 : index
    %3 = vector.load %arg3[%c0_3, %c0_4] : memref<1x4096xf32, #tpu.memory_space<vmem>>, vector<1x4096xf32>
    %4 = vector.broadcast %3 : vector<1x4096xf32> to vector<8x4096xf32>
    %5 = arith.addf %2, %4 : vector<8x4096xf32>
    %6 = vector.extract_strided_slice %5 {offsets = [0, 0], sizes = [8, 256], strides = [1, 1]} : vector<8x4096xf32> to vector<8x256xf32>
    %7 = vector.extract_strided_slice %5 {offsets = [0, 256], sizes = [8, 1408], strides = [1, 1]} : vector<8x4096xf32> to vector<8x1408xf32>
    %8 = vector.extract_strided_slice %5 {offsets = [0, 1664], sizes = [8, 1408], strides = [1, 1]} : vector<8x4096xf32> to vector<8x1408xf32>
    %9 = arith.maximumf %7, %8 : vector<8x1408xf32>
    %c1344_i32 = arith.constant 1344 : i32
    %10 = tpu.dynamic_rotate %9 by %c1344_i32 dim 1 : vector<8x1408xf32>, i32 -> vector<8x1408xf32>
    %11 = arith.maximumf %9, %10 : vector<8x1408xf32>
    %12 = vector.extract_strided_slice %5 {offsets = [0, 3072], sizes = [8, 256], strides = [1, 1]} : vector<8x4096xf32> to vector<8x256xf32>
    %13 = vector.extract_strided_slice %5 {offsets = [0, 3328], sizes = [8, 256], strides = [1, 1]} : vector<8x4096xf32> to vector<8x256xf32>
    %14 = arith.maximumf %12, %13 : vector<8x256xf32>
    %c248_i32 = arith.constant 248 : i32
    %15 = tpu.dynamic_rotate %14 by %c248_i32 dim 1 : vector<8x256xf32>, i32 -> vector<8x256xf32>
    %16 = arith.maximumf %14, %15 : vector<8x256xf32>
    %17 = vector.extract_strided_slice %5 {offsets = [0, 3584], sizes = [8, 256], strides = [1, 1]} : vector<8x4096xf32> to vector<8x256xf32>
    %18 = vector.extract_strided_slice %5 {offsets = [0, 3840], sizes = [8, 256], strides = [1, 1]} : vector<8x4096xf32> to vector<8x256xf32>
    %19 = arith.maximumf %17, %18 : vector<8x256xf32>
    %c252_i32 = arith.constant 252 : i32
    %20 = tpu.dynamic_rotate %19 by %c252_i32 dim 1 : vector<8x256xf32>, i32 -> vector<8x256xf32>
    %21 = arith.maximumf %19, %20 : vector<8x256xf32>
    %22 = arith.truncf %6 : vector<8x256xf32> to vector<8x256xbf16>
    %23 = arith.truncf %11 : vector<8x1408xf32> to vector<8x1408xbf16>
    %24 = arith.truncf %16 : vector<8x256xf32> to vector<8x256xbf16>
    %25 = arith.truncf %21 : vector<8x256xf32> to vector<8x256xbf16>
    %26 = tpu.concatenate %22, %23, %24, %25, %0 in 1 : vector<8x256xbf16>, vector<8x1408xbf16>, vector<8x256xbf16>, vector<8x256xbf16>, vector<8x128xbf16> -> vector<8x2304xbf16>
    %c0_5 = arith.constant 0 : index
    %c0_6 = arith.constant 0 : index
    %27 = vector.load %arg4[%c0_5, %c0_6] : memref<2304x512xbf16, #tpu.memory_space<vmem>>, vector<2304x512xbf16>
    %cst_7 = arith.constant dense<0.000000e+00> : vector<8x512xf32>
    %28 = tpu.matmul %26, %27, %cst_7 {dimension_numbers = #tpu.dot_dimension_numbers<[1], [0], [0], [1], [0, 0, 1, 1], [], []>} : vector<8x2304xbf16>, vector<2304x512xbf16>, vector<8x512xf32> -> vector<8x512xf32>
    %c0_8 = arith.constant 0 : index
    %c0_9 = arith.constant 0 : index
    %29 = vector.load %arg5[%c0_8, %c0_9] : memref<1x512xf32, #tpu.memory_space<vmem>>, vector<1x512xf32>
    %30 = vector.broadcast %29 : vector<1x512xf32> to vector<8x512xf32>
    %31 = arith.addf %28, %30 : vector<8x512xf32>
    %cst_10 = arith.constant 0.000000e+00 : f32
    %32 = vector.broadcast %cst_10 : f32 to vector<8x512xf32>
    %33 = arith.maximumf %31, %32 : vector<8x512xf32>
    %34 = arith.truncf %33 : vector<8x512xf32> to vector<8x512xbf16>
    %c0_11 = arith.constant 0 : index
    %c0_12 = arith.constant 0 : index
    %35 = vector.load %arg6[%c0_11, %c0_12] : memref<512x128xbf16, #tpu.memory_space<vmem>>, vector<512x128xbf16>
    %cst_13 = arith.constant dense<0.000000e+00> : vector<8x128xf32>
    %36 = tpu.matmul %34, %35, %cst_13 {dimension_numbers = #tpu.dot_dimension_numbers<[1], [0], [0], [1], [0, 0, 1, 1], [], []>} : vector<8x512xbf16>, vector<512x128xbf16>, vector<8x128xf32> -> vector<8x128xf32>
    %c0_14 = arith.constant 0 : index
    %c0_15 = arith.constant 0 : index
    %37 = vector.load %arg7[%c0_14, %c0_15] : memref<1x128xf32, #tpu.memory_space<vmem>>, vector<1x128xf32>
    %38 = vector.broadcast %37 : vector<1x128xf32> to vector<8x128xf32>
    %39 = arith.addf %36, %38 : vector<8x128xf32>
    %cst_16 = arith.constant 0.000000e+00 : f32
    %40 = vector.broadcast %cst_16 : f32 to vector<8x128xf32>
    %41 = arith.maximumf %39, %40 : vector<8x128xf32>
    %42 = arith.truncf %41 : vector<8x128xf32> to vector<8x128xbf16>
    %c0_17 = arith.constant 0 : index
    %c0_18 = arith.constant 0 : index
    %43 = vector.load %arg8[%c0_17, %c0_18] : memref<128x128xbf16, #tpu.memory_space<vmem>>, vector<128x128xbf16>
    %cst_19 = arith.constant dense<0.000000e+00> : vector<8x128xf32>
    %44 = tpu.matmul %42, %43, %cst_19 {dimension_numbers = #tpu.dot_dimension_numbers<[1], [0], [0], [1], [0, 0, 1, 1], [], []>} : vector<8x128xbf16>, vector<128x128xbf16>, vector<8x128xf32> -> vector<8x128xf32>
    %c0_20 = arith.constant 0 : index
    %c0_21 = arith.constant 0 : index
    %45 = vector.load %arg9[%c0_20, %c0_21] : memref<1x128xf32, #tpu.memory_space<vmem>>, vector<1x128xf32>
    %46 = vector.broadcast %45 : vector<1x128xf32> to vector<8x128xf32>
    %47 = arith.addf %44, %46 : vector<8x128xf32>
    %cst_22 = arith.constant dense<0xFF800000> : vector<8xf32>
    %48 = vector.multi_reduction <maximumf>, %47, %cst_22 [1] : vector<8x128xf32> to vector<8xf32>
    %49 = vector.shape_cast %48 : vector<8xf32> to vector<8x1xf32>
    %50 = vector.broadcast %49 : vector<8x1xf32> to vector<8x128xf32>
    %51 = arith.subf %47, %50 : vector<8x128xf32>
    %52 = math.exp %51 : vector<8x128xf32>
    %cst_23 = arith.constant dense<0.000000e+00> : vector<8xf32>
    %53 = vector.multi_reduction <add>, %52, %cst_23 [1] : vector<8x128xf32> to vector<8xf32>
    %54 = vector.shape_cast %53 : vector<8xf32> to vector<8x1xf32>
    %55 = tpu.reciprocal %54 {approx = true} : vector<8x1xf32> -> vector<8x1xf32>
    %56 = arith.mulf %54, %55 : vector<8x1xf32>
    %cst_24 = arith.constant 2.000000e+00 : f32
    %57 = vector.broadcast %cst_24 : f32 to vector<8x1xf32>
    %58 = arith.subf %57, %56 : vector<8x1xf32>
    %59 = arith.mulf %55, %58 : vector<8x1xf32>
    %60 = vector.broadcast %59 : vector<8x1xf32> to vector<8x128xf32>
    %61 = arith.mulf %52, %60 : vector<8x128xf32>
    %c0_25 = arith.constant 0 : index
    %c0_26 = arith.constant 0 : index
    %62 = vector.load %arg10[%c0_25, %c0_26] : memref<8x128xf32, #tpu.memory_space<vmem>>, vector<8x128xf32>
    tpu.vector_store %arg10[%c0_25, %c0_26], %61 {strides = array<i32>} : memref<8x128xf32, #tpu.memory_space<vmem>>, vector<8x128xf32>,
    return
  }
  func.func @transform_0(%arg0: i32) -> (i32, i32) {
    %c0_i32 = arith.constant 0 : i32
    %c0_i32_0 = arith.constant 0 : i32
    return %arg0, %c0_i32 : i32, i32
  }
  func.func @transform_1(%arg0: i32) -> (i32, i32) {
    %c0_i32 = arith.constant 0 : i32
    %c0_i32_0 = arith.constant 0 : i32
    %c0_i32_1 = arith.constant 0 : i32
    return %c0_i32, %c0_i32_0 : i32, i32
  }
  func.func @transform_2(%arg0: i32) -> (i32, i32) {
    %c0_i32 = arith.constant 0 : i32
    %c0_i32_0 = arith.constant 0 : i32
    %c0_i32_1 = arith.constant 0 : i32
    return %c0_i32, %c0_i32_0 : i32, i32
  }
  func.func @transform_3(%arg0: i32) -> (i32, i32) {
    %c0_i32 = arith.constant 0 : i32
    %c0_i32_0 = arith.constant 0 : i32
    %c0_i32_1 = arith.constant 0 : i32
    return %c0_i32, %c0_i32_0 : i32, i32
  }
  func.func @transform_4(%arg0: i32) -> (i32, i32) {
    %c0_i32 = arith.constant 0 : i32
    %c0_i32_0 = arith.constant 0 : i32
    %c0_i32_1 = arith.constant 0 : i32
    return %c0_i32, %c0_i32_0 : i32, i32
  }
  func.func @transform_5(%arg0: i32) -> (i32, i32) {
    %c0_i32 = arith.constant 0 : i32
    %c0_i32_0 = arith.constant 0 : i32
    %c0_i32_1 = arith.constant 0 : i32
    return %c0_i32, %c0_i32_0 : i32, i32
  }
  func.func @transform_6(%arg0: i32) -> (i32, i32) {
    %c0_i32 = arith.constant 0 : i32
    %c0_i32_0 = arith.constant 0 : i32
    %c0_i32_1 = arith.constant 0 : i32
    return %c0_i32, %c0_i32_0 : i32, i32
  }
  func.func @transform_7(%arg0: i32) -> (i32, i32) {
    %c0_i32 = arith.constant 0 : i32
    %c0_i32_0 = arith.constant 0 : i32
    %c0_i32_1 = arith.constant 0 : i32
    return %c0_i32, %c0_i32_0 : i32, i32
  }
  func.func @transform_8(%arg0: i32) -> (i32, i32) {
    %c0_i32 = arith.constant 0 : i32
    %c0_i32_0 = arith.constant 0 : i32
    %c0_i32_1 = arith.constant 0 : i32
    return %c0_i32, %c0_i32_0 : i32, i32
  }
  func.func @transform_9(%arg0: i32) -> (i32, i32) {
    %c0_i32 = arith.constant 0 : i32
    %c0_i32_0 = arith.constant 0 : i32
    return %arg0, %c0_i32 : i32, i32
  }
}

</mosaic_0001>

<bundles_post_ra>
// kernel: _forward.1
= control target key start
LH: loop header
LB: loop body
LE: loop exit
PB: predicated region body
PF: predicated region fallthrough
CT: control target
= control target key end

     0   :  { %14 = vsyncpa [#allocation3], 0  ;;  %s9932_s0 = inlined_call_operand.vmem [shape: bf16[8,128], index: 0, kind: input, shape index: {}]   ;;  %s9933_s1 = inlined_call_operand.hbm [shape: bf16[128,4096], index: 1, kind: input, shape index: {}]   ;;  %s9934_s2 = inlined_call_operand.hbm [shape: f32[1,4096], index: 2, kind: input, shape index: {}]   ;;  %s9935_s3 = inlined_call_operand.hbm [shape: bf16[2304,512], index: 3, kind: input, shape index: {}]   ;;  %s9936_s4 = inlined_call_operand.hbm [shape: f32[1,512], index: 4, kind: input, shape index: {}]   ;;  %s9937_s5 = inlined_call_operand.hbm [shape: bf16[512,128], index: 5, kind: input, shape index: {}]   ;;  %s9938_s6 = inlined_call_operand.hbm [shape: f32[1,128], index: 6, kind: input, shape index: {}]   ;;  %s9939_s7 = inlined_call_operand.hbm [shape: bf16[128,128], index: 7, kind: input, shape index: {}]   ;;  %s9940_s8 = inlined_call_operand.hbm [shape: f32[1,128], index: 8, kind: input, shape index: {}]   ;;  %s9941_s9 = inlined_call_operand.vmem [shape: f32[8,128], index: 9, kind: output, shape index: {}]  }
   0x1   :  { %15 = vsyncpa [#allocation5], 0 }
   0x2   :  { %16 = vsyncpa [#allocation8], 0 }
   0x3   :  { %17 = vsyncpa [#allocation11], 0 }
   0x4   :  { %18 = vsyncpa [#allocation14], 0  ;;  %s9378_s30 = smov [#allocation4]   ;;  %s9379_s11 = smov [#allocation7]  }
   0x5   :  { %s39_s10 = sshll.u32 %s9378_s30, 4  ;;  %s61_s12 = sshll.u32 %s9379_s11, 4  ;;  %s40_s10 = int_to_ptr.vmem [resolvable:$true] %s39_s10  ;;  %s62_s12 = int_to_ptr.vmem [resolvable:$true] %s61_s12 }
   0x6   :  { %s9216_s13 = scalar_lea.vmem %s40_s10, 512  ;;  %p9221_p1 = scmp.lt.s32.totalorder %s40_s10, %s40_s10 }
   0x7   :  { %p9217_p0 = scmp.ne.s32.totalorder %s40_s10, %s9216_s13  ;;  %p9222_p2 = scmp.lt.s32.totalorder %s9216_s13, %s9216_s13 }
   0x9   :  { %p9223_p3 = por %p9222_p2, %p9221_p1 }
   0xb   :  { %p9224_p4 = pnand %p9223_p3, %p9217_p0 }
   0xd   :  { %9227 = shalt.err (!%p9224_p4)
}
   0xe   :  { %42 = dma.hbm_to_vmem [thread:$0]  %s9934_s2, 512, %s40_s10, [#allocation5]  }
   0xf   :  { %s9236_s16 = scalar_lea.vmem %s62_s12, 64  ;;  %p9241_p6 = scmp.lt.s32.totalorder %s62_s12, %s62_s12 }
  0x10   :  { %p9237_p5 = scmp.ne.s32.totalorder %s62_s12, %s9236_s16  ;;  %p9242_p7 = scmp.lt.s32.totalorder %s9236_s16, %s9236_s16 }
  0x12   :  { %p9243_p8 = por %p9242_p7, %p9241_p6 }
  0x14   :  { %p9244_p9 = pnand %p9243_p8, %p9237_p5 }
  0x16   :  { %9247 = shalt.err (!%p9244_p9)
}
  0x17   :  { %64 = dma.hbm_to_vmem [thread:$0]  %s9936_s4, 64, %s62_s12, [#allocation8]  }
  0x18   :  { %s9380_s19 = smov [#allocation10]   ;;  %s9381_s21 = smov [#allocation2]  }
  0x19   :  { %s83_s20 = sshll.u32 %s9380_s19, 4  ;;  %s26_s22 = sshll.u32 %s9381_s21, 4  ;;  %s84_s20 = int_to_ptr.vmem [resolvable:$true] %s83_s20  ;;  %s27_s22 = int_to_ptr.vmem [resolvable:$true] %s26_s22 }
  0x1a   :  { %s9256_s23 = scalar_lea.vmem %s84_s20, 16  ;;  %s9260_s2 = scalar_lea.vmem %s84_s20, 32 }
  0x1b   :  { %p9257_p10 = scmp.ne.s32.totalorder %s84_s20, %s9256_s23  ;;  %p9261_p11 = scmp.lt.s32.totalorder %s84_s20, %s84_s20 }
  0x1c   :  { %p9262_p12 = scmp.lt.s32.totalorder %s9260_s2, %s9256_s23 }
  0x1e   :  { %p9263_p13 = por %p9262_p12, %p9261_p11 }
  0x20   :  { %p9264_p0 = pnand %p9263_p13, %p9257_p10 }
  0x22   :  { %9267 = shalt.err (!%p9264_p0)
}
  0x23   :  { %86 = dma.hbm_to_vmem [thread:$0]  %s9938_s6, 16, %s84_s20, [#allocation11]  }
  0x24   :  { %s9276_s26 = scalar_lea.vmem %s27_s22, 32768  ;;  %p9281_p2 = scmp.lt.s32.totalorder %s27_s22, %s27_s22 }
  0x25   :  { %p9277_p1 = scmp.ne.s32.totalorder %s27_s22, %s9276_s26  ;;  %p9282_p3 = scmp.lt.s32.totalorder %s9276_s26, %s9276_s26 }
  0x27   :  { %p9283_p4 = por %p9282_p3, %p9281_p2 }
  0x29   :  { %p9284_p5 = pnand %p9283_p4, %p9277_p1 }
  0x2b   :  { %9287 = shalt.err (!%p9284_p5)
}
  0x2c   :  { %s9382_s4 = smov 2048   ;;  %s9383_s27 = smov 128  }
  0x2d   :  { %32 = dma.hbm_to_vmem [thread:$0]  %s9933_s1, 32768, %s27_s22, [#allocation3], %s9382_s4, %s9382_s4, %s9383_s27  }
  0x2e   :  { %s9384_s30 = smov [#allocation6]  }
  0x2f   :  { %s48_s10 = sshll.u32 %s9384_s30, 4  ;;  %s49_s10 = int_to_ptr.vmem [resolvable:$true] %s48_s10 }
  0x30   :  { %s9296_s11 = scalar_lea.vmem %s49_s10, 73728  ;;  %p9301_p7 = scmp.lt.s32.totalorder %s49_s10, %s49_s10 }
  0x31   :  { %p9297_p6 = scmp.ne.s32.totalorder %s49_s10, %s9296_s11  ;;  %p9302_p8 = scmp.lt.s32.totalorder %s9296_s11, %s9296_s11 }
  0x33   :  { %p9303_p9 = por %p9302_p8, %p9301_p7 }
  0x35   :  { %p9304_p10 = pnand %p9303_p9, %p9297_p6 }
  0x37   :  { %9307 = shalt.err (!%p9304_p10)
}
  0x38   :  { %s9385_s6 = smov 256   ;;  %s9386_s12 = smov 16  }
  0x39   :  { %54 = dma.hbm_to_vmem [thread:$0]  %s9935_s3, 73728, %s49_s10, [#allocation5], %s9385_s6, %s9385_s6, %s9386_s12  }
  0x3a   :  { %s9387_s15 = smov [#allocation9]  }
  0x3b   :  { %s70_s16 = sshll.u32 %s9387_s15, 4  ;;  %s71_s16 = int_to_ptr.vmem [resolvable:$true] %s70_s16 }
  0x3c   :  { %s9316_s1 = scalar_lea.vmem %s71_s16, 4096  ;;  %p9321_p12 = scmp.lt.s32.totalorder %s71_s16, %s71_s16 }
  0x3d   :  { %p9317_p11 = scmp.ne.s32.totalorder %s71_s16, %s9316_s1  ;;  %p9322_p13 = scmp.lt.s32.totalorder %s9316_s1, %s9316_s1 }
  0x3f   :  { %p9323_p0 = por %p9322_p13, %p9321_p12 }
  0x41   :  { %p9324_p1 = pnand %p9323_p0, %p9317_p11 }
  0x43   :  { %9327 = shalt.err (!%p9324_p1)
}
  0x44   :  { %s9388_s17 = smov 64   ;;  %s9389_s18 = smov 4  }
  0x45   :  { %76 = dma.hbm_to_vmem [thread:$0]  %s9937_s5, 4096, %s71_s16, [#allocation8], %s9388_s17, %s9388_s17, %s9389_s18  }
  0x46   :  { %s9390_s21 = smov [#allocation12]   ;;  %s9391_s22 = smov [#allocation13]  }
  0x47   :  { %s92_s3 = sshll.u32 %s9390_s21, 4  ;;  %s105_s23 = sshll.u32 %s9391_s22, 4  ;;  %s93_s3 = int_to_ptr.vmem [resolvable:$true] %s92_s3  ;;  %s106_s23 = int_to_ptr.vmem [resolvable:$true] %s105_s23 }
  0x48   :  { %s9336_s2 = scalar_lea.vmem %s93_s3, 1024  ;;  %p9341_p3 = scmp.lt.s32.totalorder %s93_s3, %s93_s3 }
  0x49   :  { %p9337_p2 = scmp.ne.s32.totalorder %s93_s3, %s9336_s2  ;;  %p9342_p4 = scmp.lt.s32.totalorder %s9336_s2, %s9336_s2 }
  0x4b   :  { %p9343_p5 = por %p9342_p4, %p9341_p3 }
  0x4d   :  { %p9344_p6 = pnand %p9343_p5, %p9337_p2 }
  0x4f   :  { %9347 = shalt.err (!%p9344_p6)
}
  0x50   :  { %98 = dma.hbm_to_vmem [thread:$0]  %s9939_s7, 1024, %s93_s3, [#allocation11], %s9388_s17, %s9388_s17, %s9389_s18  }
  0x51   :  { %s9356_s5 = scalar_lea.vmem %s106_s23, 16  ;;  %s9360_s26 = scalar_lea.vmem %s106_s23, 32 }
  0x52   :  { %p9357_p7 = scmp.ne.s32.totalorder %s106_s23, %s9356_s5  ;;  %p9361_p8 = scmp.lt.s32.totalorder %s106_s23, %s106_s23 }
  0x53   :  { %p9362_p9 = scmp.lt.s32.totalorder %s9360_s26, %s9356_s5 }
  0x55   :  { %p9363_p10 = por %p9362_p9, %p9361_p8 }
  0x57   :  { %p9364_p11 = pnand %p9363_p10, %p9357_p7 }
  0x59   :  { %9367 = shalt.err (!%p9364_p11)
}
  0x5a   :  { %108 = dma.hbm_to_vmem [thread:$0]  %s9940_s8, 16, %s106_s23, [#allocation14]  }
  0x5b   :  { %9368 = dma.done.wait [#allocation3], 32768  }
  0x5c   :  { %9369 = vsyncadd [#allocation3], 4294934528 }
  0x5d   :  { %9370 = dma.done.wait [#allocation5], 74240  }
  0x5e   :  { %9371 = vsyncadd [#allocation5], 4294893056 }
  0x5f   :  { %9372 = dma.done.wait [#allocation8], 4160  }
  0x60   :  { %9373 = vsyncadd [#allocation8], 4294963136 }
  0x61   :  { %9374 = dma.done.wait [#allocation11], 1040  }
  0x62   :  { %9375 = vsyncadd [#allocation11], 4294966256 }
  0x63   :  { %9376 = dma.done.wait [#allocation14], 16  }
  0x64   :  { %9377 = vsyncadd [#allocation14], 4294967280  ;;  %v9392_v0 = vmov 0   ;;  %v359_v1 = vld [vmem:[#allocation2 + $0x700] sm:$0xff]  ;;  %v360_v3 = vld [vmem:[#allocation2 + $0x708] sm:$0xff]  ;;  %s9393_s11 = smov 120  }
  0x65   :  { %1912 = vmatprep.mubr.bf16.mxu1 %v9392_v0  ;;  %1871 = vmatprep.mubr.bf16.mxu0 %v9392_v0  ;;  %v375_v2 = vld [vmem:[#allocation2 + $0x780] sm:$0xff]  ;;  %v376_v5 = vld [vmem:[#allocation2 + $0x788] sm:$0xff]  ;;  %v361_v63 = vld [vmem:[#allocation2 + $0x710] sm:$0xff]  ;;  %s9394_s6 = smov 124   ;;  %vm9396_vm3 = vmmov 0  }
  0x66   :  { %v7519_v4 = vcombine.high %v359_v1, %v375_v2  ;;  %v7518_v6 = vcombine.low %v359_v1, %v375_v2  ;;  %v327_v7 = vld [vmem:[#allocation2 + $0x600] sm:$0xff]  ;;  %v7521_v9 = vcombine.high %v360_v3, %v376_v5  ;;  %v7520_v10 = vcombine.low %v360_v3, %v376_v5  ;;  %v328_v12 = vld [vmem:[#allocation2 + $0x608] sm:$0xff]  ;;  %v377_v1 = vld [vmem:[#allocation2 + $0x790] sm:$0xff] }
  0x67   :  { %v343_v8 = vld [vmem:[#allocation2 + $0x680] sm:$0xff]  ;;  %v344_v13 = vld [vmem:[#allocation2 + $0x688] sm:$0xff]  ;;  %v362_v2 = vld [vmem:[#allocation2 + $0x718] sm:$0xff] }
  0x68   :  { %v7487_v11 = vcombine.high %v327_v7, %v343_v8  ;;  %v295_v14 = vld [vmem:[#allocation2 + $0x500] sm:$0xff]  ;;  %1839 = vmatprep.subr.bf16.mxu0 %v7519_v4  ;;  %v7489_v15 = vcombine.high %v328_v12, %v344_v13  ;;  %v296_v17 = vld [vmem:[#allocation2 + $0x508] sm:$0xff]  ;;  %1880 = vmatprep.subr.bf16.mxu1 %v7521_v9  ;;  %v7486_v19 = vcombine.low %v327_v7, %v343_v8  ;;  %v378_v3 = vld [vmem:[#allocation2 + $0x798] sm:$0xff] }
  0x69   :  { %v311_v16 = vld [vmem:[#allocation2 + $0x580] sm:$0xff]  ;;  %v312_v18 = vld [vmem:[#allocation2 + $0x588] sm:$0xff]  ;;  %1840 = vmatpush1.bf16.msra.mxu0 %v7518_v6  ;;  %1881 = vmatpush1.bf16.msra.mxu1 %v7520_v10  ;;  %v7488_v20 = vcombine.low %v328_v12, %v344_v13  ;;  %v7523_v6 = vcombine.high %v361_v63, %v377_v1  ;;  %v7525_v7 = vcombine.high %v362_v2, %v378_v3  ;;  %v329_v8 = vld [vmem:[#allocation2 + $0x610] sm:$0xff] }
  0x6a   :  { %1841 = vmatprep.subr.bf16.mxu0 %v7487_v11  ;;  %v7455_v21 = vcombine.high %v295_v14, %v311_v16  ;;  %1882 = vmatprep.subr.bf16.mxu1 %v7489_v15  ;;  %v7457_v22 = vcombine.high %v296_v17, %v312_v18  ;;  %v263_v23 = vld [vmem:[#allocation2 + $0x400] sm:$0xff]  ;;  %v264_v25 = vld [vmem:[#allocation2 + $0x408] sm:$0xff]  ;;  %v7454_v27 = vcombine.low %v295_v14, %v311_v16  ;;  %v345_v9 = vld [vmem:[#allocation2 + $0x690] sm:$0xff] }
  0x6b   :  { %v279_v24 = vld [vmem:[#allocation2 + $0x480] sm:$0xff]  ;;  %v280_v26 = vld [vmem:[#allocation2 + $0x488] sm:$0xff]  ;;  %v7456_v28 = vcombine.low %v296_v17, %v312_v18  ;;  %v330_v10 = vld [vmem:[#allocation2 + $0x618] sm:$0xff]  ;;  %v7522_v13 = vcombine.low %v361_v63, %v377_v1  ;;  %v7524_v14 = vcombine.low %v362_v2, %v378_v3  ;;  %v7491_v15 = vcombine.high %v329_v8, %v345_v9 }
  0x6c   :  { %v7423_v29 = vcombine.high %v263_v23, %v279_v24  ;;  %v7425_v30 = vcombine.high %v264_v25, %v280_v26  ;;  %v231_v31 = vld [vmem:[#allocation2 + $0x300] sm:$0xff]  ;;  %v232_v33 = vld [vmem:[#allocation2 + $0x308] sm:$0xff]  ;;  %v7422_v35 = vcombine.low %v263_v23, %v279_v24  ;;  %v7424_v36 = vcombine.low %v264_v25, %v280_v26  ;;  %v346_v11 = vld [vmem:[#allocation2 + $0x698] sm:$0xff] }
  0x6d   :  { %1842 = vmatpush1.bf16.msra.mxu0 %v7486_v19  ;;  %1883 = vmatpush1.bf16.msra.mxu1 %v7488_v20  ;;  %v247_v32 = vld [vmem:[#allocation2 + $0x380] sm:$0xff]  ;;  %v248_v34 = vld [vmem:[#allocation2 + $0x388] sm:$0xff]  ;;  %v7493_v16 = vcombine.high %v330_v10, %v346_v11  ;;  %v297_v17 = vld [vmem:[#allocation2 + $0x510] sm:$0xff] }
  0x6e   :  { %1843 = vmatprep.subr.bf16.mxu0 %v7455_v21  ;;  %1884 = vmatprep.subr.bf16.mxu1 %v7457_v22  ;;  %v7391_v37 = vcombine.high %v231_v31, %v247_v32  ;;  %v7393_v38 = vcombine.high %v232_v33, %v248_v34  ;;  %v199_v39 = vld [vmem:[#allocation2 + $0x200] sm:$0xff]  ;;  %v200_v41 = vld [vmem:[#allocation2 + $0x208] sm:$0xff]  ;;  %v7390_v43 = vcombine.low %v231_v31, %v247_v32  ;;  %v313_v18 = vld [vmem:[#allocation2 + $0x590] sm:$0xff] }
  0x6f   :  { %v215_v40 = vld [vmem:[#allocation2 + $0x280] sm:$0xff]  ;;  %v216_v42 = vld [vmem:[#allocation2 + $0x288] sm:$0xff]  ;;  %v7392_v44 = vcombine.low %v232_v33, %v248_v34  ;;  %v298_v19 = vld [vmem:[#allocation2 + $0x518] sm:$0xff]  ;;  %v7490_v21 = vcombine.low %v329_v8, %v345_v9  ;;  %v7492_v22 = vcombine.low %v330_v10, %v346_v11  ;;  %v7459_v23 = vcombine.high %v297_v17, %v313_v18 }
  0x70   :  { %v7359_v45 = vcombine.high %v199_v39, %v215_v40  ;;  %v7361_v46 = vcombine.high %v200_v41, %v216_v42  ;;  %v167_v47 = vld [vmem:[#allocation2 + $0x100] sm:$0xff]  ;;  %v168_v49 = vld [vmem:[#allocation2 + $0x108] sm:$0xff]  ;;  %v7358_v51 = vcombine.low %v199_v39, %v215_v40  ;;  %v7360_v52 = vcombine.low %v200_v41, %v216_v42  ;;  %v314_v20 = vld [vmem:[#allocation2 + $0x598] sm:$0xff] }
  0x71   :  { %1844 = vmatpush1.bf16.msra.mxu0 %v7454_v27  ;;  %1885 = vmatpush1.bf16.msra.mxu1 %v7456_v28  ;;  %v183_v48 = vld [vmem:[#allocation2 + $0x180] sm:$0xff]  ;;  %v184_v50 = vld [vmem:[#allocation2 + $0x188] sm:$0xff]  ;;  %v7461_v24 = vcombine.high %v298_v19, %v314_v20  ;;  %v265_v25 = vld [vmem:[#allocation2 + $0x410] sm:$0xff] }
  0x72   :  { %1845 = vmatprep.subr.bf16.mxu0 %v7423_v29  ;;  %1886 = vmatprep.subr.bf16.mxu1 %v7425_v30  ;;  %v7327_v53 = vcombine.high %v167_v47, %v183_v48  ;;  %v7329_v54 = vcombine.high %v168_v49, %v184_v50  ;;  %v135_v55 = vld [vmem:[#allocation2] sm:$0xff]  ;;  %v136_v57 = vld [vmem:[#allocation2 + $0x8] sm:$0xff]  ;;  %v7326_v59 = vcombine.low %v167_v47, %v183_v48  ;;  %v281_v26 = vld [vmem:[#allocation2 + $0x490] sm:$0xff] }
  0x73   :  { %v151_v56 = vld [vmem:[#allocation2 + $0x80] sm:$0xff]  ;;  %v152_v58 = vld [vmem:[#allocation2 + $0x88] sm:$0xff]  ;;  %v7328_v60 = vcombine.low %v168_v49, %v184_v50  ;;  %v266_v27 = vld [vmem:[#allocation2 + $0x418] sm:$0xff]  ;;  %v7458_v29 = vcombine.low %v297_v17, %v313_v18  ;;  %v7460_v30 = vcombine.low %v298_v19, %v314_v20  ;;  %v7427_v31 = vcombine.high %v265_v25, %v281_v26 }
  0x74   :  { %v7295_v61 = vcombine.high %v135_v55, %v151_v56  ;;  %v7297_v62 = vcombine.high %v136_v57, %v152_v58  ;;  %v7294_v4 = vcombine.low %v135_v55, %v151_v56  ;;  %v7296_v5 = vcombine.low %v136_v57, %v152_v58  ;;  %v9480_v12 = vld [vmem:[%s9932_s0] sm:$0xf]  ;;  %v282_v28 = vld [vmem:[#allocation2 + $0x498] sm:$0xff]  ;;  %v233_v33 = vld [vmem:[#allocation2 + $0x310] sm:$0xff] }
  0x75   :  { %1846 = vmatpush1.bf16.msra.mxu0 %v7422_v35  ;;  %1887 = vmatpush1.bf16.msra.mxu1 %v7424_v36  ;;  %v7429_v32 = vcombine.high %v266_v27, %v282_v28  ;;  %v249_v34 = vld [vmem:[#allocation2 + $0x390] sm:$0xff]  ;;  %v234_v35 = vld [vmem:[#allocation2 + $0x318] sm:$0xff]  ;;  %v363_v2 = vld [vmem:[#allocation2 + $0x720] sm:$0xff] }
  0x76   :  { %1847 = vmatprep.subr.bf16.mxu0 %v7391_v37  ;;  %1888 = vmatprep.subr.bf16.mxu1 %v7393_v38  ;;  %v250_v36 = vld [vmem:[#allocation2 + $0x398] sm:$0xff]  ;;  %v7426_v37 = vcombine.low %v265_v25, %v281_v26  ;;  %v7428_v38 = vcombine.low %v266_v27, %v282_v28  ;;  %v7395_v39 = vcombine.high %v233_v33, %v249_v34  ;;  %v201_v41 = vld [vmem:[#allocation2 + $0x210] sm:$0xff]  ;;  %v379_v3 = vld [vmem:[#allocation2 + $0x7a0] sm:$0xff] }
  0x77   :  { %v7397_v40 = vcombine.high %v234_v35, %v250_v36  ;;  %v217_v42 = vld [vmem:[#allocation2 + $0x290] sm:$0xff]  ;;  %v7527_v8 = vcombine.high %v363_v2, %v379_v3  ;;  %v331_v10 = vld [vmem:[#allocation2 + $0x620] sm:$0xff]  ;;  %v300_v20 = vld [vmem:[#allocation2 + $0x528] sm:$0xff] }
  0x78   :  { %v7363_v47 = vcombine.high %v201_v41, %v217_v42  ;;  %v169_v49 = vld [vmem:[#allocation2 + $0x110] sm:$0xff]  ;;  %v347_v11 = vld [vmem:[#allocation2 + $0x6a0] sm:$0xff]  ;;  %v268_v28 = vld [vmem:[#allocation2 + $0x428] sm:$0xff] }
  0x79   :  { %1848 = vmatpush1.bf16.msra.mxu0 %v7390_v43  ;;  %1889 = vmatpush1.bf16.msra.mxu1 %v7392_v44  ;;  %v202_v43 = vld [vmem:[#allocation2 + $0x218] sm:$0xff]  ;;  %v185_v50 = vld [vmem:[#allocation2 + $0x190] sm:$0xff]  ;;  %v7495_v17 = vcombine.high %v331_v10, %v347_v11  ;;  %v299_v18 = vld [vmem:[#allocation2 + $0x520] sm:$0xff] }
  0x7a   :  { %1849 = vmatprep.subr.bf16.mxu0 %v7359_v45  ;;  %1890 = vmatprep.subr.bf16.mxu1 %v7361_v46  ;;  %v218_v44 = vld [vmem:[#allocation2 + $0x298] sm:$0xff]  ;;  %v7394_v45 = vcombine.low %v233_v33, %v249_v34  ;;  %v7396_v46 = vcombine.low %v234_v35, %v250_v36  ;;  %v7331_v55 = vcombine.high %v169_v49, %v185_v50  ;;  %v137_v57 = vld [vmem:[#allocation2 + $0x10] sm:$0xff]  ;;  %v315_v19 = vld [vmem:[#allocation2 + $0x5a0] sm:$0xff] }
  0x7b   :  { %v7365_v48 = vcombine.high %v202_v43, %v218_v44  ;;  %v153_v58 = vld [vmem:[#allocation2 + $0x90] sm:$0xff]  ;;  %v7463_v25 = vcombine.high %v299_v18, %v315_v19  ;;  %v267_v26 = vld [vmem:[#allocation2 + $0x420] sm:$0xff]  ;;  %v236_v36 = vld [vmem:[#allocation2 + $0x328] sm:$0xff] }
  0x7c   :  { %v7299_v63 = vcombine.high %v137_v57, %v153_v58  ;;  %v283_v27 = vld [vmem:[#allocation2 + $0x4a0] sm:$0xff] }
  0x7d   :  { %1850 = vmatpush1.bf16.msra.mxu0 %v7358_v51  ;;  %1891 = vmatpush1.bf16.msra.mxu1 %v7360_v52  ;;  %v170_v51 = vld [vmem:[#allocation2 + $0x118] sm:$0xff]  ;;  %v7431_v33 = vcombine.high %v267_v26, %v283_v27  ;;  %v235_v34 = vld [vmem:[#allocation2 + $0x320] sm:$0xff] }
  0x7e   :  { %1851 = vmatprep.subr.bf16.mxu0 %v7327_v53  ;;  %1892 = vmatprep.subr.bf16.mxu1 %v7329_v54  ;;  %v186_v52 = vld [vmem:[#allocation2 + $0x198] sm:$0xff]  ;;  %v7362_v53 = vcombine.low %v201_v41, %v217_v42  ;;  %v7364_v54 = vcombine.low %v202_v43, %v218_v44  ;;  %v251_v35 = vld [vmem:[#allocation2 + $0x3a0] sm:$0xff]  ;;  %v204_v44 = vld [vmem:[#allocation2 + $0x228] sm:$0xff] }
  0x7f   :  { %v7333_v56 = vcombine.high %v170_v51, %v186_v52  ;;  %v7399_v41 = vcombine.high %v235_v34, %v251_v35  ;;  %v203_v42 = vld [vmem:[#allocation2 + $0x220] sm:$0xff] }
  0x80   :  { %v219_v43 = vld [vmem:[#allocation2 + $0x2a0] sm:$0xff] }
  0x81   :  { %1852 = vmatpush1.bf16.msra.mxu0 %v7326_v59  ;;  %1893 = vmatpush1.bf16.msra.mxu1 %v7328_v60  ;;  %v138_v59 = vld [vmem:[#allocation2 + $0x18] sm:$0xff] }
  0x82   :  { %1853 = vmatprep.subr.bf16.mxu0 %v7295_v61  ;;  %1894 = vmatprep.subr.bf16.mxu1 %v7297_v62  ;;  %v154_v60 = vld [vmem:[#allocation2 + $0x98] sm:$0xff]  ;;  %v7330_v61 = vcombine.low %v169_v49, %v185_v50  ;;  %v7332_v62 = vcombine.low %v170_v51, %v186_v52  ;;  %v7367_v49 = vcombine.high %v203_v42, %v219_v43  ;;  %v171_v50 = vld [vmem:[#allocation2 + $0x120] sm:$0xff]  ;;  %v172_v52 = vld [vmem:[#allocation2 + $0x128] sm:$0xff] }
  0x83   :  { %v7301_v1 = vcombine.high %v138_v59, %v154_v60  ;;  %v187_v51 = vld [vmem:[#allocation2 + $0x1a0] sm:$0xff] }
  0x85   :  { %1854 = vmatpush1.bf16.msra.mxu0 %v7294_v4  ;;  %1895 = vmatpush1.bf16.msra.mxu1 %v7296_v5  ;;  %v364_v4 = vld [vmem:[#allocation2 + $0x728] sm:$0xff] }
  0x86   :  { %1921 = vmatprep.subr.bf16.mxu0 %v7523_v6  ;;  %1962 = vmatprep.subr.bf16.mxu1 %v7525_v7  ;;  %v380_v5 = vld [vmem:[#allocation2 + $0x7a8] sm:$0xff]  ;;  %v7298_v6 = vcombine.low %v137_v57, %v153_v58  ;;  %v7300_v7 = vcombine.low %v138_v59, %v154_v60  ;;  %v7335_v57 = vcombine.high %v171_v50, %v187_v51  ;;  %v139_v58 = vld [vmem:[#allocation2 + $0x20] sm:$0xff] }
  0x87   :  { %v7529_v9 = vcombine.high %v364_v4, %v380_v5  ;;  %v155_v59 = vld [vmem:[#allocation2 + $0xa0] sm:$0xff]  ;;  %v140_v60 = vld [vmem:[#allocation2 + $0x28] sm:$0xff] }
  0x88   :  { %1872 = vmatmul.mubr.bf16.vlgmr.msra.gmra.mxu0 %v9480_v12  ;;  %1913 = vmatmul.mubr.bf16.vlgmr.msra.gmra.mxu1 %v9480_v12 }
  0x89   :  { %1922 = vmatpush1.bf16.msra.mxu0 %v7522_v13  ;;  %1963 = vmatpush1.bf16.msra.mxu1 %v7524_v14  ;;  %v332_v13 = vld [vmem:[#allocation2 + $0x628] sm:$0xff] }
  0x8a   :  { %1923 = vmatprep.subr.bf16.mxu0 %v7491_v15  ;;  %1964 = vmatprep.subr.bf16.mxu1 %v7493_v16  ;;  %v348_v14 = vld [vmem:[#allocation2 + $0x6a8] sm:$0xff]  ;;  %v7526_v15 = vcombine.low %v363_v2, %v379_v3  ;;  %v7528_v16 = vcombine.low %v364_v4, %v380_v5  ;;  %v7303_v2 = vcombine.high %v139_v58, %v155_v59  ;;  %v365_v3 = vld [vmem:[#allocation2 + $0x730] sm:$0xff]  ;;  %v366_v5 = vld [vmem:[#allocation2 + $0x738] sm:$0xff] }
  0x8b   :  { %1994 = vmatprep.mubr.bf16.mxu1 %v9392_v0  ;;  %1953 = vmatprep.mubr.bf16.mxu0 %v9392_v0  ;;  %v381_v4 = vld [vmem:[#allocation2 + $0x7b0] sm:$0xff] }
  0x8d   :  { %1924 = vmatpush1.bf16.msra.mxu0 %v7490_v21  ;;  %1965 = vmatpush1.bf16.msra.mxu1 %v7492_v22  ;;  %v7497_v21 = vcombine.high %v332_v13, %v348_v14  ;;  %v316_v22 = vld [vmem:[#allocation2 + $0x5a8] sm:$0xff] }
  0x8e   :  { %1925 = vmatprep.subr.bf16.mxu0 %v7459_v23  ;;  %1966 = vmatprep.subr.bf16.mxu1 %v7461_v24  ;;  %v7494_v23 = vcombine.low %v331_v10, %v347_v11  ;;  %v7496_v24 = vcombine.low %v332_v13, %v348_v14  ;;  %v7531_v10 = vcombine.high %v365_v3, %v381_v4  ;;  %v333_v11 = vld [vmem:[#allocation2 + $0x630] sm:$0xff]  ;;  %v334_v14 = vld [vmem:[#allocation2 + $0x638] sm:$0xff] }
  0x8f   :  { %v349_v13 = vld [vmem:[#allocation2 + $0x6b0] sm:$0xff] }
  0x91   :  { %1926 = vmatpush1.bf16.msra.mxu0 %v7458_v29  ;;  %1967 = vmatpush1.bf16.msra.mxu1 %v7460_v30  ;;  %v7465_v29 = vcombine.high %v300_v20, %v316_v22  ;;  %v284_v30 = vld [vmem:[#allocation2 + $0x4a8] sm:$0xff] }
  0x92   :  { %1927 = vmatprep.subr.bf16.mxu0 %v7427_v31  ;;  %1968 = vmatprep.subr.bf16.mxu1 %v7429_v32  ;;  %v7462_v31 = vcombine.low %v299_v18, %v315_v19  ;;  %v7464_v32 = vcombine.low %v300_v20, %v316_v22  ;;  %v7499_v19 = vcombine.high %v333_v11, %v349_v13  ;;  %v301_v20 = vld [vmem:[#allocation2 + $0x530] sm:$0xff] }
  0x95   :  { %1928 = vmatpush1.bf16.msra.mxu0 %v7426_v37  ;;  %1969 = vmatpush1.bf16.msra.mxu1 %v7428_v38  ;;  %v7433_v37 = vcombine.high %v268_v28, %v284_v30  ;;  %v252_v38 = vld [vmem:[#allocation2 + $0x3a8] sm:$0xff] }
  0x96   :  { %1929 = vmatprep.subr.bf16.mxu0 %v7395_v39  ;;  %1970 = vmatprep.subr.bf16.mxu1 %v7397_v40  ;;  %v7430_v39 = vcombine.low %v267_v26, %v283_v27  ;;  %v7432_v40 = vcombine.low %v268_v28, %v284_v30  ;;  %v269_v28 = vld [vmem:[#allocation2 + $0x430] sm:$0xff]  ;;  %v270_v30 = vld [vmem:[#allocation2 + $0x438] sm:$0xff] }
  0x99   :  { %1930 = vmatpush1.bf16.msra.mxu0 %v7394_v45  ;;  %1971 = vmatpush1.bf16.msra.mxu1 %v7396_v46  ;;  %v7401_v45 = vcombine.high %v236_v36, %v252_v38  ;;  %v220_v46 = vld [vmem:[#allocation2 + $0x2a8] sm:$0xff] }
  0x9a   :  { %1931 = vmatprep.subr.bf16.mxu0 %v7363_v47  ;;  %1972 = vmatprep.subr.bf16.mxu1 %v7365_v48  ;;  %v7398_v47 = vcombine.low %v235_v34, %v251_v35  ;;  %v7400_v48 = vcombine.low %v236_v36, %v252_v38  ;;  %v237_v36 = vld [vmem:[#allocation2 + $0x330] sm:$0xff]  ;;  %v238_v38 = vld [vmem:[#allocation2 + $0x338] sm:$0xff] }
  0x9d   :  { %1932 = vmatpush1.bf16.msra.mxu0 %v7362_v53  ;;  %1973 = vmatpush1.bf16.msra.mxu1 %v7364_v54  ;;  %v7369_v53 = vcombine.high %v204_v44, %v220_v46  ;;  %v188_v54 = vld [vmem:[#allocation2 + $0x1a8] sm:$0xff] }
  0x9e   :  { %1933 = vmatprep.subr.bf16.mxu0 %v7331_v55  ;;  %1974 = vmatprep.subr.bf16.mxu1 %v7333_v56  ;;  %v7366_v55 = vcombine.low %v203_v42, %v219_v43  ;;  %v7368_v56 = vcombine.low %v204_v44, %v220_v46  ;;  %v205_v44 = vld [vmem:[#allocation2 + $0x230] sm:$0xff]  ;;  %v206_v46 = vld [vmem:[#allocation2 + $0x238] sm:$0xff] }
  0xa1   :  { %1934 = vmatpush1.bf16.msra.mxu0 %v7330_v61  ;;  %1975 = vmatpush1.bf16.msra.mxu1 %v7332_v62  ;;  %v7337_v61 = vcombine.high %v172_v52, %v188_v54  ;;  %v156_v62 = vld [vmem:[#allocation2 + $0xa8] sm:$0xff] }
  0xa2   :  { %1935 = vmatprep.subr.bf16.mxu0 %v7299_v63  ;;  %1976 = vmatprep.subr.bf16.mxu1 %v7301_v1  ;;  %v7334_v63 = vcombine.low %v171_v50, %v187_v51  ;;  %v7336_v1 = vcombine.low %v172_v52, %v188_v54  ;;  %v173_v52 = vld [vmem:[#allocation2 + $0x130] sm:$0xff]  ;;  %v174_v54 = vld [vmem:[#allocation2 + $0x138] sm:$0xff] }
  0xa5   :  { %1936 = vmatpush1.bf16.msra.mxu0 %v7298_v6  ;;  %1977 = vmatpush1.bf16.msra.mxu1 %v7300_v7  ;;  %v7305_v6 = vcombine.high %v140_v60, %v156_v62  ;;  %v382_v7 = vld [vmem:[#allocation2 + $0x7b8] sm:$0xff] }
  0xa6   :  { %2003 = vmatprep.subr.bf16.mxu0 %v7527_v8  ;;  %2044 = vmatprep.subr.bf16.mxu1 %v7529_v9  ;;  %v7302_v8 = vcombine.low %v139_v58, %v155_v59  ;;  %v7304_v9 = vcombine.low %v140_v60, %v156_v62  ;;  %v7532_v18 = vcombine.low %v366_v5, %v382_v7  ;;  %v141_v60 = vld [vmem:[#allocation2 + $0x30] sm:$0xff]  ;;  %v142_v62 = vld [vmem:[#allocation2 + $0x38] sm:$0xff] }
  0xa8   :  { %1954 = vmatmul.mubr.bf16.vlgmr.msra.gmra.mxu0 %v9480_v12  ;;  %1995 = vmatmul.mubr.bf16.vlgmr.msra.gmra.mxu1 %v9480_v12 }
  0xa9   :  { %2004 = vmatpush1.bf16.msra.mxu0 %v7526_v15  ;;  %2045 = vmatpush1.bf16.msra.mxu1 %v7528_v16  ;;  %v7533_v15 = vcombine.high %v366_v5, %v382_v7  ;;  %v350_v16 = vld [vmem:[#allocation2 + $0x6b8] sm:$0xff]  ;;  %v367_v5 = vld [vmem:[#allocation2 + $0x740] sm:$0xff]  ;;  %v368_v7 = vld [vmem:[#allocation2 + $0x748] sm:$0xff] }
  0xaa   :  { %2005 = vmatprep.subr.bf16.mxu0 %v7495_v17  ;;  %2046 = vmatprep.subr.bf16.mxu1 %v7497_v21  ;;  %v7530_v17 = vcombine.low %v365_v3, %v381_v4  ;;  %v317_v21 = vld [vmem:[#allocation2 + $0x5b0] sm:$0xff]  ;;  %v7501_v22 = vcombine.high %v334_v14, %v350_v16  ;;  %v7500_v26 = vcombine.low %v334_v14, %v350_v16  ;;  %v335_v14 = vld [vmem:[#allocation2 + $0x640] sm:$0xff]  ;;  %v336_v16 = vld [vmem:[#allocation2 + $0x648] sm:$0xff] }
  0xab   :  { %2076 = vmatprep.mubr.bf16.mxu1 %v9392_v0  ;;  %2035 = vmatprep.mubr.bf16.mxu0 %v9392_v0  ;;  %v7467_v27 = vcombine.high %v301_v20, %v317_v21 }
  0xad   :  { %2006 = vmatpush1.bf16.msra.mxu0 %v7494_v23  ;;  %2047 = vmatpush1.bf16.msra.mxu1 %v7496_v24  ;;  %v302_v23 = vld [vmem:[#allocation2 + $0x538] sm:$0xff] }
  0xae   :  { %2007 = vmatprep.subr.bf16.mxu0 %v7463_v25  ;;  %2048 = vmatprep.subr.bf16.mxu1 %v7465_v29  ;;  %v318_v24 = vld [vmem:[#allocation2 + $0x5b8] sm:$0xff]  ;;  %v7498_v25 = vcombine.low %v333_v11, %v349_v13  ;;  %v285_v29 = vld [vmem:[#allocation2 + $0x4b0] sm:$0xff] }
  0xaf   :  { %v7468_v34 = vcombine.low %v302_v23, %v318_v24  ;;  %v7435_v35 = vcombine.high %v269_v28, %v285_v29 }
  0xb1   :  { %2008 = vmatpush1.bf16.msra.mxu0 %v7462_v31  ;;  %2049 = vmatpush1.bf16.msra.mxu1 %v7464_v32  ;;  %v7469_v31 = vcombine.high %v302_v23, %v318_v24  ;;  %v286_v32 = vld [vmem:[#allocation2 + $0x4b8] sm:$0xff] }
  0xb2   :  { %2009 = vmatprep.subr.bf16.mxu0 %v7431_v33  ;;  %2050 = vmatprep.subr.bf16.mxu1 %v7433_v37  ;;  %v7466_v33 = vcombine.low %v301_v20, %v317_v21  ;;  %v253_v37 = vld [vmem:[#allocation2 + $0x3b0] sm:$0xff]  ;;  %v7436_v42 = vcombine.low %v270_v30, %v286_v32  ;;  %v303_v20 = vld [vmem:[#allocation2 + $0x540] sm:$0xff] }
  0xb3   :  { %v7403_v43 = vcombine.high %v237_v36, %v253_v37  ;;  %v319_v21 = vld [vmem:[#allocation2 + $0x5c0] sm:$0xff] }
  0xb5   :  { %2010 = vmatpush1.bf16.msra.mxu0 %v7430_v39  ;;  %2051 = vmatpush1.bf16.msra.mxu1 %v7432_v40  ;;  %v7437_v39 = vcombine.high %v270_v30, %v286_v32  ;;  %v254_v40 = vld [vmem:[#allocation2 + $0x3b8] sm:$0xff] }
  0xb6   :  { %2011 = vmatprep.subr.bf16.mxu0 %v7399_v41  ;;  %2052 = vmatprep.subr.bf16.mxu1 %v7401_v45  ;;  %v7434_v41 = vcombine.low %v269_v28, %v285_v29  ;;  %v221_v45 = vld [vmem:[#allocation2 + $0x2b0] sm:$0xff]  ;;  %v7404_v50 = vcombine.low %v238_v38, %v254_v40  ;;  %v271_v28 = vld [vmem:[#allocation2 + $0x440] sm:$0xff] }
  0xb7   :  { %v7371_v51 = vcombine.high %v205_v44, %v221_v45  ;;  %v287_v29 = vld [vmem:[#allocation2 + $0x4c0] sm:$0xff] }
  0xb9   :  { %2012 = vmatpush1.bf16.msra.mxu0 %v7398_v47  ;;  %2053 = vmatpush1.bf16.msra.mxu1 %v7400_v48  ;;  %v7405_v47 = vcombine.high %v238_v38, %v254_v40  ;;  %v222_v48 = vld [vmem:[#allocation2 + $0x2b8] sm:$0xff]  ;;  %v7439_v38 = vcombine.high %v271_v28, %v287_v29  ;;  %v240_v40 = vld [vmem:[#allocation2 + $0x348] sm:$0xff] }
  0xba   :  { %2013 = vmatprep.subr.bf16.mxu0 %v7367_v49  ;;  %2054 = vmatprep.subr.bf16.mxu1 %v7369_v53  ;;  %v7402_v49 = vcombine.low %v237_v36, %v253_v37  ;;  %v189_v53 = vld [vmem:[#allocation2 + $0x1b0] sm:$0xff]  ;;  %v7372_v58 = vcombine.low %v206_v46, %v222_v48  ;;  %v239_v36 = vld [vmem:[#allocation2 + $0x340] sm:$0xff] }
  0xbb   :  { %v7339_v59 = vcombine.high %v173_v52, %v189_v53 }
  0xbd   :  { %2014 = vmatpush1.bf16.msra.mxu0 %v7366_v55  ;;  %2055 = vmatpush1.bf16.msra.mxu1 %v7368_v56  ;;  %v7373_v55 = vcombine.high %v206_v46, %v222_v48  ;;  %v190_v56 = vld [vmem:[#allocation2 + $0x1b8] sm:$0xff]  ;;  %v224_v48 = vld [vmem:[#allocation2 + $0x2c8] sm:$0xff] }
  0xbe   :  { %2015 = vmatprep.subr.bf16.mxu0 %v7335_v57  ;;  %2056 = vmatprep.subr.bf16.mxu1 %v7337_v61  ;;  %v7370_v57 = vcombine.low %v205_v44, %v221_v45  ;;  %v157_v61 = vld [vmem:[#allocation2 + $0xb0] sm:$0xff]  ;;  %v7340_v3 = vcombine.low %v174_v54, %v190_v56  ;;  %v223_v44 = vld [vmem:[#allocation2 + $0x2c0] sm:$0xff] }
  0xbf   :  { %v7307_v4 = vcombine.high %v141_v60, %v157_v61 }
  0xc1   :  { %2016 = vmatpush1.bf16.msra.mxu0 %v7334_v63  ;;  %2057 = vmatpush1.bf16.msra.mxu1 %v7336_v1  ;;  %v7341_v63 = vcombine.high %v174_v54, %v190_v56  ;;  %v158_v1 = vld [vmem:[#allocation2 + $0xb8] sm:$0xff]  ;;  %v192_v56 = vld [vmem:[#allocation2 + $0x1c8] sm:$0xff] }
  0xc2   :  { %2017 = vmatprep.subr.bf16.mxu0 %v7303_v2  ;;  %2058 = vmatprep.subr.bf16.mxu1 %v7305_v6  ;;  %v7338_v2 = vcombine.low %v173_v52, %v189_v53  ;;  %v383_v6 = vld [vmem:[#allocation2 + $0x7c0] sm:$0xff]  ;;  %v7308_v11 = vcombine.low %v142_v62, %v158_v1 }
  0xc3   :  { %v7535_v13 = vcombine.high %v367_v5, %v383_v6  ;;  %v191_v52 = vld [vmem:[#allocation2 + $0x1c0] sm:$0xff] }
  0xc5   :  { %2018 = vmatpush1.bf16.msra.mxu0 %v7302_v8  ;;  %2059 = vmatpush1.bf16.msra.mxu1 %v7304_v9  ;;  %v7309_v8 = vcombine.high %v142_v62, %v158_v1  ;;  %v384_v9 = vld [vmem:[#allocation2 + $0x7c8] sm:$0xff] }
  0xc6   :  { %2085 = vmatprep.subr.bf16.mxu0 %v7531_v10  ;;  %2126 = vmatprep.subr.bf16.mxu1 %v7533_v15  ;;  %v7306_v10 = vcombine.low %v141_v60, %v157_v61  ;;  %v351_v15 = vld [vmem:[#allocation2 + $0x6c0] sm:$0xff]  ;;  %v160_v1 = vld [vmem:[#allocation2 + $0xc8] sm:$0xff] }
  0xc7   :  { %v7503_v23 = vcombine.high %v335_v14, %v351_v15  ;;  %v159_v60 = vld [vmem:[#allocation2 + $0xc0] sm:$0xff] }
  0xc8   :  { %2036 = vmatmul.mubr.bf16.vlgmr.msra.gmra.mxu0 %v9480_v12  ;;  %2077 = vmatmul.mubr.bf16.vlgmr.msra.gmra.mxu1 %v9480_v12 }
  0xc9   :  { %2086 = vmatpush1.bf16.msra.mxu0 %v7530_v17  ;;  %2127 = vmatpush1.bf16.msra.mxu1 %v7532_v18  ;;  %v7537_v17 = vcombine.high %v368_v7, %v384_v9  ;;  %v352_v18 = vld [vmem:[#allocation2 + $0x6c8] sm:$0xff] }
  0xca   :  { %2087 = vmatprep.subr.bf16.mxu0 %v7499_v19  ;;  %2128 = vmatprep.subr.bf16.mxu1 %v7501_v22  ;;  %v7534_v19 = vcombine.low %v367_v5, %v383_v6  ;;  %v7536_v22 = vcombine.low %v368_v7, %v384_v9  ;;  %v7505_v24 = vcombine.high %v336_v16, %v352_v18  ;;  %v385_v5 = vld [vmem:[#allocation2 + $0x7d0] sm:$0xff]  ;;  %v386_v9 = vld [vmem:[#allocation2 + $0x7d8] sm:$0xff] }
  0xcb   :  { %2117 = vmatprep.mubr.bf16.mxu0 %v9392_v0  ;;  %2158 = vmatprep.mubr.bf16.mxu1 %v9392_v0  ;;  %v7504_v30 = vcombine.low %v336_v16, %v352_v18  ;;  %v354_v18 = vld [vmem:[#allocation2 + $0x6d8] sm:$0xff] }
  0xcd   :  { %2088 = vmatpush1.bf16.msra.mxu0 %v7498_v25  ;;  %2129 = vmatpush1.bf16.msra.mxu1 %v7500_v26  ;;  %v304_v25 = vld [vmem:[#allocation2 + $0x548] sm:$0xff] }
  0xce   :  { %2089 = vmatprep.subr.bf16.mxu0 %v7467_v27  ;;  %2130 = vmatprep.subr.bf16.mxu1 %v7469_v31  ;;  %v320_v26 = vld [vmem:[#allocation2 + $0x5c8] sm:$0xff]  ;;  %v7502_v27 = vcombine.low %v335_v14, %v351_v15  ;;  %v7471_v31 = vcombine.high %v303_v20, %v319_v21  ;;  %v353_v14 = vld [vmem:[#allocation2 + $0x6d0] sm:$0xff] }
  0xcf   :  { %v7473_v32 = vcombine.high %v304_v25, %v320_v26  ;;  %v7472_v37 = vcombine.low %v304_v25, %v320_v26  ;;  %v306_v26 = vld [vmem:[#allocation2 + $0x558] sm:$0xff] }
  0xd1   :  { %2090 = vmatpush1.bf16.msra.mxu0 %v7466_v33  ;;  %2131 = vmatpush1.bf16.msra.mxu1 %v7468_v34  ;;  %v272_v33 = vld [vmem:[#allocation2 + $0x448] sm:$0xff] }
  0xd2   :  { %2091 = vmatprep.subr.bf16.mxu0 %v7435_v35  ;;  %2132 = vmatprep.subr.bf16.mxu1 %v7437_v39  ;;  %v288_v34 = vld [vmem:[#allocation2 + $0x4c8] sm:$0xff]  ;;  %v7470_v35 = vcombine.low %v303_v20, %v319_v21  ;;  %v305_v21 = vld [vmem:[#allocation2 + $0x550] sm:$0xff] }
  0xd3   :  { %v7441_v39 = vcombine.high %v272_v33, %v288_v34  ;;  %v7440_v45 = vcombine.low %v272_v33, %v288_v34 }
  0xd5   :  { %2092 = vmatpush1.bf16.msra.mxu0 %v7434_v41  ;;  %2133 = vmatpush1.bf16.msra.mxu1 %v7436_v42  ;;  %v256_v41 = vld [vmem:[#allocation2 + $0x3c8] sm:$0xff]  ;;  %v7438_v42 = vcombine.low %v271_v28, %v287_v29  ;;  %v322_v28 = vld [vmem:[#allocation2 + $0x5d8] sm:$0xff] }
  0xd6   :  { %2093 = vmatprep.subr.bf16.mxu0 %v7403_v43  ;;  %2134 = vmatprep.subr.bf16.mxu1 %v7405_v47  ;;  %v207_v43 = vld [vmem:[#allocation2 + $0x240] sm:$0xff]  ;;  %v208_v47 = vld [vmem:[#allocation2 + $0x248] sm:$0xff]  ;;  %v7408_v53 = vcombine.low %v240_v40, %v256_v41  ;;  %v7477_v34 = vcombine.high %v306_v26, %v322_v28 }
  0xd7   :  { %v7375_v54 = vcombine.high %v207_v43, %v223_v44  ;;  %v7376_v61 = vcombine.low %v208_v47, %v224_v48 }
  0xd9   :  { %2094 = vmatpush1.bf16.msra.mxu0 %v7402_v49  ;;  %2135 = vmatpush1.bf16.msra.mxu1 %v7404_v50  ;;  %v7409_v49 = vcombine.high %v240_v40, %v256_v41 }
  0xda   :  { %2095 = vmatprep.subr.bf16.mxu0 %v7371_v51  ;;  %2136 = vmatprep.subr.bf16.mxu1 %v7373_v55  ;;  %v175_v51 = vld [vmem:[#allocation2 + $0x140] sm:$0xff]  ;;  %v176_v55 = vld [vmem:[#allocation2 + $0x148] sm:$0xff] }
  0xdb   :  { %v7343_v62 = vcombine.high %v175_v51, %v191_v52  ;;  %v7344_v6 = vcombine.low %v176_v55, %v192_v56 }
  0xdd   :  { %2096 = vmatpush1.bf16.msra.mxu0 %v7370_v57  ;;  %2137 = vmatpush1.bf16.msra.mxu1 %v7372_v58  ;;  %v7377_v57 = vcombine.high %v208_v47, %v224_v48  ;;  %v7374_v58 = vcombine.low %v207_v43, %v223_v44  ;;  %v258_v43 = vld [vmem:[#allocation2 + $0x3d8] sm:$0xff] }
  0xde   :  { %2097 = vmatprep.subr.bf16.mxu0 %v7339_v59  ;;  %2138 = vmatprep.subr.bf16.mxu1 %v7341_v63  ;;  %v143_v59 = vld [vmem:[#allocation2 + $0x40] sm:$0xff]  ;;  %v144_v63 = vld [vmem:[#allocation2 + $0x48] sm:$0xff] }
  0xdf   :  { %v7311_v7 = vcombine.high %v143_v59, %v159_v60  ;;  %v7312_v15 = vcombine.low %v144_v63, %v160_v1 }
  0xe1   :  { %2098 = vmatpush1.bf16.msra.mxu0 %v7338_v2  ;;  %2139 = vmatpush1.bf16.msra.mxu1 %v7340_v3  ;;  %v7345_v2 = vcombine.high %v176_v55, %v192_v56  ;;  %v7342_v3 = vcombine.low %v175_v51, %v191_v52 }
  0xe2   :  { %2099 = vmatprep.subr.bf16.mxu0 %v7307_v4  ;;  %2140 = vmatprep.subr.bf16.mxu1 %v7309_v8  ;;  %v369_v4 = vld [vmem:[#allocation2 + $0x750] sm:$0xff]  ;;  %v370_v8 = vld [vmem:[#allocation2 + $0x758] sm:$0xff] }
  0xe3   :  { %v7539_v16 = vcombine.high %v369_v4, %v385_v5  ;;  %v7538_v20 = vcombine.low %v369_v4, %v385_v5 }
  0xe5   :  { %2100 = vmatpush1.bf16.msra.mxu0 %v7306_v10  ;;  %2141 = vmatpush1.bf16.msra.mxu1 %v7308_v11  ;;  %v7313_v10 = vcombine.high %v144_v63, %v160_v1  ;;  %v7310_v11 = vcombine.low %v143_v59, %v159_v60 }
  0xe6   :  { %2167 = vmatprep.subr.bf16.mxu0 %v7535_v13  ;;  %2208 = vmatprep.subr.bf16.mxu1 %v7537_v17  ;;  %v337_v13 = vld [vmem:[#allocation2 + $0x650] sm:$0xff]  ;;  %v338_v17 = vld [vmem:[#allocation2 + $0x658] sm:$0xff] }
  0xe7   :  { %v7509_v25 = vcombine.high %v338_v17, %v354_v18  ;;  %v7506_v29 = vcombine.low %v337_v13, %v353_v14 }
  0xe8   :  { %2118 = vmatmul.mubr.bf16.vlgmr.msra.gmra.mxu0 %v9480_v12  ;;  %2159 = vmatmul.mubr.bf16.vlgmr.msra.gmra.mxu1 %v9480_v12  ;;  %v255_v12 = vld [vmem:[#allocation2 + $0x3c0] sm:$0xff] }
  0xe9   :  { %2168 = vmatpush1.bf16.msra.mxu0 %v7534_v19  ;;  %2209 = vmatpush1.bf16.msra.mxu1 %v7536_v22  ;;  %v7407_v46 = vcombine.high %v239_v36, %v255_v12  ;;  %v7406_v50 = vcombine.low %v239_v36, %v255_v12  ;;  %v7541_v19 = vcombine.high %v370_v8, %v386_v9  ;;  %v321_v22 = vld [vmem:[#allocation2 + $0x5d0] sm:$0xff]  ;;  %v290_v36 = vld [vmem:[#allocation2 + $0x4d8] sm:$0xff] }
  0xea   :  { %2169 = vmatprep.subr.bf16.mxu0 %v7503_v23  ;;  %2210 = vmatprep.subr.bf16.mxu1 %v7505_v24  ;;  %v7540_v23 = vcombine.low %v370_v8, %v386_v9  ;;  %v7507_v24 = vcombine.high %v337_v13, %v353_v14  ;;  %v7475_v33 = vcombine.high %v305_v21, %v321_v22 }
  0xeb   :  { %2199 = vmatprep.mubr.bf16.mxu0 %v9392_v0  ;;  %2240 = vmatprep.mubr.bf16.mxu1 %v9392_v0  ;;  %v7474_v12 = vcombine.low %v305_v21, %v321_v22 }
  0xed   :  { %2170 = vmatpush1.bf16.msra.mxu0 %v7502_v27  ;;  %2211 = vmatpush1.bf16.msra.mxu1 %v7504_v30  ;;  %v9501_v27 = vld [vmem:[%s9932_s0] sm:$0xf]  ;;  %v273_v30 = vld [vmem:[#allocation2 + $0x450] sm:$0xff] }
  0xee   :  { %2171 = vmatprep.subr.bf16.mxu0 %v7471_v31  ;;  %2212 = vmatprep.subr.bf16.mxu1 %v7473_v32  ;;  %v289_v31 = vld [vmem:[#allocation2 + $0x4d0] sm:$0xff]  ;;  %v7508_v32 = vcombine.low %v338_v17, %v354_v18 }
  0xef   :  { %v7443_v40 = vcombine.high %v273_v30, %v289_v31  ;;  %v7442_v44 = vcombine.low %v273_v30, %v289_v31 }
  0xf1   :  { %2172 = vmatpush1.bf16.msra.mxu0 %v7470_v35  ;;  %2213 = vmatpush1.bf16.msra.mxu1 %v7472_v37  ;;  %v274_v35 = vld [vmem:[#allocation2 + $0x458] sm:$0xff]  ;;  %v241_v37 = vld [vmem:[#allocation2 + $0x350] sm:$0xff] }
  0xf2   :  { %2173 = vmatprep.subr.bf16.mxu0 %v7439_v38  ;;  %2214 = vmatprep.subr.bf16.mxu1 %v7441_v39  ;;  %v257_v38 = vld [vmem:[#allocation2 + $0x3d0] sm:$0xff]  ;;  %v7476_v39 = vcombine.low %v306_v26, %v322_v28  ;;  %v7445_v41 = vcombine.high %v274_v35, %v290_v36  ;;  %v7444_v47 = vcombine.low %v274_v35, %v290_v36  ;;  %v308_v28 = vld [vmem:[#allocation2 + $0x568] sm:$0xff] }
  0xf3   :  { %v7411_v48 = vcombine.high %v241_v37, %v257_v38  ;;  %v7410_v52 = vcombine.low %v241_v37, %v257_v38  ;;  %v276_v36 = vld [vmem:[#allocation2 + $0x468] sm:$0xff] }
  0xf5   :  { %2174 = vmatpush1.bf16.msra.mxu0 %v7438_v42  ;;  %2215 = vmatpush1.bf16.msra.mxu1 %v7440_v45  ;;  %v242_v42 = vld [vmem:[#allocation2 + $0x358] sm:$0xff]  ;;  %v209_v45 = vld [vmem:[#allocation2 + $0x250] sm:$0xff] }
  0xf6   :  { %2175 = vmatprep.subr.bf16.mxu0 %v7407_v46  ;;  %2216 = vmatprep.subr.bf16.mxu1 %v7409_v49  ;;  %v225_v46 = vld [vmem:[#allocation2 + $0x2d0] sm:$0xff]  ;;  %v210_v49 = vld [vmem:[#allocation2 + $0x258] sm:$0xff]  ;;  %v7413_v51 = vcombine.high %v242_v42, %v258_v43  ;;  %v7412_v55 = vcombine.low %v242_v42, %v258_v43  ;;  %v244_v43 = vld [vmem:[#allocation2 + $0x368] sm:$0xff] }
  0xf7   :  { %v7379_v56 = vcombine.high %v209_v45, %v225_v46  ;;  %v7378_v60 = vcombine.low %v209_v45, %v225_v46 }
  0xf9   :  { %2176 = vmatpush1.bf16.msra.mxu0 %v7406_v50  ;;  %2217 = vmatpush1.bf16.msra.mxu1 %v7408_v53  ;;  %v226_v50 = vld [vmem:[#allocation2 + $0x2d8] sm:$0xff]  ;;  %v177_v53 = vld [vmem:[#allocation2 + $0x150] sm:$0xff] }
  0xfa   :  { %2177 = vmatprep.subr.bf16.mxu0 %v7375_v54  ;;  %2218 = vmatprep.subr.bf16.mxu1 %v7377_v57  ;;  %v193_v54 = vld [vmem:[#allocation2 + $0x1d0] sm:$0xff]  ;;  %v178_v57 = vld [vmem:[#allocation2 + $0x158] sm:$0xff]  ;;  %v7381_v59 = vcombine.high %v210_v49, %v226_v50  ;;  %v7380_v63 = vcombine.low %v210_v49, %v226_v50 }
  0xfb   :  { %v7347_v1 = vcombine.high %v177_v53, %v193_v54  ;;  %v7346_v5 = vcombine.low %v177_v53, %v193_v54 }
  0xfd   :  { %2178 = vmatpush1.bf16.msra.mxu0 %v7374_v58  ;;  %2219 = vmatpush1.bf16.msra.mxu1 %v7376_v61  ;;  %v194_v58 = vld [vmem:[#allocation2 + $0x1d8] sm:$0xff]  ;;  %v145_v61 = vld [vmem:[#allocation2 + $0x50] sm:$0xff] }
  0xfe   :  { %2179 = vmatprep.subr.bf16.mxu0 %v7343_v62  ;;  %2220 = vmatprep.subr.bf16.mxu1 %v7345_v2  ;;  %v161_v62 = vld [vmem:[#allocation2 + $0xd0] sm:$0xff]  ;;  %v146_v2 = vld [vmem:[#allocation2 + $0x58] sm:$0xff]  ;;  %v7349_v4 = vcombine.high %v178_v57, %v194_v58  ;;  %v7348_v8 = vcombine.low %v178_v57, %v194_v58 }
  0xff   :  { %v7315_v9 = vcombine.high %v145_v61, %v161_v62  ;;  %v7314_v14 = vcombine.low %v145_v61, %v161_v62 }
 0x101   :  { %2180 = vmatpush1.bf16.msra.mxu0 %v7342_v3  ;;  %2221 = vmatpush1.bf16.msra.mxu1 %v7344_v6  ;;  %v162_v3 = vld [vmem:[#allocation2 + $0xd8] sm:$0xff]  ;;  %v371_v6 = vld [vmem:[#allocation2 + $0x760] sm:$0xff] }
 0x102   :  { %2181 = vmatprep.subr.bf16.mxu0 %v7311_v7  ;;  %2222 = vmatprep.subr.bf16.mxu1 %v7313_v10  ;;  %v387_v7 = vld [vmem:[#allocation2 + $0x7e0] sm:$0xff]  ;;  %v372_v10 = vld [vmem:[#allocation2 + $0x768] sm:$0xff]  ;;  %v7317_v13 = vcombine.high %v146_v2, %v162_v3  ;;  %v7316_v17 = vcombine.low %v146_v2, %v162_v3 }
 0x103   :  { %v7543_v18 = vcombine.high %v371_v6, %v387_v7  ;;  %v7542_v22 = vcombine.low %v371_v6, %v387_v7  ;;  %v399_v6 = vlaneseq }
 0x105   :  { %2182 = vmatpush1.bf16.msra.mxu0 %v7310_v11  ;;  %2223 = vmatpush1.bf16.msra.mxu1 %v7312_v15  ;;  %v388_v11 = vld [vmem:[#allocation2 + $0x7e8] sm:$0xff]  ;;  %v339_v15 = vld [vmem:[#allocation2 + $0x660] sm:$0xff] }
 0x106   :  { %2249 = vmatprep.subr.bf16.mxu0 %v7539_v16  ;;  %2290 = vmatprep.subr.bf16.mxu1 %v7541_v19  ;;  %v355_v16 = vld [vmem:[#allocation2 + $0x6e0] sm:$0xff]  ;;  %v340_v19 = vld [vmem:[#allocation2 + $0x668] sm:$0xff]  ;;  %v7545_v21 = vcombine.high %v372_v10, %v388_v11 }
 0x107   :  { %v7511_v26 = vcombine.high %v339_v15, %v355_v16  ;;  %v7510_v31 = vcombine.low %v339_v15, %v355_v16  ;;  %v374_v15 = vld [vmem:[#allocation2 + $0x778] sm:$0xff] }
 0x108   :  { %2200 = vmatmul.mubr.bf16.vlgmr.msra.gmra.mxu0 %v9501_v27  ;;  %2241 = vmatmul.mubr.bf16.vlgmr.msra.gmra.mxu1 %v9501_v27  ;;  %v390_v16 = vld [vmem:[#allocation2 + $0x7f8] sm:$0xff] }
 0x109   :  { %2250 = vmatpush1.bf16.msra.mxu0 %v7538_v20  ;;  %2291 = vmatpush1.bf16.msra.mxu1 %v7540_v23  ;;  %v356_v20 = vld [vmem:[#allocation2 + $0x6e8] sm:$0xff]  ;;  %v307_v23 = vld [vmem:[#allocation2 + $0x560] sm:$0xff] }
 0x10a   :  { %2251 = vmatprep.subr.bf16.mxu0 %v7507_v24  ;;  %2292 = vmatprep.subr.bf16.mxu1 %v7509_v25  ;;  %v323_v24 = vld [vmem:[#allocation2 + $0x5e0] sm:$0xff]  ;;  %v7544_v25 = vcombine.low %v372_v10, %v388_v11  ;;  %v7513_v30 = vcombine.high %v340_v19, %v356_v20  ;;  %v389_v10 = vld [vmem:[#allocation2 + $0x7f0] sm:$0xff] }
 0x10b   :  { %2281 = vmatprep.mubr.bf16.mxu0 %v9392_v0  ;;  %2322 = vmatprep.mubr.bf16.mxu1 %v9392_v0  ;;  %v7479_v35 = vcombine.high %v307_v23, %v323_v24  ;;  %v7478_v38 = vcombine.low %v307_v23, %v323_v24 }
 0x10d   :  { %2252 = vmatpush1.bf16.msra.mxu0 %v7506_v29  ;;  %2293 = vmatpush1.bf16.msra.mxu1 %v7508_v32  ;;  %v324_v29 = vld [vmem:[#allocation2 + $0x5e8] sm:$0xff]  ;;  %v275_v32 = vld [vmem:[#allocation2 + $0x460] sm:$0xff] }
 0x10e   :  { %2253 = vmatprep.subr.bf16.mxu0 %v7475_v33  ;;  %2294 = vmatprep.subr.bf16.mxu1 %v7477_v34  ;;  %v291_v33 = vld [vmem:[#allocation2 + $0x4e0] sm:$0xff]  ;;  %v7512_v34 = vcombine.low %v340_v19, %v356_v20  ;;  %v7481_v37 = vcombine.high %v308_v28, %v324_v29  ;;  %v341_v20 = vld [vmem:[#allocation2 + $0x670] sm:$0xff] }
 0x10f   :  { %v7447_v42 = vcombine.high %v275_v32, %v291_v33  ;;  %v7446_v46 = vcombine.low %v275_v32, %v291_v33  ;;  %v9514_v19 = vld [vmem:[#allocation4] sm:$0xff]  ;;  %v325_v32 = vld [vmem:[#allocation2 + $0x5f0] sm:$0xff] }
 0x111   :  { %2254 = vmatpush1.bf16.msra.mxu0 %v7474_v12  ;;  %2295 = vmatpush1.bf16.msra.mxu1 %v7476_v39  ;;  %v292_v12 = vld [vmem:[#allocation2 + $0x4e8] sm:$0xff]  ;;  %v243_v39 = vld [vmem:[#allocation2 + $0x360] sm:$0xff] }
 0x112   :  { %2255 = vmatprep.subr.bf16.mxu0 %v7443_v40  ;;  %2296 = vmatprep.subr.bf16.mxu1 %v7445_v41  ;;  %v259_v40 = vld [vmem:[#allocation2 + $0x3e0] sm:$0xff]  ;;  %v7480_v41 = vcombine.low %v308_v28, %v324_v29  ;;  %v7449_v45 = vcombine.high %v276_v36, %v292_v12  ;;  %v7448_v49 = vcombine.low %v276_v36, %v292_v12  ;;  %v310_v36 = vld [vmem:[#allocation2 + $0x578] sm:$0xff] }
 0x113   :  { %v7415_v50 = vcombine.high %v243_v39, %v259_v40  ;;  %v7414_v54 = vcombine.low %v243_v39, %v259_v40  ;;  %v7549_v28 = vcombine.high %v374_v15, %v390_v16  ;;  %v326_v12 = vld [vmem:[#allocation2 + $0x5f8] sm:$0xff] }
 0x115   :  { %2256 = vmatpush1.bf16.msra.mxu0 %v7442_v44  ;;  %2297 = vmatpush1.bf16.msra.mxu1 %v7444_v47  ;;  %v260_v44 = vld [vmem:[#allocation2 + $0x3e8] sm:$0xff]  ;;  %v211_v47 = vld [vmem:[#allocation2 + $0x260] sm:$0xff] }
 0x116   :  { %2257 = vmatprep.subr.bf16.mxu0 %v7411_v48  ;;  %2298 = vmatprep.subr.bf16.mxu1 %v7413_v51  ;;  %v227_v48 = vld [vmem:[#allocation2 + $0x2e0] sm:$0xff]  ;;  %v212_v51 = vld [vmem:[#allocation2 + $0x268] sm:$0xff]  ;;  %v7417_v53 = vcombine.high %v244_v43, %v260_v44  ;;  %v7416_v57 = vcombine.low %v244_v43, %v260_v44  ;;  %v293_v43 = vld [vmem:[#allocation2 + $0x4f0] sm:$0xff] }
 0x117   :  { %v7383_v58 = vcombine.high %v211_v47, %v227_v48  ;;  %v7382_v62 = vcombine.low %v211_v47, %v227_v48  ;;  %v278_v48 = vld [vmem:[#allocation2 + $0x478] sm:$0xff] }
 0x119   :  { %2258 = vmatpush1.bf16.msra.mxu0 %v7410_v52  ;;  %2299 = vmatpush1.bf16.msra.mxu1 %v7412_v55  ;;  %v228_v52 = vld [vmem:[#allocation2 + $0x2e8] sm:$0xff]  ;;  %v179_v55 = vld [vmem:[#allocation2 + $0x160] sm:$0xff] }
 0x11a   :  { %2259 = vmatprep.subr.bf16.mxu0 %v7379_v56  ;;  %2300 = vmatprep.subr.bf16.mxu1 %v7381_v59  ;;  %v195_v56 = vld [vmem:[#allocation2 + $0x1e0] sm:$0xff]  ;;  %v180_v59 = vld [vmem:[#allocation2 + $0x168] sm:$0xff]  ;;  %v7385_v61 = vcombine.high %v212_v51, %v228_v52  ;;  %v7384_v2 = vcombine.low %v212_v51, %v228_v52  ;;  %v7485_v51 = vcombine.high %v310_v36, %v326_v12 }
 0x11b   :  { %v7351_v3 = vcombine.high %v179_v55, %v195_v56 }
 0x11d   :  { %2260 = vmatpush1.bf16.msra.mxu0 %v7378_v60  ;;  %2301 = vmatpush1.bf16.msra.mxu1 %v7380_v63  ;;  %v196_v60 = vld [vmem:[#allocation2 + $0x1e8] sm:$0xff]  ;;  %v147_v63 = vld [vmem:[#allocation2 + $0x60] sm:$0xff] }
 0x11e   :  { %2261 = vmatprep.subr.bf16.mxu0 %v7347_v1  ;;  %2302 = vmatprep.subr.bf16.mxu1 %v7349_v4  ;;  %v163_v1 = vld [vmem:[#allocation2 + $0xe0] sm:$0xff]  ;;  %v148_v4 = vld [vmem:[#allocation2 + $0x68] sm:$0xff]  ;;  %v7353_v7 = vcombine.high %v180_v59, %v196_v60  ;;  %v7352_v11 = vcombine.low %v180_v59, %v196_v60  ;;  %v246_v60 = vld [vmem:[#allocation2 + $0x378] sm:$0xff] }
 0x121   :  { %2262 = vmatpush1.bf16.msra.mxu0 %v7346_v5  ;;  %2303 = vmatpush1.bf16.msra.mxu1 %v7348_v8  ;;  %v164_v5 = vld [vmem:[#allocation2 + $0xe8] sm:$0xff]  ;;  %v7350_v8 = vcombine.low %v179_v55, %v195_v56  ;;  %v245_v55 = vld [vmem:[#allocation2 + $0x370] sm:$0xff] }
 0x122   :  { %2263 = vmatprep.subr.bf16.mxu0 %v7315_v9  ;;  %2304 = vmatprep.subr.bf16.mxu1 %v7317_v13  ;;  %v373_v9 = vld [vmem:[#allocation2 + $0x770] sm:$0xff]  ;;  %v7319_v13 = vcombine.high %v147_v63, %v163_v1 }
 0x123   :  { %v7547_v24 = vcombine.high %v373_v9, %v389_v10  ;;  %v261_v56 = vld [vmem:[#allocation2 + $0x3f0] sm:$0xff] }
 0x125   :  { %2264 = vmatpush1.bf16.msra.mxu0 %v7314_v14  ;;  %2305 = vmatpush1.bf16.msra.mxu1 %v7316_v17  ;;  %v9512_v14 = vshrl.u32 %v399_v6, 7  ;;  %v7321_v17 = vcombine.high %v148_v4, %v164_v5 }
 0x126   :  { %2331 = vmatprep.subr.bf16.mxu0 %v7543_v18  ;;  %2372 = vmatprep.subr.bf16.mxu1 %v7545_v21  ;;  %v7318_v18 = vcombine.low %v147_v63, %v163_v1  ;;  %v357_v21 = vld [vmem:[#allocation2 + $0x6f0] sm:$0xff] }
 0x127   :  { %v9517_v23 = vsub.s32 2, %v9512_v14  ;;  %v9520_v29 = vsub.s32 3, %v9512_v14 }
 0x128   :  { %2282 = vmatmul.mubr.bf16.vlgmr.msra.gmra.mxu0 %v9501_v27  ;;  %2323 = vmatmul.mubr.bf16.vlgmr.msra.gmra.mxu1 %v9501_v27 }
 0x129   :  { %2332 = vmatpush1.bf16.msra.mxu0 %v7542_v22  ;;  %2373 = vmatpush1.bf16.msra.mxu1 %v7544_v25  ;;  %v7320_v22 = vcombine.low %v148_v4, %v164_v5  ;;  %v342_v25 = vld [vmem:[#allocation2 + $0x678] sm:$0xff]  ;;  %v410_v33 = vrot.slane %v9514_v19, %v9517_v23  ;;  %v414_v39 = vrot.slane %v9514_v19, %v9520_v29 }
 0x12a   :  { %2333 = vmatprep.subr.bf16.mxu0 %v7511_v26  ;;  %2374 = vmatprep.subr.bf16.mxu1 %v7513_v30  ;;  %v358_v26 = vld [vmem:[#allocation2 + $0x6f8] sm:$0xff]  ;;  %v7546_v30 = vcombine.low %v373_v9, %v389_v10  ;;  %v7419_v4 = vcombine.high %v245_v55, %v261_v56  ;;  %v7418_v9 = vcombine.low %v245_v55, %v261_v56  ;;  %v181_v10 = vld [vmem:[#allocation2 + $0x170] sm:$0xff] }
 0x12b   :  { %2363 = vmatprep.mubr.bf16.mxu0 %v9392_v0  ;;  %2404 = vmatprep.mubr.bf16.mxu1 %v9392_v0  ;;  %v214_v5 = vld [vmem:[#allocation2 + $0x278] sm:$0xff]  ;;  %v8303_v56 = vld [vmem:[#allocation6 + $0xa4] ss:$16 sps:$4 sm:$0xff]  }
 0x12d   :  { %2334 = vmatpush1.bf16.msra.mxu0 %v7510_v31  ;;  %2375 = vmatpush1.bf16.msra.mxu1 %v7512_v34  ;;  %v309_v31 = vld [vmem:[#allocation2 + $0x570] sm:$0xff]  ;;  %v7548_v34 = vcombine.low %v374_v15, %v390_v16  ;;  %v182_v16 = vld [vmem:[#allocation2 + $0x178] sm:$0xff] }
 0x12e   :  { %2335 = vmatprep.subr.bf16.mxu0 %v7479_v35  ;;  %2376 = vmatprep.subr.bf16.mxu1 %v7481_v37  ;;  %v7515_v35 = vcombine.high %v341_v20, %v357_v21  ;;  %v7517_v37 = vcombine.high %v342_v25, %v358_v26  ;;  %v7483_v47 = vcombine.high %v309_v31, %v325_v32 }
 0x131   :  { %2336 = vmatpush1.bf16.msra.mxu0 %v7478_v38  ;;  %2377 = vmatpush1.bf16.msra.mxu1 %v7480_v41  ;;  %v7514_v41 = vcombine.low %v341_v20, %v357_v21  ;;  %v149_v21 = vld [vmem:[#allocation2 + $0x70] sm:$0xff] }
 0x132   :  { %2337 = vmatprep.subr.bf16.mxu0 %v7447_v42  ;;  %2378 = vmatprep.subr.bf16.mxu1 %v7449_v45  ;;  %v277_v42 = vld [vmem:[#allocation2 + $0x470] sm:$0xff] }
 0x133   :  { %v7451_v59 = vcombine.high %v277_v42, %v293_v43  ;;  %v7450_v1 = vcombine.low %v277_v42, %v293_v43  ;;  %v8295_v42 = vld [vmem:[#allocation6 + $0xe0] ss:$16 sps:$4 sm:$0xff]   ;;  %v9550_v43 = vsub.s32 5, %v9512_v14 }
 0x135   :  { %2338 = vmatpush1.bf16.msra.mxu0 %v7446_v46  ;;  %2379 = vmatpush1.bf16.msra.mxu1 %v7448_v49  ;;  %v7516_v46 = vcombine.low %v342_v25, %v358_v26  ;;  %v294_v49 = vld [vmem:[#allocation2 + $0x4f8] sm:$0xff] }
 0x136   :  { %2339 = vmatprep.subr.bf16.mxu0 %v7415_v50  ;;  %2380 = vmatprep.subr.bf16.mxu1 %v7417_v53  ;;  %v7453_v63 = vcombine.high %v278_v48, %v294_v49  ;;  %v150_v26 = vld [vmem:[#allocation2 + $0x78] sm:$0xff] }
 0x139   :  { %2340 = vmatpush1.bf16.msra.mxu0 %v7414_v54  ;;  %2381 = vmatpush1.bf16.msra.mxu1 %v7416_v57  ;;  %v7482_v54 = vcombine.low %v309_v31, %v325_v32  ;;  %v9539_v31 = vsub.s32 1, %v9512_v14 }
 0x13a   :  { %2341 = vmatprep.subr.bf16.mxu0 %v7383_v58  ;;  %2382 = vmatprep.subr.bf16.mxu1 %v7385_v61  ;;  %v7484_v58 = vcombine.low %v310_v36, %v326_v12  ;;  %v262_v61 = vld [vmem:[#allocation2 + $0x3f8] sm:$0xff]  ;;  %v8297_v12 = vld [vmem:[#allocation6 + $0xe4] ss:$16 sps:$4 sm:$0xff]  }
 0x13b   :  { %v406_v36 = vrot.slane %v9514_v19, %v9539_v31 }
 0x13d   :  { %2342 = vmatpush1.bf16.msra.mxu0 %v7382_v62  ;;  %2383 = vmatpush1.bf16.msra.mxu1 %v7384_v2  ;;  %v213_v2 = vld [vmem:[#allocation2 + $0x270] sm:$0xff] }
 0x13e   :  { %2343 = vmatprep.subr.bf16.mxu0 %v7351_v3  ;;  %2384 = vmatprep.subr.bf16.mxu1 %v7353_v7  ;;  %v229_v3 = vld [vmem:[#allocation2 + $0x2f0] sm:$0xff]  ;;  %v230_v7 = vld [vmem:[#allocation2 + $0x2f8] sm:$0xff] }
 0x13f   :  { %v7387_v15 = vcombine.high %v213_v2, %v229_v3  ;;  %v7386_v20 = vcombine.low %v213_v2, %v229_v3 }
 0x141   :  { %2344 = vmatpush1.bf16.msra.mxu0 %v7350_v8  ;;  %2385 = vmatpush1.bf16.msra.mxu1 %v7352_v11  ;;  %v7421_v8 = vcombine.high %v246_v60, %v262_v61  ;;  %v197_v11 = vld [vmem:[#allocation2 + $0x1f0] sm:$0xff] }
 0x142   :  { %2345 = vmatprep.subr.bf16.mxu0 %v7319_v13  ;;  %2386 = vmatprep.subr.bf16.mxu1 %v7321_v17  ;;  %v7420_v13 = vcombine.low %v246_v60, %v262_v61  ;;  %v198_v17 = vld [vmem:[#allocation2 + $0x1f8] sm:$0xff]  ;;  %v7355_v25 = vcombine.high %v181_v10, %v197_v11  ;;  %v7354_v32 = vcombine.low %v181_v10, %v197_v11  ;;  %v8304_v11 = vld [vmem:[#allocation6 + $0x80] ss:$16 sps:$4 sm:$0xff]  }
 0x145   :  { %2346 = vmatpush1.bf16.msra.mxu0 %v7318_v18  ;;  %2387 = vmatpush1.bf16.msra.mxu1 %v7320_v22  ;;  %v7389_v18 = vcombine.high %v214_v5, %v230_v7  ;;  %v165_v22 = vld [vmem:[#allocation2 + $0xf0] sm:$0xff] }
 0x146   :  { %2413 = vmatprep.subr.bf16.mxu0 %v7547_v24  ;;  %2454 = vmatprep.subr.bf16.mxu1 %v7549_v28  ;;  %v7388_v24 = vcombine.low %v214_v5, %v230_v7  ;;  %v166_v28 = vld [vmem:[#allocation2 + $0xf8] sm:$0xff] }
 0x148   :  { %2364 = vmatmul.mubr.bf16.vlgmr.msra.gmra.mxu0 %v9501_v27  ;;  %v9525_v38 = vpop.f32.mrf.mxu0  ;;  %v1914_v40 = vpop.f32.mrf.mxu1  ;;  %2405 = vmatmul.mubr.bf16.vlgmr.msra.gmra.mxu1 %v9501_v27 }
 0x149   :  { %2414 = vmatpush1.bf16.msra.mxu0 %v7546_v30  ;;  %v9530_v44 = vadd.f32 %v1914_v40, %v410_v33  ;;  %2455 = vmatpush1.bf16.msra.mxu1 %v7548_v34  ;;  %v7357_v30 = vcombine.high %v182_v16, %v198_v17  ;;  %v7356_v33 = vcombine.low %v182_v16, %v198_v17  ;;  %v8351_v16 = vld [vmem:[#allocation6 + $0x2a4] ss:$16 sps:$4 sm:$0xff]  }
 0x14a   :  { %v9532_v45 = vpop.f32.mrf.mxu0  ;;  %2415 = vmatprep.subr.bf16.mxu0 %v7515_v35  ;;  %v1916_v50 = vpop.f32.mrf.mxu1  ;;  %2456 = vmatprep.subr.bf16.mxu1 %v7517_v37  ;;  %v7323_v34 = vcombine.high %v149_v21, %v165_v22  ;;  %v7325_v35 = vcombine.high %v150_v26, %v166_v28  ;;  %v7322_v37 = vcombine.low %v149_v21, %v165_v22  ;;  %v8354_v17 = vld [vmem:[#allocation6 + $0x284] ss:$16 sps:$4 sm:$0xff]   ;;  %v8352_v21 = vld [vmem:[#allocation6 + $0x280] ss:$16 sps:$4 sm:$0xff]  }
 0x14b   :  { %2445 = vmatprep.mubr.bf16.mxu0 %v9392_v0  ;;  %v9535_v27 = vadd.f32 %v1916_v50, %v414_v39  ;;  %2486 = vmatprep.mubr.bf16.mxu1 %v9392_v0  ;;  %v7452_v0 = vcombine.low %v278_v48, %v294_v49  ;;  %v9544_v39 = vsub.s32 4, %v9512_v14  ;;  %v7324_v40 = vcombine.low %v150_v26, %v166_v28  ;;  %v8300_v48 = vld [vmem:[#allocation6 + $0xc4] ss:$16 sps:$4 sm:$0xff]   ;;  %v8355_v26 = vld [vmem:[#allocation6 + $0x260] ss:$16 sps:$4 sm:$0xff]  }
 0x14c   :  { %v1877_v52 = vpop.f32.mrf.mxu0  ;;  %v1918_v53 = vpop.f32.mrf.mxu1  ;;  %v8357_v22 = vld [vmem:[#allocation6 + $0x264] ss:$16 sps:$4 sm:$0xff]  }
 0x14d   :  { %2416 = vmatpush1.bf16.msra.mxu0 %v7514_v41  ;;  %2457 = vmatpush1.bf16.msra.mxu1 %v7516_v46  ;;  %v9547_v41 = vsub.s32 6, %v9512_v14  ;;  %v1876_v46 = vadd.f32 %v9532_v45, %v406_v36  ;;  %v418_v49 = vrot.slane %v9514_v19, %v9544_v39  ;;  %v8298_v52 = vld [vmem:[#allocation6 + $0xc0] ss:$16 sps:$4 sm:$0xff]   ;;  %v8360_v28 = vld [vmem:[#allocation6 + $0x244] ss:$16 sps:$4 sm:$0xff]  }
 0x14e   :  { %v1878_v57 = vpop.f32.mrf.mxu0  ;;  %2417 = vmatprep.subr.bf16.mxu0 %v7483_v47  ;;  %v1919_v62 = vpop.f32.mrf.mxu1  ;;  %2458 = vmatprep.subr.bf16.mxu1 %v7485_v51  ;;  %v9554_v47 = vsub.s32 7, %v9512_v14  ;;  %v422_v51 = vrot.slane %v9514_v19, %v9550_v43  ;;  %v9204_v45 = vld [vmem:[%s9932_s0] sm:$0xf]  ;;  %v8321_v36 = vld [vmem:[#allocation6 + $0x1e4] ss:$16 sps:$4 sm:$0xff]  }
 0x14f   :  { %v426_v50 = vrot.slane %v9514_v19, %v9547_v41  ;;  %v9562_v53 = vpack.c.bf16 %v1876_v46, %v1876_v46  ;;  %v8322_v46 = vld [vmem:[#allocation6 + $0x1c0] ss:$16 sps:$4 sm:$0xff]  }
 0x150   :  { %v430_v55 = vrot.slane %v9514_v19, %v9554_v47 }
 0x151   :  { %2418 = vmatpush1.bf16.msra.mxu0 %v7482_v54  ;;  %2459 = vmatpush1.bf16.msra.mxu1 %v7484_v58 }
 0x152   :  { %2419 = vmatprep.subr.bf16.mxu0 %v7451_v59  ;;  %2460 = vmatprep.subr.bf16.mxu1 %v7453_v63  ;;  %v8301_v63 = vld [vmem:[#allocation6 + $0xa0] ss:$16 sps:$4 sm:$0xff]  }
 0x155   :  { %2420 = vmatpush1.bf16.msra.mxu0 %v7450_v1  ;;  %2461 = vmatpush1.bf16.msra.mxu1 %v7452_v0  ;;  %v8345_v1 = vld [vmem:[#allocation6 + $0x2e4] ss:$16 sps:$4 sm:$0xff]  }
 0x156   :  { %2421 = vmatprep.subr.bf16.mxu0 %v7419_v4  ;;  %2462 = vmatprep.subr.bf16.mxu1 %v7421_v8  ;;  %v8306_v0 = vld [vmem:[#allocation6 + $0x84] ss:$16 sps:$4 sm:$0xff]   ;;  %v8343_v4 = vld [vmem:[#allocation6 + $0x2e0] ss:$16 sps:$4 sm:$0xff]  }
 0x157   :  { %v8346_v8 = vld [vmem:[#allocation6 + $0x2c0] ss:$16 sps:$4 sm:$0xff]  }
 0x159   :  { %2422 = vmatpush1.bf16.msra.mxu0 %v7418_v9  ;;  %2463 = vmatpush1.bf16.msra.mxu1 %v7420_v13  ;;  %v8348_v9 = vld [vmem:[#allocation6 + $0x2c4] ss:$16 sps:$4 sm:$0xff]  }
 0x15a   :  { %2423 = vmatprep.subr.bf16.mxu0 %v7387_v15  ;;  %2464 = vmatprep.subr.bf16.mxu1 %v7389_v18  ;;  %v8309_v13 = vld [vmem:[#allocation6 + $0x64] ss:$16 sps:$4 sm:$0xff]   ;;  %v8349_v15 = vld [vmem:[#allocation6 + $0x2a0] ss:$16 sps:$4 sm:$0xff]  }
 0x15b   :  { %v8307_v18 = vld [vmem:[#allocation6 + $0x60] ss:$16 sps:$4 sm:$0xff]  }
 0x15d   :  { %2424 = vmatpush1.bf16.msra.mxu0 %v7386_v20  ;;  %2465 = vmatpush1.bf16.msra.mxu1 %v7388_v24  ;;  %v8312_v20 = vld [vmem:[#allocation6 + $0x44] ss:$16 sps:$4 sm:$0xff]   ;;  %v8310_v24 = vld [vmem:[#allocation6 + $0x40] ss:$16 sps:$4 sm:$0xff]  }
 0x15e   :  { %2425 = vmatprep.subr.bf16.mxu0 %v7355_v25  ;;  %2466 = vmatprep.subr.bf16.mxu1 %v7357_v30  ;;  %v8315_v25 = vld [vmem:[#allocation6 + $0x24] ss:$16 sps:$4 sm:$0xff]   ;;  %v8313_v30 = vld [vmem:[#allocation6 + $0x20] ss:$16 sps:$4 sm:$0xff]  }
 0x161   :  { %2426 = vmatpush1.bf16.msra.mxu0 %v7354_v32  ;;  %2467 = vmatpush1.bf16.msra.mxu1 %v7356_v33  ;;  %v8318_v32 = vld [vmem:[#allocation6 + $0x4] ss:$16 sps:$4 sm:$0xff]   ;;  %v8358_v33 = vld [vmem:[#allocation6 + $0x240] ss:$16 sps:$4 sm:$0xff]  }
 0x162   :  { %2427 = vmatprep.subr.bf16.mxu0 %v7323_v34  ;;  %2468 = vmatprep.subr.bf16.mxu1 %v7325_v35  ;;  %v8363_v34 = vld [vmem:[#allocation6 + $0x224] ss:$16 sps:$4 sm:$0xff]   ;;  %v8316_v35 = vld [vmem:[#allocation6] ss:$16 sps:$4 sm:$0xff]  }
 0x165   :  { %2428 = vmatpush1.bf16.msra.mxu0 %v7322_v37  ;;  %2469 = vmatpush1.bf16.msra.mxu1 %v7324_v40  ;;  %v9578_v37 = vld [vmem:[#allocation4 + $0x8] sm:$0xff]  ;;  %v8319_v40 = vld [vmem:[#allocation6 + $0x1e0] ss:$16 sps:$4 sm:$0xff]  }
 0x166   :  { %6070 = vmatprep.subr.bf16.mxu0 %v8297_v12  ;;  %6111 = vmatprep.subr.bf16.mxu1 %v8345_v1  ;;  %v8361_v12 = vld [vmem:[#allocation6 + $0x220] ss:$16 sps:$4 sm:$0xff]  }
 0x168   :  { %2446 = vmatmul.mubr.bf16.vlgmr.msra.gmra.mxu0 %v9204_v45  ;;  %v1955_v54 = vpop.f32.mrf.mxu0  ;;  %v1996_v57 = vpop.f32.mrf.mxu1  ;;  %2487 = vmatmul.mubr.bf16.vlgmr.msra.gmra.mxu1 %v9204_v45 }
 0x169   :  { %v9569_v58 = vadd.f32 %v1955_v54, %v418_v49  ;;  %6071 = vmatpush1.bf16.msra.mxu0 %v8295_v42  ;;  %v9571_v59 = vadd.f32 %v1996_v57, %v426_v50  ;;  %6102 = vmatprep.mubr.bf16.mxu0 %v9562_v53  ;;  %v8324_v42 = vld [vmem:[#allocation6 + $0x1c4] ss:$16 sps:$4 sm:$0xff]   ;;  %v446_v50 = vrot.slane %v9578_v37, %v9520_v29 }
 0x16a   :  { %v1957_v60 = vpop.f32.mrf.mxu0  ;;  %6072 = vmatprep.subr.bf16.mxu0 %v8300_v48  ;;  %v1998_v61 = vpop.f32.mrf.mxu1  ;;  %6112 = vmatpush1.bf16.msra.mxu1 %v8343_v4  ;;  %v8366_v48 = vld [vmem:[#allocation6 + $0x204] ss:$16 sps:$4 sm:$0xff]   ;;  %v8376_v4 = vld [vmem:[#allocation6 + $0x3c0] ss:$16 sps:$4 sm:$0xff]  }
 0x16b   :  { %v9574_v62 = vadd.f32 %v1957_v60, %v422_v51  ;;  %v9576_v2 = vadd.f32 %v1998_v61, %v430_v55  ;;  %6113 = vmatprep.subr.bf16.mxu1 %v8348_v9  ;;  %v8364_v51 = vld [vmem:[#allocation6 + $0x200] ss:$16 sps:$4 sm:$0xff]   ;;  %v8327_v54 = vld [vmem:[#allocation6 + $0x1a4] ss:$16 sps:$4 sm:$0xff]  }
 0x16c   :  { %v1959_v3 = vpop.f32.mrf.mxu0  ;;  %v2000_v5 = vpop.f32.mrf.mxu1  ;;  %v8372_v57 = vld [vmem:[#allocation6 + $0x3e4] ss:$16 sps:$4 sm:$0xff]  }
 0x16d   :  { %6073 = vmatpush1.bf16.msra.mxu0 %v8298_v52  ;;  %v8333_v9 = vld [vmem:[#allocation6 + $0x164] ss:$16 sps:$4 sm:$0xff]  }
 0x16e   :  { %v1960_v7 = vpop.f32.mrf.mxu0  ;;  %6074 = vmatprep.subr.bf16.mxu0 %v8303_v56  ;;  %v2001_v10 = vpop.f32.mrf.mxu1  ;;  %6114 = vmatpush1.bf16.msra.mxu1 %v8346_v8  ;;  %v8325_v56 = vld [vmem:[#allocation6 + $0x1a0] ss:$16 sps:$4 sm:$0xff]   ;;  %v8378_v8 = vld [vmem:[#allocation6 + $0x3c4] ss:$16 sps:$4 sm:$0xff]  }
 0x16f   :  { %6115 = vmatprep.subr.bf16.mxu1 %v8351_v16  ;;  %v8328_v7 = vld [vmem:[#allocation6 + $0x180] ss:$16 sps:$4 sm:$0xff]   ;;  %v8336_v16 = vld [vmem:[#allocation6 + $0x144] ss:$16 sps:$4 sm:$0xff]  }
 0x170   :  { %v8382_v10 = vld [vmem:[#allocation6 + $0x3a0] ss:$16 sps:$4 sm:$0xff]  }
 0x171   :  { %6075 = vmatpush1.bf16.msra.mxu0 %v8301_v63  ;;  %v8370_v63 = vld [vmem:[#allocation6 + $0x3e0] ss:$16 sps:$4 sm:$0xff]  }
 0x172   :  { %6076 = vmatprep.subr.bf16.mxu0 %v8306_v0  ;;  %6116 = vmatpush1.bf16.msra.mxu1 %v8349_v15  ;;  %v8330_v0 = vld [vmem:[#allocation6 + $0x184] ss:$16 sps:$4 sm:$0xff]   ;;  %v8331_v15 = vld [vmem:[#allocation6 + $0x160] ss:$16 sps:$4 sm:$0xff]  }
 0x173   :  { %6117 = vmatprep.subr.bf16.mxu1 %v8354_v17  ;;  %v8388_v17 = vld [vmem:[#allocation6 + $0x380] ss:$16 sps:$4 sm:$0xff]  }
 0x175   :  { %6077 = vmatpush1.bf16.msra.mxu0 %v8304_v11  ;;  %v8384_v11 = vld [vmem:[#allocation6 + $0x3a4] ss:$16 sps:$4 sm:$0xff]  }
 0x176   :  { %6078 = vmatprep.subr.bf16.mxu0 %v8309_v13  ;;  %6118 = vmatpush1.bf16.msra.mxu1 %v8352_v21  ;;  %v8390_v13 = vld [vmem:[#allocation6 + $0x384] ss:$16 sps:$4 sm:$0xff]  }
 0x177   :  { %6119 = vmatprep.subr.bf16.mxu1 %v8357_v22  ;;  %v8339_v21 = vld [vmem:[#allocation6 + $0x124] ss:$16 sps:$4 sm:$0xff]   ;;  %v8394_v22 = vld [vmem:[#allocation6 + $0x360] ss:$16 sps:$4 sm:$0xff]  }
 0x179   :  { %6079 = vmatpush1.bf16.msra.mxu0 %v8307_v18  ;;  %v8334_v18 = vld [vmem:[#allocation6 + $0x140] ss:$16 sps:$4 sm:$0xff]  }
 0x17a   :  { %6080 = vmatprep.subr.bf16.mxu0 %v8312_v20  ;;  %6120 = vmatpush1.bf16.msra.mxu1 %v8355_v26  ;;  %v8396_v20 = vld [vmem:[#allocation6 + $0x364] ss:$16 sps:$4 sm:$0xff]   ;;  %v8337_v26 = vld [vmem:[#allocation6 + $0x120] ss:$16 sps:$4 sm:$0xff]  }
 0x17b   :  { %6121 = vmatprep.subr.bf16.mxu1 %v8360_v28  ;;  %v8342_v28 = vld [vmem:[#allocation6 + $0x104] ss:$16 sps:$4 sm:$0xff]  }
 0x17d   :  { %6081 = vmatpush1.bf16.msra.mxu0 %v8310_v24  ;;  %v9591_v24 = vsub.s32 0, %v9512_v14 }
 0x17e   :  { %6082 = vmatprep.subr.bf16.mxu0 %v8315_v25  ;;  %6122 = vmatpush1.bf16.msra.mxu1 %v8358_v33  ;;  %v8402_v25 = vld [vmem:[#allocation6 + $0x344] ss:$16 sps:$4 sm:$0xff]   ;;  %v8340_v33 = vld [vmem:[#allocation6 + $0x100] ss:$16 sps:$4 sm:$0xff]  }
 0x17f   :  { %6123 = vmatprep.subr.bf16.mxu1 %v8363_v34  ;;  %v8369_v34 = vld [vmem:[#allocation6 + $0x4e4] ss:$16 sps:$4 sm:$0xff]  }
 0x181   :  { %6083 = vmatpush1.bf16.msra.mxu0 %v8313_v30  ;;  %v8400_v30 = vld [vmem:[#allocation6 + $0x340] ss:$16 sps:$4 sm:$0xff]  }
 0x182   :  { %6084 = vmatprep.subr.bf16.mxu0 %v8318_v32  ;;  %6124 = vmatpush1.bf16.msra.mxu1 %v8361_v12  ;;  %v402_v32 = vrot.slane %v9514_v19, %v9591_v24  ;;  %v8406_v12 = vld [vmem:[#allocation6 + $0x320] ss:$16 sps:$4 sm:$0xff]   ;;  %v458_v19 = vrot.slane %v9578_v37, %v9547_v41 }
 0x183   :  { %6125 = vmatprep.subr.bf16.mxu1 %v8366_v48  ;;  %v8414_v48 = vld [vmem:[#allocation6 + $0x304] ss:$16 sps:$4 sm:$0xff]  }
 0x184   :  { %v1874_v14 = vadd.f32 %v9525_v38, %v402_v32  ;;  %v8373_v38 = vld [vmem:[#allocation6 + $0x4c0] ss:$16 sps:$4 sm:$0xff]  }
 0x185   :  { %6085 = vmatpush1.bf16.msra.mxu0 %v8316_v35  ;;  %v8408_v35 = vld [vmem:[#allocation6 + $0x324] ss:$16 sps:$4 sm:$0xff]  }
 0x186   :  { %6086 = vmatprep.subr.bf16.mxu0 %v8321_v36  ;;  %6126 = vmatpush1.bf16.msra.mxu1 %v8364_v51  ;;  %v8367_v36 = vld [vmem:[#allocation6 + $0x4e0] ss:$16 sps:$4 sm:$0xff]   ;;  %v462_v51 = vrot.slane %v9578_v37, %v9554_v47 }
 0x187   :  { %6127 = vmatprep.subr.bf16.mxu1 %v8372_v57  ;;  %v9623_v32 = vld [vmem:[#allocation4 + $0x10] sm:$0xff] }
 0x188   :  { %v9580_v49 = vpop.f32.mrf.mxu0  ;;  %v9584_v52 = vpop.f32.mrf.mxu1 }
 0x189   :  { %6087 = vmatpush2.bf16.msra.mxu0 %v8319_v40  ;;  %v450_v40 = vrot.slane %v9578_v37, %v9544_v39 }
 0x18a   :  { %v9586_v45 = vpop.f32.mrf.mxu0  ;;  %6088 = vmatprep.subr.bf16.mxu0 %v8324_v42  ;;  %v2080_v55 = vpop.f32.mrf.mxu1  ;;  %6128 = vmatpush2.bf16.msra.mxu1 %v8370_v63  ;;  %v9598_v42 = vpack.c.bf16 %v1874_v14, %v1874_v14  ;;  %v8381_v63 = vld [vmem:[#allocation6 + $0x4a4] ss:$16 sps:$4 sm:$0xff]   ;;  %v8415_v14 = vld [vmem:[#allocation6 + $0x5e0] ss:$16 sps:$4 sm:$0xff]  }
 0x18b   :  { %v9588_v60 = vadd.f32 %v2080_v55, %v446_v50  ;;  %6129 = vmatprep.subr.bf16.mxu1 %v8378_v8  ;;  %v8387_v8 = vld [vmem:[#allocation6 + $0x484] ss:$16 sps:$4 sm:$0xff]  }
 0x18c   :  { %v2041_v61 = vpop.f32.mrf.mxu0  ;;  %v2082_v1 = vpop.f32.mrf.mxu1 }
 0x18d   :  { %6089 = vmatpush2.bf16.msra.mxu0 %v8322_v46  ;;  %v8375_v46 = vld [vmem:[#allocation6 + $0x4c4] ss:$16 sps:$4 sm:$0xff]  }
 0x18e   :  { %v2042_v3 = vpop.f32.mrf.mxu0  ;;  %6090 = vmatprep.subr.bf16.mxu0 %v8327_v54  ;;  %v2083_v5 = vpop.f32.mrf.mxu1  ;;  %6130 = vmatpush2.bf16.msra.mxu1 %v8376_v4  ;;  %v8412_v54 = vld [vmem:[#allocation6 + $0x300] ss:$16 sps:$4 sm:$0xff]   ;;  %v454_v4 = vrot.slane %v9578_v37, %v9550_v43 }
 0x18f   :  { %6131 = vmatprep.subr.bf16.mxu1 %v8384_v11  ;;  %v8379_v3 = vld [vmem:[#allocation6 + $0x4a0] ss:$16 sps:$4 sm:$0xff]  }
 0x191   :  { %6091 = vmatpush2.bf16.msra.mxu0 %v8325_v56 }
 0x192   :  { %6092 = vmatprep.subr.bf16.mxu0 %v8330_v0  ;;  %6132 = vmatpush2.bf16.msra.mxu1 %v8382_v10  ;;  %v8420_v0 = vld [vmem:[#allocation6 + $0x6e4] ss:$16 sps:$4 sm:$0xff]  }
 0x193   :  { %6133 = vmatprep.subr.bf16.mxu1 %v8390_v13 }
 0x195   :  { %6093 = vmatpush2.bf16.msra.mxu0 %v8328_v7 }
 0x196   :  { %6094 = vmatprep.subr.bf16.mxu0 %v8333_v9  ;;  %6134 = vmatpush2.bf16.msra.mxu1 %v8388_v17 }
 0x197   :  { %6135 = vmatprep.subr.bf16.mxu1 %v8396_v20  ;;  %v8393_v20 = vld [vmem:[#allocation6 + $0x464] ss:$16 sps:$4 sm:$0xff]  }
 0x199   :  { %6095 = vmatpush2.bf16.msra.mxu0 %v8331_v15 }
 0x19a   :  { %6096 = vmatprep.subr.bf16.mxu0 %v8336_v16  ;;  %6136 = vmatpush2.bf16.msra.mxu1 %v8394_v22  ;;  %v8397_v22 = vld [vmem:[#allocation6 + $0x440] ss:$16 sps:$4 sm:$0xff]  }
 0x19b   :  { %6137 = vmatprep.subr.bf16.mxu1 %v8402_v25  ;;  %v8405_v25 = vld [vmem:[#allocation6 + $0x424] ss:$16 sps:$4 sm:$0xff]  }
 0x19d   :  { %6097 = vmatpush2.bf16.msra.mxu0 %v8334_v18  ;;  %v8385_v18 = vld [vmem:[#allocation6 + $0x480] ss:$16 sps:$4 sm:$0xff]  }
 0x19e   :  { %6098 = vmatprep.subr.bf16.mxu0 %v8339_v21  ;;  %6138 = vmatpush2.bf16.msra.mxu1 %v8400_v30  ;;  %v8409_v30 = vld [vmem:[#allocation6 + $0x400] ss:$16 sps:$4 sm:$0xff]  }
 0x19f   :  { %6139 = vmatprep.subr.bf16.mxu1 %v8408_v35  ;;  %v470_v35 = vrot.slane %v9623_v32, %v9539_v31 }
 0x1a1   :  { %6099 = vmatpush2.bf16.msra.mxu0 %v8337_v26  ;;  %v8403_v26 = vld [vmem:[#allocation6 + $0x420] ss:$16 sps:$4 sm:$0xff]  }
 0x1a2   :  { %6100 = vmatprep.subr.bf16.mxu0 %v8342_v28  ;;  %6140 = vmatpush2.bf16.msra.mxu1 %v8406_v12  ;;  %v8411_v28 = vld [vmem:[#allocation6 + $0x404] ss:$16 sps:$4 sm:$0xff]   ;;  %v478_v12 = vrot.slane %v9623_v32, %v9520_v29 }
 0x1a3   :  { %6141 = vmatprep.subr.bf16.mxu1 %v8414_v48  ;;  %v8421_v48 = vld [vmem:[#allocation6 + $0x5c0] ss:$16 sps:$4 sm:$0xff]  }
 0x1a5   :  { %6101 = vmatpush2.bf16.msra.mxu0 %v8340_v33  ;;  %v466_v33 = vrot.slane %v9623_v32, %v9591_v24 }
 0x1a6   :  { %6152 = vmatprep.subr.bf16.mxu0 %v8369_v34  ;;  %6142 = vmatpush2.bf16.msra.mxu1 %v8412_v54  ;;  %v8423_v34 = vld [vmem:[#allocation6 + $0x5c4] ss:$16 sps:$4 sm:$0xff]  }
 0x1a7   :  { %6193 = vmatprep.subr.bf16.mxu1 %v8420_v0 }
 0x1a8   :  { %v2119_v50 = vpop.f32.mrf.mxu0  ;;  %6103 = vmatmul.mubr.bf16.vlgmr.msra.gmra.mxu0 %v9598_v42  ;;  %v2160_v56 = vpop.f32.mrf.mxu1 }
 0x1a9   :  { %v9605_v55 = vadd.f32 %v2119_v50, %v450_v40  ;;  %6153 = vmatpush1.bf16.msra.mxu0 %v8367_v36  ;;  %v2161_v57 = vadd.f32 %v2160_v56, %v458_v19  ;;  %v434_v40 = vrot.slane %v9578_v37, %v9591_v24 }
 0x1aa   :  { %v2121_v61 = vpop.f32.mrf.mxu0  ;;  %6154 = vmatprep.subr.bf16.mxu0 %v8375_v46  ;;  %v2162_v1 = vpop.f32.mrf.mxu1  ;;  %v474_v46 = vrot.slane %v9623_v32, %v9517_v23 }
 0x1ab   :  { %v2163_v5 = vadd.f32 %v2162_v1, %v462_v51  ;;  %v9610_v11 = vmax.f32 %v9535_v27, %v2161_v57  ;;  %v2122_v16 = vadd.f32 %v2121_v61, %v454_v4  ;;  %v8391_v27 = vld [vmem:[#allocation6 + $0x460] ss:$16 sps:$4 sm:$0xff]   ;;  %v8429_v51 = vld [vmem:[#allocation6 + $0x5a4] ss:$16 sps:$4 sm:$0xff]  }
 0x1ac   :  { %v2123_v7 = vpop.f32.mrf.mxu0  ;;  %v2164_v9 = vpop.f32.mrf.mxu1 }
 0x1ad   :  { %6155 = vmatpush1.bf16.msra.mxu0 %v8373_v38  ;;  %v9613_v13 = vmax.f32 %v9569_v58, %v2163_v5  ;;  %v9619_v21 = vmax.f32 %v9530_v44, %v2122_v16  ;;  %v8399_v58 = vld [vmem:[#allocation6 + $0x444] ss:$16 sps:$4 sm:$0xff]   ;;  %v8427_v5 = vld [vmem:[#allocation6 + $0x5a0] ss:$16 sps:$4 sm:$0xff]  }
 0x1ae   :  { %v2124_v10 = vpop.f32.mrf.mxu0  ;;  %6156 = vmatprep.subr.bf16.mxu0 %v8381_v63  ;;  %v2165_v15 = vpop.f32.mrf.mxu1  ;;  %v8417_v44 = vld [vmem:[#allocation6 + $0x5e4] ss:$16 sps:$4 sm:$0xff]   ;;  %v2038_v63 = vadd.f32 %v9580_v49, %v434_v40 }
 0x1af   :  { %v8260_v17 = vpack.i.bf16 %v9613_v13, %v9610_v11 }
 0x1b1   :  { %6157 = vmatpush1.bf16.msra.mxu0 %v8379_v3  ;;  %8261 = vrot.lane.b32.xlu0 %v8260_v17, %s9388_s17  ;;  %v8439_v17 = vld [vmem:[#allocation6 + $0x560] ss:$16 sps:$4 sm:$0xff]  }
 0x1b2   :  { %6158 = vmatprep.subr.bf16.mxu0 %v8387_v8  ;;  %v8435_v8 = vld [vmem:[#allocation6 + $0x584] ss:$16 sps:$4 sm:$0xff]  }
 0x1b5   :  { %6159 = vmatpush1.bf16.msra.mxu0 %v8385_v18  ;;  %2506 = vrot.lane.b32.xlu0 %v9619_v21, %s9388_s17  ;;  %v8447_v18 = vld [vmem:[#allocation6 + $0x544] ss:$16 sps:$4 sm:$0xff]  }
 0x1b6   :  { %6160 = vmatprep.subr.bf16.mxu0 %v8393_v20  ;;  %v8445_v20 = vld [vmem:[#allocation6 + $0x540] ss:$16 sps:$4 sm:$0xff]  }
 0x1b9   :  { %6161 = vmatpush1.bf16.msra.mxu0 %v8391_v27  ;;  %v8451_v27 = vld [vmem:[#allocation6 + $0x520] ss:$16 sps:$4 sm:$0xff]  }
 0x1ba   :  { %6162 = vmatprep.subr.bf16.mxu0 %v8399_v58  ;;  %v8459_v58 = vld [vmem:[#allocation6 + $0x504] ss:$16 sps:$4 sm:$0xff]  }
 0x1bd   :  { %6163 = vmatpush1.bf16.msra.mxu0 %v8397_v22  ;;  %v8457_v22 = vld [vmem:[#allocation6 + $0x500] ss:$16 sps:$4 sm:$0xff]  }
 0x1be   :  { %6164 = vmatprep.subr.bf16.mxu0 %v8405_v25  ;;  %v8465_v25 = vld [vmem:[#allocation6 + $0x8e4] ss:$16 sps:$4 sm:$0xff]  }
 0x1c1   :  { %6165 = vmatpush1.bf16.msra.mxu0 %v8403_v26  ;;  %v482_v26 = vrot.slane %v9623_v32, %v9544_v39 }
 0x1c2   :  { %6166 = vmatprep.subr.bf16.mxu0 %v8411_v28  ;;  %v490_v28 = vrot.slane %v9623_v32, %v9547_v41 }
 0x1c5   :  { %6167 = vmatpush1.bf16.msra.mxu0 %v8409_v30  ;;  %v442_v30 = vrot.slane %v9578_v37, %v9517_v23 }
 0x1c6   :  { %6168 = vmatprep.subr.bf16.mxu0 %v8417_v44  ;;  %v438_v44 = vrot.slane %v9578_v37, %v9539_v31 }
 0x1c8   :  { %v2201_v36 = vpop.f32.mrf.mxu0  ;;  %v2242_v38 = vpop.f32.mrf.mxu1 }
 0x1c9   :  { %v2202_v19 = vadd.f32 %v2201_v36, %v466_v33  ;;  %6169 = vmatpush2.bf16.msra.mxu0 %v8415_v14  ;;  %v2243_v1 = vadd.f32 %v2242_v38, %v474_v46  ;;  %v486_v33 = vrot.slane %v9623_v32, %v9550_v43  ;;  %v2040_v46 = vadd.f32 %v9586_v45, %v438_v44 }
 0x1ca   :  { %v2203_v50 = vpop.f32.mrf.mxu0  ;;  %6170 = vmatprep.subr.bf16.mxu0 %v8423_v34  ;;  %v2244_v56 = vpop.f32.mrf.mxu1  ;;  %v494_v34 = vrot.slane %v9623_v32, %v9554_v47 }
 0x1cb   :  { %v2204_v54 = vadd.f32 %v2203_v50, %v470_v35  ;;  %v2245_v57 = vadd.f32 %v2244_v56, %v478_v12  ;;  %v9637_v3 = vmax.f32 %v9574_v62, %v2202_v19  ;;  %v9647_v49 = vmax.f32 %v9576_v2, %v2243_v1  ;;  %v8441_v62 = vld [vmem:[#allocation6 + $0x564] ss:$16 sps:$4 sm:$0xff]   ;;  %v394_v1 = vld [vmem:[#allocation4 + $0x18] sm:$0xff] }
 0x1cc   :  { %v2205_v61 = vpop.f32.mrf.mxu0  ;;  %v2246_v4 = vpop.f32.mrf.mxu1  ;;  %v8453_v2 = vld [vmem:[#allocation6 + $0x524] ss:$16 sps:$4 sm:$0xff]   ;;  %v2079_v19 = vadd.f32 %v9584_v52, %v442_v30 }
 0x1cd   :  { %v9640_v0 = vmax.f32 %v9571_v59, %v2204_v54  ;;  %6171 = vmatpush2.bf16.msra.mxu0 %v8421_v48  ;;  %v9642_v9 = vmax.f32 %v2038_v63, %v2245_v57  ;;  %v8433_v59 = vld [vmem:[#allocation6 + $0x580] ss:$16 sps:$4 sm:$0xff]   ;;  %v498_v4 = vrot.slane %v394_v1, %v9591_v24 }
 0x1ce   :  { %v2206_v7 = vpop.f32.mrf.mxu0  ;;  %6172 = vmatprep.subr.bf16.mxu0 %v8429_v51  ;;  %v2247_v15 = vpop.f32.mrf.mxu1 }
 0x1cf   :  { %v8265_v10 = vpack.i.bf16 %v9640_v0, %v9637_v3  ;;  %v8270_v16 = vpack.i.bf16 %v9642_v9, %v9647_v49  ;;  %v510_v7 = vrot.slane %v394_v1, %v9520_v29 }
 0x1d1   :  { %8266 = vrot.lane.b32.xlu1 %v8265_v10, %s9388_s17  ;;  %6173 = vmatpush2.bf16.msra.mxu0 %v8427_v5 }
 0x1d2   :  { %6174 = vmatprep.subr.bf16.mxu0 %v8435_v8 }
 0x1d5   :  { %8271 = vrot.lane.b32.xlu1 %v8270_v16, %s9388_s17  ;;  %6175 = vmatpush2.bf16.msra.mxu0 %v8433_v59 }
 0x1d6   :  { %6176 = vmatprep.subr.bf16.mxu0 %v8441_v62 }
 0x1d9   :  { %6177 = vmatpush2.bf16.msra.mxu0 %v8439_v17 }
 0x1da   :  { %6178 = vmatprep.subr.bf16.mxu0 %v8447_v18 }
 0x1dd   :  { %6179 = vmatpush2.bf16.msra.mxu0 %v8445_v20 }
 0x1de   :  { %6180 = vmatprep.subr.bf16.mxu0 %v8453_v2 }
 0x1e1   :  { %6181 = vmatpush2.bf16.msra.mxu0 %v8451_v27 }
 0x1e2   :  { %6182 = vmatprep.subr.bf16.mxu0 %v8459_v58 }
 0x1e5   :  { %6183 = vmatpush2.bf16.msra.mxu0 %v8457_v22 }
 0x1e6   :  { %6234 = vmatprep.subr.bf16.mxu0 %v8465_v25 }
 0x1e8   :  { %v2283_v14 = vpop.f32.mrf.mxu0  ;;  %v2324_v36 = vpop.f32.mrf.mxu1 }
 0x1e9   :  { %v2284_v35 = vadd.f32 %v2283_v14, %v482_v26  ;;  %v2325_v12 = vadd.f32 %v2324_v36, %v490_v28  ;;  %v9694_v26 = vand.u32 127, %v399_v6  ;;  %v522_v14 = vrot.slane %v394_v1, %v9547_v41 }
 0x1ea   :  { %v2285_v40 = vpop.f32.mrf.mxu0  ;;  %v2326_v48 = vpop.f32.mrf.mxu1 }
 0x1eb   :  { %v2286_v38 = vadd.f32 %v2285_v40, %v486_v33  ;;  %v2327_v50 = vadd.f32 %v2326_v48, %v494_v34  ;;  %v9667_v37 = vmax.f32 %v2040_v46, %v2284_v35  ;;  %v9672_v57 = vmax.f32 %v9588_v60, %v2325_v12 }
 0x1ec   :  { %v2287_v51 = vpop.f32.mrf.mxu0  ;;  %v2328_v56 = vpop.f32.mrf.mxu1  ;;  %v506_v60 = vrot.slane %v394_v1, %v9517_v23  ;;  %vm2530_vm0 = vcmp.lt.s32.totalorder %v9694_v26, 64  ;;  %v514_v33 = vrot.slane %v394_v1, %v9544_v39  ;;  %v518_v34 = vrot.slane %v394_v1, %v9550_v43 }
 0x1ed   :  { %v9669_v54 = vmax.f32 %v2079_v19, %v2286_v38  ;;  %v9675_v32 = vmax.f32 %v9605_v55, %v2327_v50  ;;  %v502_v55 = vrot.slane %v394_v1, %v9539_v31  ;;  %v526_v12 = vrot.slane %v394_v1, %v9554_v47  ;;  %v8418_v56 = vld [vmem:[#allocation6 + $0x6e0] ss:$16 sps:$4 sm:$0xff]  }
 0x1ee   :  { %v2288_v61 = vpop.f32.mrf.mxu0  ;;  %v2329_v45 = vpop.f32.mrf.mxu1  ;;  %vm2559_vm1 = vcmp.lt.s32.totalorder %v9694_v26, 120  ;;  %vm2570_vm2 = vcmp.lt.s32.totalorder %v9694_v26, 124  ;;  %v8607_v26 = vld [vmem:[#allocation6 + $0xde0] ss:$16 sps:$4 sm:$0xff]  }
 0x1ef   :  { %v8275_v52 = vpack.i.bf16 %v9669_v54, %v9667_v37  ;;  %v8280_v63 = vpack.i.bf16 %v9675_v32, %v9672_v57 }
 0x1f1   :  { %8276 = vrot.lane.b32.xlu0 %v8275_v52, %s9388_s17  ;;  %8281 = vrot.lane.b32.xlu1 %v8280_v63, %s9388_s17  ;;  %v8426_v52 = vld [vmem:[#allocation6 + $0x6c4] ss:$16 sps:$4 sm:$0xff]  }
 0x208   :  { %v2365_v5 = vpop.f32.mrf.mxu0  ;;  %v2406_v10 = vpop.f32.mrf.mxu1 }
 0x209   :  { %v2366_v8 = vadd.f32 %v2365_v5, %v498_v4  ;;  %v2407_v15 = vadd.f32 %v2406_v10, %v506_v60  ;;  %v8424_v4 = vld [vmem:[#allocation6 + $0x6c0] ss:$16 sps:$4 sm:$0xff]   ;;  %v8432_v5 = vld [vmem:[#allocation6 + $0x6a4] ss:$16 sps:$4 sm:$0xff]  }
 0x20a   :  { %v2367_v59 = vpop.f32.mrf.mxu0  ;;  %v2408_v16 = vpop.f32.mrf.mxu1  ;;  %v8436_v10 = vld [vmem:[#allocation6 + $0x680] ss:$16 sps:$4 sm:$0xff]  }
 0x20b   :  { %v2368_v62 = vadd.f32 %v2367_v59, %v502_v55  ;;  %v9687_v17 = vmax.f32 %v2366_v8, %v2407_v15  ;;  %v2409_v18 = vadd.f32 %v2408_v16, %v510_v7  ;;  %v8430_v7 = vld [vmem:[#allocation6 + $0x6a0] ss:$16 sps:$4 sm:$0xff]   ;;  %v8438_v8 = vld [vmem:[#allocation6 + $0x684] ss:$16 sps:$4 sm:$0xff]  }
 0x20c   :  { %v2369_v20 = vpop.f32.mrf.mxu0  ;;  %v2410_v2 = vpop.f32.mrf.mxu1  ;;  %v8444_v15 = vld [vmem:[#allocation6 + $0x664] ss:$16 sps:$4 sm:$0xff]   ;;  %v8442_v59 = vld [vmem:[#allocation6 + $0x660] ss:$16 sps:$4 sm:$0xff]  }
 0x20d   :  { %v9689_v27 = vmax.f32 %v2368_v62, %v2409_v18  ;;  %v8450_v62 = vld [vmem:[#allocation6 + $0x644] ss:$16 sps:$4 sm:$0xff]   ;;  %v8448_v16 = vld [vmem:[#allocation6 + $0x640] ss:$16 sps:$4 sm:$0xff]  }
 0x20e   :  { %v2370_v58 = vpop.f32.mrf.mxu0  ;;  %v2411_v22 = vpop.f32.mrf.mxu1  ;;  %v8456_v18 = vld [vmem:[#allocation6 + $0x624] ss:$16 sps:$4 sm:$0xff]   ;;  %v8454_v2 = vld [vmem:[#allocation6 + $0x620] ss:$16 sps:$4 sm:$0xff]  }
 0x20f   :  { %v8285_v25 = vpack.i.bf16 %v9689_v27, %v9687_v17 }
 0x211   :  { %8286 = vrot.lane.b32.xlu0 %v8285_v25, %s9393_s11  ;;  %v8462_v25 = vld [vmem:[#allocation6 + $0x604] ss:$16 sps:$4 sm:$0xff]  }
 0x223   :  { %v9696_v28 = vpop.permute.xlu0 %8261 }
 0x224   :  { %v8264_v30 = vunpack.i.h.bf16 %v9696_v28  ;;  %v8263_v44 = vunpack.i.l.bf16 %v9696_v28 }
 0x226   :  { %v2539_v35 = vsel %vm2530_vm0, %v8263_v44, %v8264_v30 }
 0x227   :  { %v9706_v36 = vpop.permute.xlu0 %2506  ;;  %v2543_v40 = vmax.f32 %v9610_v11, %v2539_v35 }
 0x228   :  { %v2447_v6 = vpop.f32.mrf.mxu0  ;;  %v2540_v19 = vsel %vm2530_vm0, %v9706_v36, %v8263_v44  ;;  %v2488_v39 = vpop.f32.mrf.mxu1 }
 0x229   :  { %v2448_v46 = vadd.f32 %v2447_v6, %v514_v33  ;;  %v2542_v41 = vmax.f32 %v9619_v21, %v2540_v19  ;;  %v2489_v38 = vadd.f32 %v2488_v39, %v522_v14  ;;  %v9714_v48 = vpack.c.bf16 %v2543_v40, %v2543_v40  ;;  %v8468_v40 = vld [vmem:[#allocation6 + $0x7e4] ss:$16 sps:$4 sm:$0xff]   ;;  %v8463_v19 = vld [vmem:[#allocation6 + $0x8e0] ss:$16 sps:$4 sm:$0xff]  }
 0x22a   :  { %v2449_v43 = vpop.f32.mrf.mxu0  ;;  %v2490_v51 = vpop.f32.mrf.mxu1  ;;  %v8471_v39 = vld [vmem:[#allocation6 + $0x8c4] ss:$16 sps:$4 sm:$0xff]  }
 0x22b   :  { %v2450_v50 = vadd.f32 %v2449_v43, %v518_v34  ;;  %v9716_v61 = vpack.c.bf16 %v2542_v41, %v2542_v41  ;;  %v9718_v47 = vmax.f32 %v2448_v46, %v2489_v38  ;;  %v2491_v11 = vadd.f32 %v2490_v51, %v526_v12  ;;  %6143 = vmatprep.mubr.bf16.mxu1 %v9714_v48  ;;  %v8460_v34 = vld [vmem:[#allocation6 + $0x600] ss:$16 sps:$4 sm:$0xff]   ;;  %v8474_v38 = vld [vmem:[#allocation6 + $0x7c4] ss:$16 sps:$4 sm:$0xff]  }
 0x22c   :  { %v2451_v45 = vpop.f32.mrf.mxu0  ;;  %v2492_v63 = vpop.f32.mrf.mxu1  ;;  %v8477_v51 = vld [vmem:[#allocation6 + $0x8a4] ss:$16 sps:$4 sm:$0xff]  }
 0x22d   :  { %v9721_v1 = vmax.f32 %v2450_v50, %v2491_v11  ;;  %6144 = vmatmul.mubr.bf16.vlgmr.msra.gmra.mxu1 %v9716_v61  ;;  %v8469_v50 = vld [vmem:[#allocation6 + $0x8c0] ss:$16 sps:$4 sm:$0xff]   ;;  %v8480_v11 = vld [vmem:[#allocation6 + $0x7a4] ss:$16 sps:$4 sm:$0xff]  }
 0x22e   :  { %v2452_v21 = vpop.f32.mrf.mxu0  ;;  %6194 = vmatpush1.bf16.msra.mxu1 %v8418_v56  ;;  %v2493_v60 = vpop.f32.mrf.mxu1  ;;  %v8472_v56 = vld [vmem:[#allocation6 + $0x7c0] ss:$16 sps:$4 sm:$0xff]   ;;  %v8486_v63 = vld [vmem:[#allocation6 + $0x784] ss:$16 sps:$4 sm:$0xff]  }
 0x22f   :  { %6195 = vmatprep.subr.bf16.mxu1 %v8426_v52  ;;  %v8290_v55 = vpack.i.bf16 %v9721_v1, %v9718_v47  ;;  %v8475_v52 = vld [vmem:[#allocation6 + $0x8a0] ss:$16 sps:$4 sm:$0xff]  }
 0x230   :  { %v8478_v45 = vld [vmem:[#allocation6 + $0x7a0] ss:$16 sps:$4 sm:$0xff]  }
 0x231   :  { %8291 = vrot.lane.b32.xlu1 %v8290_v55, %s9394_s6  ;;  %v8481_v21 = vld [vmem:[#allocation6 + $0x880] ss:$16 sps:$4 sm:$0xff]   ;;  %v8492_v55 = vld [vmem:[#allocation6 + $0x764] ss:$16 sps:$4 sm:$0xff]  }
 0x232   :  { %6196 = vmatpush1.bf16.msra.mxu1 %v8424_v4  ;;  %v8489_v4 = vld [vmem:[#allocation6 + $0x864] ss:$16 sps:$4 sm:$0xff]   ;;  %v8484_v60 = vld [vmem:[#allocation6 + $0x780] ss:$16 sps:$4 sm:$0xff]  }
 0x233   :  { %6197 = vmatprep.subr.bf16.mxu1 %v8432_v5  ;;  %v8487_v5 = vld [vmem:[#allocation6 + $0x860] ss:$16 sps:$4 sm:$0xff]  }
 0x236   :  { %6198 = vmatpush1.bf16.msra.mxu1 %v8430_v7  ;;  %v8495_v7 = vld [vmem:[#allocation6 + $0x844] ss:$16 sps:$4 sm:$0xff]  }
 0x237   :  { %6199 = vmatprep.subr.bf16.mxu1 %v8438_v8  ;;  %v8490_v8 = vld [vmem:[#allocation6 + $0x760] ss:$16 sps:$4 sm:$0xff]  }
 0x23a   :  { %6200 = vmatpush1.bf16.msra.mxu1 %v8436_v10  ;;  %v8498_v10 = vld [vmem:[#allocation6 + $0x744] ss:$16 sps:$4 sm:$0xff]  }
 0x23b   :  { %6201 = vmatprep.subr.bf16.mxu1 %v8444_v15  ;;  %v8493_v15 = vld [vmem:[#allocation6 + $0x840] ss:$16 sps:$4 sm:$0xff]  }
 0x23e   :  { %6202 = vmatpush1.bf16.msra.mxu1 %v8442_v59  ;;  %v8501_v59 = vld [vmem:[#allocation6 + $0x824] ss:$16 sps:$4 sm:$0xff]  }
 0x23f   :  { %6203 = vmatprep.subr.bf16.mxu1 %v8450_v62  ;;  %v8496_v62 = vld [vmem:[#allocation6 + $0x740] ss:$16 sps:$4 sm:$0xff]  }
 0x242   :  { %6204 = vmatpush1.bf16.msra.mxu1 %v8448_v16  ;;  %v8504_v16 = vld [vmem:[#allocation6 + $0x724] ss:$16 sps:$4 sm:$0xff]  }
 0x243   :  { %v9726_v20 = vpop.permute.xlu1 %8266  ;;  %6205 = vmatprep.subr.bf16.mxu1 %v8456_v18  ;;  %v8499_v18 = vld [vmem:[#allocation6 + $0x820] ss:$16 sps:$4 sm:$0xff]  }
 0x244   :  { %v8269_v58 = vunpack.i.h.bf16 %v9726_v20  ;;  %v8268_v22 = vunpack.i.l.bf16 %v9726_v20 }
 0x246   :  { %v2538_v28 = vsel %vm2530_vm0, %v8264_v30, %v8268_v22  ;;  %v2537_v44 = vsel %vm2530_vm0, %v8268_v22, %v8269_v58  ;;  %6206 = vmatpush1.bf16.msra.mxu1 %v8454_v2  ;;  %v8507_v2 = vld [vmem:[#allocation6 + $0x804] ss:$16 sps:$4 sm:$0xff]  }
 0x247   :  { %v2544_v33 = vmax.f32 %v9613_v13, %v2538_v28  ;;  %v9737_v14 = vpop.permute.xlu1 %8271  ;;  %v2545_v35 = vmax.f32 %v9637_v3, %v2537_v44  ;;  %6207 = vmatprep.subr.bf16.mxu1 %v8462_v25  ;;  %v8466_v3 = vld [vmem:[#allocation6 + $0x7e0] ss:$16 sps:$4 sm:$0xff]  }
 0x248   :  { %v8274_v6 = vunpack.i.h.bf16 %v9737_v14  ;;  %v8273_v12 = vunpack.i.l.bf16 %v9737_v14  ;;  %v8502_v25 = vld [vmem:[#allocation6 + $0x720] ss:$16 sps:$4 sm:$0xff]  }
 0x249   :  { %v9742_v30 = vpack.c.bf16 %v2545_v35, %v2545_v35  ;;  %v9744_v46 = vpack.c.bf16 %v2544_v33, %v2544_v33  ;;  %v8556_v14 = vld [vmem:[#allocation6 + $0xa00] ss:$16 sps:$4 sm:$0xff]  }
 0x24a   :  { %v2535_v13 = vsel %vm2530_vm0, %v8273_v12, %v8274_v6  ;;  %6208 = vmatpush1.bf16.msra.mxu1 %v8460_v34  ;;  %v8510_v34 = vld [vmem:[#allocation6 + $0x704] ss:$16 sps:$4 sm:$0xff]   ;;  %v2536_v35 = vsel %vm2530_vm0, %v8269_v58, %v8273_v12  ;;  %v8508_v58 = vld [vmem:[#allocation6 + $0x700] ss:$16 sps:$4 sm:$0xff]  }
 0x24b   :  { %6184 = vmatprep.mubr.bf16.mxu0 %v9742_v30  ;;  %v2547_v41 = vmax.f32 %v9647_v49, %v2535_v13  ;;  %6209 = vmatprep.subr.bf16.mxu1 %v8468_v40  ;;  %v8483_v49 = vld [vmem:[#allocation6 + $0x884] ss:$16 sps:$4 sm:$0xff]   ;;  %v8505_v13 = vld [vmem:[#allocation6 + $0x800] ss:$16 sps:$4 sm:$0xff]  }
 0x24c   :  { %6185 = vmatmul.mubr.bf16.vlgmr.msra.gmra.mxu0 %v9744_v46 }
 0x24d   :  { %6235 = vmatpush1.bf16.msra.mxu0 %v8463_v19  ;;  %v9755_v43 = vpack.c.bf16 %v2547_v41, %v2547_v41 }
 0x24e   :  { %6236 = vmatprep.subr.bf16.mxu0 %v8471_v39  ;;  %6210 = vmatpush2.bf16.msra.mxu1 %v8466_v3  ;;  %v8513_v39 = vld [vmem:[#allocation6 + $0x9e4] ss:$16 sps:$4 sm:$0xff]  }
 0x24f   :  { %6225 = vmatprep.mubr.bf16.mxu1 %v9755_v43  ;;  %6211 = vmatprep.subr.bf16.mxu1 %v8474_v38  ;;  %v2546_v38 = vmax.f32 %v9640_v0, %v2536_v35  ;;  %v8514_v0 = vld [vmem:[#allocation6 + $0xae0] ss:$16 sps:$4 sm:$0xff]  }
 0x250   :  { %v8541_v35 = vld [vmem:[#allocation6 + $0x940] ss:$16 sps:$4 sm:$0xff]  }
 0x251   :  { %6237 = vmatpush1.bf16.msra.mxu0 %v8469_v50 }
 0x252   :  { %6238 = vmatprep.subr.bf16.mxu0 %v8477_v51  ;;  %6212 = vmatpush2.bf16.msra.mxu1 %v8472_v56  ;;  %v8516_v51 = vld [vmem:[#allocation6 + $0xae4] ss:$16 sps:$4 sm:$0xff]  }
 0x253   :  { %6213 = vmatprep.subr.bf16.mxu1 %v8480_v11 }
 0x255   :  { %6239 = vmatpush1.bf16.msra.mxu0 %v8475_v52 }
 0x256   :  { %6240 = vmatprep.subr.bf16.mxu0 %v8483_v49  ;;  %6214 = vmatpush2.bf16.msra.mxu1 %v8478_v45  ;;  %v8519_v45 = vld [vmem:[#allocation6 + $0x9c4] ss:$16 sps:$4 sm:$0xff]  }
 0x257   :  { %6215 = vmatprep.subr.bf16.mxu1 %v8486_v63  ;;  %v9793_v63 = vpack.c.bf16 %v2546_v38, %v2546_v38 }
 0x259   :  { %6241 = vmatpush1.bf16.msra.mxu0 %v8481_v21  ;;  %v8522_v21 = vld [vmem:[#allocation6 + $0xac4] ss:$16 sps:$4 sm:$0xff]  }
 0x25a   :  { %6242 = vmatprep.subr.bf16.mxu0 %v8489_v4  ;;  %6216 = vmatpush2.bf16.msra.mxu1 %v8484_v60  ;;  %v8517_v60 = vld [vmem:[#allocation6 + $0x9c0] ss:$16 sps:$4 sm:$0xff]  }
 0x25b   :  { %6217 = vmatprep.subr.bf16.mxu1 %v8492_v55  ;;  %v8525_v55 = vld [vmem:[#allocation6 + $0x9a4] ss:$16 sps:$4 sm:$0xff]  }
 0x25d   :  { %6243 = vmatpush1.bf16.msra.mxu0 %v8487_v5  ;;  %v8520_v5 = vld [vmem:[#allocation6 + $0xac0] ss:$16 sps:$4 sm:$0xff]  }
 0x25e   :  { %6244 = vmatprep.subr.bf16.mxu0 %v8495_v7  ;;  %6218 = vmatpush2.bf16.msra.mxu1 %v8490_v8  ;;  %v8528_v7 = vld [vmem:[#allocation6 + $0xaa4] ss:$16 sps:$4 sm:$0xff]   ;;  %v8523_v8 = vld [vmem:[#allocation6 + $0x9a0] ss:$16 sps:$4 sm:$0xff]  }
 0x25f   :  { %6219 = vmatprep.subr.bf16.mxu1 %v8498_v10  ;;  %v8531_v10 = vld [vmem:[#allocation6 + $0x984] ss:$16 sps:$4 sm:$0xff]  }
 0x261   :  { %6245 = vmatpush1.bf16.msra.mxu0 %v8493_v15  ;;  %v8526_v15 = vld [vmem:[#allocation6 + $0xaa0] ss:$16 sps:$4 sm:$0xff]  }
 0x262   :  { %6246 = vmatprep.subr.bf16.mxu0 %v8501_v59  ;;  %6220 = vmatpush2.bf16.msra.mxu1 %v8496_v62  ;;  %v8534_v59 = vld [vmem:[#allocation6 + $0xa84] ss:$16 sps:$4 sm:$0xff]   ;;  %v8529_v62 = vld [vmem:[#allocation6 + $0x980] ss:$16 sps:$4 sm:$0xff]  }
 0x263   :  { %v9758_v22 = vpop.permute.xlu0 %8276  ;;  %v8282_v28 = vpop.permute.xlu1 %8281  ;;  %6221 = vmatprep.subr.bf16.mxu1 %v8504_v16  ;;  %v8537_v16 = vld [vmem:[#allocation6 + $0x964] ss:$16 sps:$4 sm:$0xff]  }
 0x264   :  { %v8279_v44 = vunpack.i.h.bf16 %v9758_v22  ;;  %v8278_v33 = vunpack.i.l.bf16 %v9758_v22  ;;  %v8284_v40 = vunpack.i.h.bf16 %v8282_v28  ;;  %v8283_v19 = vunpack.i.l.bf16 %v8282_v28  ;;  %v8543_v28 = vld [vmem:[#allocation6 + $0x944] ss:$16 sps:$4 sm:$0xff]  }
 0x265   :  { %6247 = vmatpush1.bf16.msra.mxu0 %v8499_v18  ;;  %v8532_v18 = vld [vmem:[#allocation6 + $0xa80] ss:$16 sps:$4 sm:$0xff]   ;;  %v8561_v22 = vld [vmem:[#allocation6 + $0xce4] ss:$16 sps:$4 sm:$0xff]  }
 0x266   :  { %6248 = vmatprep.subr.bf16.mxu0 %v8507_v2  ;;  %v2533_v3 = vsel %vm2530_vm0, %v8278_v33, %v8279_v44  ;;  %v9775_v41 = vsel %vm2530_vm0, %v8284_v40, %v9706_v36  ;;  %v9779_v20 = vsel %vm2530_vm0, %v8279_v44, %v8283_v19  ;;  %6222 = vmatpush2.bf16.msra.mxu1 %v8502_v25  ;;  %v8511_v36 = vld [vmem:[#allocation6 + $0x9e0] ss:$16 sps:$4 sm:$0xff]   ;;  %v8540_v2 = vld [vmem:[#allocation6 + $0xa64] ss:$16 sps:$4 sm:$0xff]  }
 0x267   :  { %v2549_v12 = vmax.f32 %v9667_v37, %v2533_v3  ;;  %6223 = vmatprep.subr.bf16.mxu1 %v8510_v34  ;;  %v2531_v56 = vsel %vm2530_vm0, %v8283_v19, %v8284_v40  ;;  %v8535_v25 = vld [vmem:[#allocation6 + $0x960] ss:$16 sps:$4 sm:$0xff]   ;;  %v8546_v34 = vld [vmem:[#allocation6 + $0xa44] ss:$16 sps:$4 sm:$0xff]  }
 0x268   :  { %v9783_v50 = vpop.f32.mrf.mxu0  ;;  %v2551_v52 = vmax.f32 %v9672_v57, %v2531_v56  ;;  %v8538_v44 = vld [vmem:[#allocation6 + $0xa60] ss:$16 sps:$4 sm:$0xff]   ;;  %v8549_v40 = vld [vmem:[#allocation6 + $0x924] ss:$16 sps:$4 sm:$0xff]  }
 0x269   :  { %6249 = vmatpush1.bf16.msra.mxu0 %v8505_v13  ;;  %v9787_v11 = vpack.c.bf16 %v2549_v12, %v2549_v12  ;;  %v8544_v19 = vld [vmem:[#allocation6 + $0xa40] ss:$16 sps:$4 sm:$0xff]   ;;  %v8552_v13 = vld [vmem:[#allocation6 + $0xa24] ss:$16 sps:$4 sm:$0xff]  }
 0x26a   :  { %v9790_v49 = vpop.f32.mrf.mxu0  ;;  %6250 = vmatprep.subr.bf16.mxu0 %v8513_v39  ;;  %6224 = vmatpush2.bf16.msra.mxu1 %v8508_v58  ;;  %v9795_v4 = vpack.c.bf16 %v2551_v52, %v2551_v52  ;;  %v8547_v39 = vld [vmem:[#allocation6 + $0x920] ss:$16 sps:$4 sm:$0xff]   ;;  %v8555_v3 = vld [vmem:[#allocation6 + $0x904] ss:$16 sps:$4 sm:$0xff]   ;;  %v2534_v58 = vsel %vm2530_vm0, %v8274_v6, %v8278_v33 }
 0x26b   :  { %6266 = vmatprep.mubr.bf16.mxu0 %v9787_v11  ;;  %6275 = vmatprep.subr.bf16.mxu1 %v8516_v51  ;;  %v8550_v12 = vld [vmem:[#allocation6 + $0xa20] ss:$16 sps:$4 sm:$0xff]   ;;  %v8558_v51 = vld [vmem:[#allocation6 + $0xa04] ss:$16 sps:$4 sm:$0xff]  }
 0x26c   :  { %v6108_v37 = vpop.f32.mrf.mxu0  ;;  %v8553_v52 = vld [vmem:[#allocation6 + $0x900] ss:$16 sps:$4 sm:$0xff]   ;;  %v8564_v33 = vld [vmem:[#allocation6 + $0xbe4] ss:$16 sps:$4 sm:$0xff]  }
 0x26d   :  { %6251 = vmatpush2.bf16.msra.mxu0 %v8511_v36  ;;  %6226 = vmatmul.mubr.bf16.vlgmr.msra.gmra.mxu1 %v9793_v63 }
 0x26e   :  { %v6109_v57 = vpop.f32.mrf.mxu0  ;;  %6252 = vmatprep.subr.bf16.mxu0 %v8519_v45  ;;  %6276 = vmatpush1.bf16.msra.mxu1 %v8514_v0  ;;  %v2548_v45 = vmax.f32 %v9642_v9, %v2534_v58  ;;  %v8562_v9 = vld [vmem:[#allocation6 + $0xbe0] ss:$16 sps:$4 sm:$0xff]  }
 0x26f   :  { %6307 = vmatprep.mubr.bf16.mxu1 %v9795_v4  ;;  %6277 = vmatprep.subr.bf16.mxu1 %v8522_v21  ;;  %v8559_v21 = vld [vmem:[#allocation6 + $0xce0] ss:$16 sps:$4 sm:$0xff]  }
 0x270   :  { %v8595_v58 = vld [vmem:[#allocation6 + $0xc20] ss:$16 sps:$4 sm:$0xff]  }
 0x271   :  { %6253 = vmatpush2.bf16.msra.mxu0 %v8517_v60  ;;  %v9810_v60 = vpack.c.bf16 %v2548_v45, %v2548_v45  ;;  %v8601_v45 = vld [vmem:[#allocation6 + $0xc00] ss:$16 sps:$4 sm:$0xff]  }
 0x272   :  { %6254 = vmatprep.subr.bf16.mxu0 %v8525_v55  ;;  %6278 = vmatpush1.bf16.msra.mxu1 %v8520_v5  ;;  %v8567_v55 = vld [vmem:[#allocation6 + $0xcc4] ss:$16 sps:$4 sm:$0xff]  }
 0x273   :  { %6279 = vmatprep.subr.bf16.mxu1 %v8528_v7  ;;  %v8570_v5 = vld [vmem:[#allocation6 + $0xbc4] ss:$16 sps:$4 sm:$0xff]   ;;  %v8565_v7 = vld [vmem:[#allocation6 + $0xcc0] ss:$16 sps:$4 sm:$0xff]  }
 0x275   :  { %6255 = vmatpush2.bf16.msra.mxu0 %v8523_v8  ;;  %v8568_v8 = vld [vmem:[#allocation6 + $0xbc0] ss:$16 sps:$4 sm:$0xff]  }
 0x276   :  { %6256 = vmatprep.subr.bf16.mxu0 %v8531_v10  ;;  %6280 = vmatpush1.bf16.msra.mxu1 %v8526_v15  ;;  %v8576_v10 = vld [vmem:[#allocation6 + $0xba4] ss:$16 sps:$4 sm:$0xff]   ;;  %v8571_v15 = vld [vmem:[#allocation6 + $0xca0] ss:$16 sps:$4 sm:$0xff]  }
 0x277   :  { %6281 = vmatprep.subr.bf16.mxu1 %v8534_v59  ;;  %v8579_v59 = vld [vmem:[#allocation6 + $0xc84] ss:$16 sps:$4 sm:$0xff]  }
 0x279   :  { %6257 = vmatpush2.bf16.msra.mxu0 %v8529_v62  ;;  %v8574_v62 = vld [vmem:[#allocation6 + $0xba0] ss:$16 sps:$4 sm:$0xff]  }
 0x27a   :  { %6258 = vmatprep.subr.bf16.mxu0 %v8537_v16  ;;  %6282 = vmatpush1.bf16.msra.mxu1 %v8532_v18  ;;  %v8582_v16 = vld [vmem:[#allocation6 + $0xb84] ss:$16 sps:$4 sm:$0xff]   ;;  %v8577_v18 = vld [vmem:[#allocation6 + $0xc80] ss:$16 sps:$4 sm:$0xff]  }
 0x27b   :  { %6283 = vmatprep.subr.bf16.mxu1 %v8540_v2  ;;  %v8585_v2 = vld [vmem:[#allocation6 + $0xc64] ss:$16 sps:$4 sm:$0xff]  }
 0x27d   :  { %6259 = vmatpush2.bf16.msra.mxu0 %v8535_v25  ;;  %v8580_v25 = vld [vmem:[#allocation6 + $0xb80] ss:$16 sps:$4 sm:$0xff]  }
 0x27e   :  { %6260 = vmatprep.subr.bf16.mxu0 %v8543_v28  ;;  %6284 = vmatpush1.bf16.msra.mxu1 %v8538_v44  ;;  %v8588_v28 = vld [vmem:[#allocation6 + $0xb64] ss:$16 sps:$4 sm:$0xff]   ;;  %v8583_v44 = vld [vmem:[#allocation6 + $0xc60] ss:$16 sps:$4 sm:$0xff]  }
 0x27f   :  { %6285 = vmatprep.subr.bf16.mxu1 %v8546_v34  ;;  %v8591_v34 = vld [vmem:[#allocation6 + $0xc44] ss:$16 sps:$4 sm:$0xff]  }
 0x281   :  { %6261 = vmatpush2.bf16.msra.mxu0 %v8541_v35  ;;  %v8586_v35 = vld [vmem:[#allocation6 + $0xb60] ss:$16 sps:$4 sm:$0xff]  }
 0x282   :  { %6262 = vmatprep.subr.bf16.mxu0 %v8549_v40  ;;  %6286 = vmatpush1.bf16.msra.mxu1 %v8544_v19  ;;  %v8594_v40 = vld [vmem:[#allocation6 + $0xb44] ss:$16 sps:$4 sm:$0xff]   ;;  %v8589_v19 = vld [vmem:[#allocation6 + $0xc40] ss:$16 sps:$4 sm:$0xff]  }
 0x283   :  { %v8287_v38 = vpop.permute.xlu0 %8286  ;;  %6287 = vmatprep.subr.bf16.mxu1 %v8552_v13  ;;  %v8597_v13 = vld [vmem:[#allocation6 + $0xc24] ss:$16 sps:$4 sm:$0xff]  }
 0x284   :  { %v8289_v56 = vunpack.i.h.bf16 %v8287_v38  ;;  %v8288_v36 = vunpack.i.l.bf16 %v8287_v38  ;;  %v8598_v38 = vld [vmem:[#allocation6 + $0xb20] ss:$16 sps:$4 sm:$0xff]  }
 0x285   :  { %6263 = vmatpush2.bf16.msra.mxu0 %v8547_v39  ;;  %v8592_v39 = vld [vmem:[#allocation6 + $0xb40] ss:$16 sps:$4 sm:$0xff]  }
 0x286   :  { %6264 = vmatprep.subr.bf16.mxu0 %v8555_v3  ;;  %v9807_v0 = vsel %vm2559_vm1, %v8289_v56, %v8288_v36  ;;  %6288 = vmatpush1.bf16.msra.mxu1 %v8550_v12  ;;  %v2560_v6 = vsel %vm2559_vm1, %v8288_v36, %v8289_v56  ;;  %v8600_v3 = vld [vmem:[#allocation6 + $0xb24] ss:$16 sps:$4 sm:$0xff]  }
 0x287   :  { %6289 = vmatprep.subr.bf16.mxu1 %v8558_v51  ;;  %v2562_v37 = vmax.f32 %v9687_v17, %v2560_v6  ;;  %v8573_v17 = vld [vmem:[#allocation6 + $0xca4] ss:$16 sps:$4 sm:$0xff]   ;;  %v8604_v6 = vld [vmem:[#allocation6 + $0xb00] ss:$16 sps:$4 sm:$0xff]  }
 0x288   :  { %v8603_v12 = vld [vmem:[#allocation6 + $0xc04] ss:$16 sps:$4 sm:$0xff]  }
 0x289   :  { %6265 = vmatpush2.bf16.msra.mxu0 %v8553_v52  ;;  %v9812_v57 = vpack.c.bf16 %v2562_v37, %v2562_v37  ;;  %v8606_v56 = vld [vmem:[#allocation6 + $0xb04] ss:$16 sps:$4 sm:$0xff]   ;;  %v2550_v37 = vmax.f32 %v9669_v54, %v9779_v20 }
 0x28a   :  { %6316 = vmatprep.subr.bf16.mxu0 %v8561_v22  ;;  %6290 = vmatpush1.bf16.msra.mxu1 %v8556_v14  ;;  %v8609_v22 = vld [vmem:[#allocation6 + $0xde4] ss:$16 sps:$4 sm:$0xff]  }
 0x28b   :  { %6291 = vmatprep.subr.bf16.mxu1 %v8564_v33  ;;  %v8621_v54 = vld [vmem:[#allocation6 + $0xda4] ss:$16 sps:$4 sm:$0xff]  }
 0x28c   :  { %6267 = vmatmul.mubr.bf16.vlgmr.msra.gmra.mxu0 %v9810_v60  ;;  %v8624_v20 = vld [vmem:[#allocation6 + $0xea4] ss:$16 sps:$4 sm:$0xff]  }
 0x28d   :  { %6317 = vmatpush1.bf16.msra.mxu0 %v8559_v21  ;;  %6348 = vmatprep.mubr.bf16.mxu0 %v9812_v57  ;;  %v8612_v21 = vld [vmem:[#allocation6 + $0xee4] ss:$16 sps:$4 sm:$0xff]  }
 0x28e   :  { %6318 = vmatprep.subr.bf16.mxu0 %v8567_v55  ;;  %6292 = vmatpush2.bf16.msra.mxu1 %v8562_v9  ;;  %v8615_v9 = vld [vmem:[#allocation6 + $0xdc4] ss:$16 sps:$4 sm:$0xff]  }
 0x28f   :  { %6293 = vmatprep.subr.bf16.mxu1 %v8570_v5  ;;  %v8610_v5 = vld [vmem:[#allocation6 + $0xee0] ss:$16 sps:$4 sm:$0xff]  }
 0x291   :  { %6319 = vmatpush1.bf16.msra.mxu0 %v8565_v7  ;;  %v9822_v7 = vpack.c.bf16 %v2550_v37, %v2550_v37  ;;  %v8663_v37 = vld [vmem:[#allocation6 + $0x10c4] ss:$16 sps:$4 sm:$0xff]  }
 0x292   :  { %6320 = vmatprep.subr.bf16.mxu0 %v8573_v17  ;;  %6294 = vmatpush2.bf16.msra.mxu1 %v8568_v8  ;;  %v8618_v17 = vld [vmem:[#allocation6 + $0xec4] ss:$16 sps:$4 sm:$0xff]  }
 0x293   :  { %6295 = vmatprep.subr.bf16.mxu1 %v8576_v10  ;;  %v8613_v10 = vld [vmem:[#allocation6 + $0xdc0] ss:$16 sps:$4 sm:$0xff]  }
 0x295   :  { %6321 = vmatpush1.bf16.msra.mxu0 %v8571_v15  ;;  %v8619_v15 = vld [vmem:[#allocation6 + $0xda0] ss:$16 sps:$4 sm:$0xff]  }
 0x296   :  { %6322 = vmatprep.subr.bf16.mxu0 %v8579_v59  ;;  %6296 = vmatpush2.bf16.msra.mxu1 %v8574_v62  ;;  %v8627_v59 = vld [vmem:[#allocation6 + $0xd84] ss:$16 sps:$4 sm:$0xff]   ;;  %v8622_v62 = vld [vmem:[#allocation6 + $0xea0] ss:$16 sps:$4 sm:$0xff]  }
 0x297   :  { %6297 = vmatprep.subr.bf16.mxu1 %v8582_v16  ;;  %v8630_v16 = vld [vmem:[#allocation6 + $0xe84] ss:$16 sps:$4 sm:$0xff]  }
 0x299   :  { %6323 = vmatpush1.bf16.msra.mxu0 %v8577_v18  ;;  %v8625_v18 = vld [vmem:[#allocation6 + $0xd80] ss:$16 sps:$4 sm:$0xff]  }
 0x29a   :  { %6324 = vmatprep.subr.bf16.mxu0 %v8585_v2  ;;  %6298 = vmatpush2.bf16.msra.mxu1 %v8580_v25  ;;  %v8633_v2 = vld [vmem:[#allocation6 + $0xd64] ss:$16 sps:$4 sm:$0xff]   ;;  %v8628_v25 = vld [vmem:[#allocation6 + $0xe80] ss:$16 sps:$4 sm:$0xff]  }
 0x29b   :  { %6299 = vmatprep.subr.bf16.mxu1 %v8588_v28  ;;  %v8636_v28 = vld [vmem:[#allocation6 + $0xe64] ss:$16 sps:$4 sm:$0xff]  }
 0x29d   :  { %6325 = vmatpush1.bf16.msra.mxu0 %v8583_v44  ;;  %v8631_v44 = vld [vmem:[#allocation6 + $0xd60] ss:$16 sps:$4 sm:$0xff]  }
 0x29e   :  { %6326 = vmatprep.subr.bf16.mxu0 %v8591_v34  ;;  %6300 = vmatpush2.bf16.msra.mxu1 %v8586_v35  ;;  %v8639_v34 = vld [vmem:[#allocation6 + $0xd44] ss:$16 sps:$4 sm:$0xff]   ;;  %v8634_v35 = vld [vmem:[#allocation6 + $0xe60] ss:$16 sps:$4 sm:$0xff]  }
 0x29f   :  { %6301 = vmatprep.subr.bf16.mxu1 %v8594_v40  ;;  %v8642_v40 = vld [vmem:[#allocation6 + $0xe44] ss:$16 sps:$4 sm:$0xff]  }
 0x2a1   :  { %6327 = vmatpush1.bf16.msra.mxu0 %v8589_v19  ;;  %v8637_v19 = vld [vmem:[#allocation6 + $0xd40] ss:$16 sps:$4 sm:$0xff]  }
 0x2a2   :  { %6328 = vmatprep.subr.bf16.mxu0 %v8597_v13  ;;  %6302 = vmatpush2.bf16.msra.mxu1 %v8592_v39  ;;  %v8645_v13 = vld [vmem:[#allocation6 + $0xd24] ss:$16 sps:$4 sm:$0xff]   ;;  %v8640_v39 = vld [vmem:[#allocation6 + $0xe40] ss:$16 sps:$4 sm:$0xff]  }
 0x2a3   :  { %v8292_v51 = vpop.permute.xlu1 %8291  ;;  %6303 = vmatprep.subr.bf16.mxu1 %v8600_v3  ;;  %v8648_v3 = vld [vmem:[#allocation6 + $0xe24] ss:$16 sps:$4 sm:$0xff]  }
 0x2a4   :  { %v8294_v36 = vunpack.i.h.bf16 %v8292_v51  ;;  %v8293_v52 = vunpack.i.l.bf16 %v8292_v51  ;;  %v8654_v51 = vld [vmem:[#allocation6 + $0xe04] ss:$16 sps:$4 sm:$0xff]  }
 0x2a5   :  { %6329 = vmatpush1.bf16.msra.mxu0 %v8595_v58  ;;  %v8643_v58 = vld [vmem:[#allocation6 + $0xd20] ss:$16 sps:$4 sm:$0xff]  }
 0x2a6   :  { %6330 = vmatprep.subr.bf16.mxu0 %v8603_v12  ;;  %v9817_v14 = vsel %vm2570_vm2, %v8294_v36, %v8293_v52  ;;  %6304 = vmatpush2.bf16.msra.mxu1 %v8598_v38  ;;  %v2571_v33 = vsel %vm2570_vm2, %v8293_v52, %v8294_v36  ;;  %v8651_v12 = vld [vmem:[#allocation6 + $0xd04] ss:$16 sps:$4 sm:$0xff]   ;;  %v8646_v38 = vld [vmem:[#allocation6 + $0xe20] ss:$16 sps:$4 sm:$0xff]   ;;  %v2552_v36 = vmax.f32 %v9675_v32, %v9775_v41 }
 0x2a7   :  { %6305 = vmatprep.subr.bf16.mxu1 %v8606_v56  ;;  %v2573_v55 = vmax.f32 %v9718_v47, %v2571_v33  ;;  %v8616_v47 = vld [vmem:[#allocation6 + $0xec0] ss:$16 sps:$4 sm:$0xff]   ;;  %v8657_v52 = vld [vmem:[#allocation6 + $0x10e4] ss:$16 sps:$4 sm:$0xff]  }
 0x2a8   :  { %v8649_v56 = vld [vmem:[#allocation6 + $0xd00] ss:$16 sps:$4 sm:$0xff]   ;;  %v9830_v33 = vpack.c.bf16 %v2552_v36, %v2552_v36 }
 0x2a9   :  { %6331 = vmatpush1.bf16.msra.mxu0 %v8601_v45  ;;  %v9824_v8 = vpack.c.bf16 %v2573_v55, %v2573_v55  ;;  %v8652_v45 = vld [vmem:[#allocation6 + $0xe00] ss:$16 sps:$4 sm:$0xff]   ;;  %v8669_v55 = vld [vmem:[#allocation6 + $0x10a4] ss:$16 sps:$4 sm:$0xff]  }
 0x2aa   :  { %6332 = vmatprep.subr.bf16.mxu0 %v8609_v22  ;;  %6306 = vmatpush2.bf16.msra.mxu1 %v8604_v6  ;;  %v8660_v22 = vld [vmem:[#allocation6 + $0xfe4] ss:$16 sps:$4 sm:$0xff]   ;;  %v8655_v6 = vld [vmem:[#allocation6 + $0x10e0] ss:$16 sps:$4 sm:$0xff]  }
 0x2ab   :  { %6357 = vmatprep.subr.bf16.mxu1 %v8612_v21  ;;  %v8658_v21 = vld [vmem:[#allocation6 + $0xfe0] ss:$16 sps:$4 sm:$0xff]  }
 0x2ac   :  { %v8661_v32 = vld [vmem:[#allocation6 + $0x10c0] ss:$16 sps:$4 sm:$0xff]  }
 0x2ad   :  { %6333 = vmatpush2.bf16.msra.mxu0 %v8607_v26  ;;  %6308 = vmatmul.mubr.bf16.vlgmr.msra.gmra.mxu1 %v9822_v7  ;;  %v8666_v26 = vld [vmem:[#allocation6 + $0xfc4] ss:$16 sps:$4 sm:$0xff]   ;;  %v9205_v41 = vld [vmem:[%s9932_s0] sm:$0xf] }
 0x2ae   :  { %6334 = vmatprep.subr.bf16.mxu0 %v8615_v9  ;;  %6358 = vmatpush1.bf16.msra.mxu1 %v8610_v5  ;;  %v8664_v9 = vld [vmem:[#allocation6 + $0xfc0] ss:$16 sps:$4 sm:$0xff]   ;;  %v8672_v5 = vld [vmem:[#allocation6 + $0xfa4] ss:$16 sps:$4 sm:$0xff]  }
 0x2af   :  { %6389 = vmatprep.mubr.bf16.mxu1 %v9824_v8  ;;  %6359 = vmatprep.subr.bf16.mxu1 %v8618_v17  ;;  %v8667_v17 = vld [vmem:[#allocation6 + $0x10a0] ss:$16 sps:$4 sm:$0xff]  }
 0x2b1   :  { %6335 = vmatpush2.bf16.msra.mxu0 %v8613_v10  ;;  %v8675_v10 = vld [vmem:[#allocation6 + $0x1084] ss:$16 sps:$4 sm:$0xff]  }
 0x2b2   :  { %6336 = vmatprep.subr.bf16.mxu0 %v8621_v54  ;;  %6360 = vmatpush1.bf16.msra.mxu1 %v8616_v47  ;;  %v8670_v54 = vld [vmem:[#allocation6 + $0xfa0] ss:$16 sps:$4 sm:$0xff]   ;;  %v8678_v47 = vld [vmem:[#allocation6 + $0xf84] ss:$16 sps:$4 sm:$0xff]  }
 0x2b3   :  { %6361 = vmatprep.subr.bf16.mxu1 %v8624_v20  ;;  %v8673_v20 = vld [vmem:[#allocation6 + $0x1080] ss:$16 sps:$4 sm:$0xff]  }
 0x2b5   :  { %6337 = vmatpush2.bf16.msra.mxu0 %v8619_v15  ;;  %v8681_v15 = vld [vmem:[#allocation6 + $0x1064] ss:$16 sps:$4 sm:$0xff]  }
 0x2b6   :  { %6338 = vmatprep.subr.bf16.mxu0 %v8627_v59  ;;  %6362 = vmatpush1.bf16.msra.mxu1 %v8622_v62  ;;  %v8676_v59 = vld [vmem:[#allocation6 + $0xf80] ss:$16 sps:$4 sm:$0xff]   ;;  %v8684_v62 = vld [vmem:[#allocation6 + $0xf64] ss:$16 sps:$4 sm:$0xff]  }
 0x2b7   :  { %6363 = vmatprep.subr.bf16.mxu1 %v8630_v16  ;;  %v8679_v16 = vld [vmem:[#allocation6 + $0x1060] ss:$16 sps:$4 sm:$0xff]  }
 0x2b9   :  { %6339 = vmatpush2.bf16.msra.mxu0 %v8625_v18  ;;  %v8687_v18 = vld [vmem:[#allocation6 + $0x1044] ss:$16 sps:$4 sm:$0xff]  }
 0x2ba   :  { %6340 = vmatprep.subr.bf16.mxu0 %v8633_v2  ;;  %6364 = vmatpush1.bf16.msra.mxu1 %v8628_v25  ;;  %v8682_v2 = vld [vmem:[#allocation6 + $0xf60] ss:$16 sps:$4 sm:$0xff]   ;;  %v8690_v25 = vld [vmem:[#allocation6 + $0xf44] ss:$16 sps:$4 sm:$0xff]  }
 0x2bb   :  { %6365 = vmatprep.subr.bf16.mxu1 %v8636_v28  ;;  %v8685_v28 = vld [vmem:[#allocation6 + $0x1040] ss:$16 sps:$4 sm:$0xff]  }
 0x2bd   :  { %6341 = vmatpush2.bf16.msra.mxu0 %v8631_v44  ;;  %v8693_v44 = vld [vmem:[#allocation6 + $0x1024] ss:$16 sps:$4 sm:$0xff]  }
 0x2be   :  { %6342 = vmatprep.subr.bf16.mxu0 %v8639_v34  ;;  %6366 = vmatpush1.bf16.msra.mxu1 %v8634_v35  ;;  %v8688_v34 = vld [vmem:[#allocation6 + $0xf40] ss:$16 sps:$4 sm:$0xff]   ;;  %v8696_v35 = vld [vmem:[#allocation6 + $0xf24] ss:$16 sps:$4 sm:$0xff]  }
 0x2bf   :  { %6367 = vmatprep.subr.bf16.mxu1 %v8642_v40  ;;  %v8691_v40 = vld [vmem:[#allocation6 + $0x1020] ss:$16 sps:$4 sm:$0xff]  }
 0x2c1   :  { %6343 = vmatpush2.bf16.msra.mxu0 %v8637_v19  ;;  %v8699_v19 = vld [vmem:[#allocation6 + $0x1004] ss:$16 sps:$4 sm:$0xff]  }
 0x2c2   :  { %6344 = vmatprep.subr.bf16.mxu0 %v8645_v13  ;;  %6368 = vmatpush1.bf16.msra.mxu1 %v8640_v39  ;;  %v8694_v13 = vld [vmem:[#allocation6 + $0xf20] ss:$16 sps:$4 sm:$0xff]   ;;  %v8702_v39 = vld [vmem:[#allocation6 + $0xf04] ss:$16 sps:$4 sm:$0xff]  }
 0x2c3   :  { %6369 = vmatprep.subr.bf16.mxu1 %v8648_v3  ;;  %v8697_v3 = vld [vmem:[#allocation6 + $0x1000] ss:$16 sps:$4 sm:$0xff]  }
 0x2c5   :  { %6345 = vmatpush2.bf16.msra.mxu0 %v8643_v58  ;;  %v3168_v58 = vld [vmem:[#allocation7] sm:$0xf] }
 0x2c6   :  { %6346 = vmatprep.subr.bf16.mxu0 %v8651_v12  ;;  %6370 = vmatpush1.bf16.msra.mxu1 %v8646_v38  ;;  %v8705_v12 = vld [vmem:[#allocation6 + $0x11e4] ss:$16 sps:$4 sm:$0xff]   ;;  %v8700_v38 = vld [vmem:[#allocation6 + $0xf00] ss:$16 sps:$4 sm:$0xff]   ;;  %v3173_v36 = vrot.slane %v3168_v58, %v9591_v24 }
 0x2c7   :  { %6371 = vmatprep.subr.bf16.mxu1 %v8654_v51  ;;  %v2563_v51 = vmax.f32 %v9689_v27, %v9807_v0  ;;  %v8709_v27 = vld [vmem:[#allocation6 + $0x11c0] ss:$16 sps:$4 sm:$0xff]   ;;  %v8717_v24 = vld [vmem:[#allocation6 + $0x11a4] ss:$16 sps:$4 sm:$0xff]  }
 0x2c9   :  { %6347 = vmatpush2.bf16.msra.mxu0 %v8649_v56  ;;  %v8708_v56 = vld [vmem:[#allocation6 + $0xec] ss:$16 sps:$4 sm:$0xff]  }
 0x2ca   :  { %6398 = vmatprep.subr.bf16.mxu0 %v8657_v52  ;;  %6372 = vmatpush1.bf16.msra.mxu1 %v8652_v45  ;;  %v8703_v52 = vld [vmem:[#allocation6 + $0x11e0] ss:$16 sps:$4 sm:$0xff]   ;;  %v8711_v45 = vld [vmem:[#allocation6 + $0x11c4] ss:$16 sps:$4 sm:$0xff]  }
 0x2cb   :  { %6373 = vmatprep.subr.bf16.mxu1 %v8660_v22  ;;  %v3177_v22 = vrot.slane %v3168_v58, %v9539_v31  ;;  %v8712_v31 = vld [vmem:[#allocation6 + $0xc8] ss:$16 sps:$4 sm:$0xff]   ;;  %v8753_v58 = vld [vmem:[#allocation6 + $0x2ec] ss:$16 sps:$4 sm:$0xff]  }
 0x2cc   :  { %6349 = vmatmul.mubr.bf16.vlgmr.msra.gmra.mxu0 %v9830_v33 }
 0x2cd   :  { %6399 = vmatpush1.bf16.msra.mxu0 %v8655_v6  ;;  %6430 = vmatprep.mubr.bf16.mxu0 %v9205_v41  ;;  %v8706_v6 = vld [vmem:[#allocation6 + $0xe8] ss:$16 sps:$4 sm:$0xff]  }
 0x2ce   :  { %6400 = vmatprep.subr.bf16.mxu0 %v8663_v37  ;;  %6374 = vmatpush2.bf16.msra.mxu1 %v8658_v21  ;;  %v9840_v37 = vpack.c.bf16 %v2563_v51, %v2563_v51  ;;  %v8714_v21 = vld [vmem:[#allocation6 + $0xcc] ss:$16 sps:$4 sm:$0xff]   ;;  %v8751_v51 = vld [vmem:[#allocation6 + $0x2e8] ss:$16 sps:$4 sm:$0xff]  }
 0x2cf   :  { %6375 = vmatprep.subr.bf16.mxu1 %v8666_v26  ;;  %v6105_v26 = vadd.f32 %v9783_v50, %v3173_v36  ;;  %v8715_v50 = vld [vmem:[#allocation6 + $0x11a0] ss:$16 sps:$4 sm:$0xff]   ;;  %v8759_v36 = vld [vmem:[#allocation6 + $0x2cc] ss:$16 sps:$4 sm:$0xff]  }
 0x2d1   :  { %6401 = vmatpush1.bf16.msra.mxu0 %v8661_v32  ;;  %v6107_v32 = vadd.f32 %v9790_v49, %v3177_v22  ;;  %v8726_v49 = vld [vmem:[#allocation6 + $0x8c] ss:$16 sps:$4 sm:$0xff]  }
 0x2d2   :  { %6402 = vmatprep.subr.bf16.mxu0 %v8669_v55  ;;  %6376 = vmatpush2.bf16.msra.mxu1 %v8664_v9  ;;  %v8720_v9 = vld [vmem:[#allocation6 + $0xac] ss:$16 sps:$4 sm:$0xff]  }
 0x2d3   :  { %6377 = vmatprep.subr.bf16.mxu1 %v8672_v5  ;;  %v8762_v22 = vld [vmem:[#allocation6 + $0x1cc] ss:$16 sps:$4 sm:$0xff]  }
 0x2d5   :  { %6403 = vmatpush1.bf16.msra.mxu0 %v8667_v17 }
 0x2d6   :  { %6404 = vmatprep.subr.bf16.mxu0 %v8675_v10  ;;  %6378 = vmatpush2.bf16.msra.mxu1 %v8670_v54  ;;  %v8723_v10 = vld [vmem:[#allocation6 + $0x1184] ss:$16 sps:$4 sm:$0xff]   ;;  %v8718_v54 = vld [vmem:[#allocation6 + $0xa8] ss:$16 sps:$4 sm:$0xff]  }
 0x2d7   :  { %6379 = vmatprep.subr.bf16.mxu1 %v8678_v47 }
 0x2d9   :  { %6405 = vmatpush1.bf16.msra.mxu0 %v8673_v20  ;;  %v8721_v20 = vld [vmem:[#allocation6 + $0x1180] ss:$16 sps:$4 sm:$0xff]  }
 0x2da   :  { %6406 = vmatprep.subr.bf16.mxu0 %v8681_v15  ;;  %6380 = vmatpush2.bf16.msra.mxu1 %v8676_v59  ;;  %v8724_v15 = vld [vmem:[#allocation6 + $0x88] ss:$16 sps:$4 sm:$0xff]   ;;  %v8732_v59 = vld [vmem:[#allocation6 + $0x6c] ss:$16 sps:$4 sm:$0xff]  }
 0x2db   :  { %6381 = vmatprep.subr.bf16.mxu1 %v8684_v62  ;;  %v8727_v62 = vld [vmem:[#allocation6 + $0x1160] ss:$16 sps:$4 sm:$0xff]  }
 0x2dd   :  { %6407 = vmatpush1.bf16.msra.mxu0 %v8679_v16  ;;  %v8735_v16 = vld [vmem:[#allocation6 + $0x1144] ss:$16 sps:$4 sm:$0xff]  }
 0x2de   :  { %6408 = vmatprep.subr.bf16.mxu0 %v8687_v18  ;;  %6382 = vmatpush2.bf16.msra.mxu1 %v8682_v2  ;;  %v8730_v18 = vld [vmem:[#allocation6 + $0x68] ss:$16 sps:$4 sm:$0xff]   ;;  %v8738_v2 = vld [vmem:[#allocation6 + $0x4c] ss:$16 sps:$4 sm:$0xff]  }
 0x2df   :  { %6383 = vmatprep.subr.bf16.mxu1 %v8690_v25  ;;  %v8733_v25 = vld [vmem:[#allocation6 + $0x1140] ss:$16 sps:$4 sm:$0xff]  }
 0x2e1   :  { %6409 = vmatpush1.bf16.msra.mxu0 %v8685_v28  ;;  %v8741_v28 = vld [vmem:[#allocation6 + $0x1124] ss:$16 sps:$4 sm:$0xff]  }
 0x2e2   :  { %6410 = vmatprep.subr.bf16.mxu0 %v8693_v44  ;;  %6384 = vmatpush2.bf16.msra.mxu1 %v8688_v34  ;;  %v8736_v44 = vld [vmem:[#allocation6 + $0x48] ss:$16 sps:$4 sm:$0xff]   ;;  %v8744_v34 = vld [vmem:[#allocation6 + $0x2c] ss:$16 sps:$4 sm:$0xff]  }
 0x2e3   :  { %6385 = vmatprep.subr.bf16.mxu1 %v8696_v35  ;;  %v8739_v35 = vld [vmem:[#allocation6 + $0x1120] ss:$16 sps:$4 sm:$0xff]  }
 0x2e5   :  { %6411 = vmatpush1.bf16.msra.mxu0 %v8691_v40  ;;  %v8747_v40 = vld [vmem:[#allocation6 + $0x1104] ss:$16 sps:$4 sm:$0xff]  }
 0x2e6   :  { %6412 = vmatprep.subr.bf16.mxu0 %v8699_v19  ;;  %6386 = vmatpush2.bf16.msra.mxu1 %v8694_v13  ;;  %v8742_v19 = vld [vmem:[#allocation6 + $0x28] ss:$16 sps:$4 sm:$0xff]   ;;  %v8750_v13 = vld [vmem:[#allocation6 + $0xc] ss:$16 sps:$4 sm:$0xff]  }
 0x2e7   :  { %6387 = vmatprep.subr.bf16.mxu1 %v8702_v39  ;;  %v8745_v39 = vld [vmem:[#allocation6 + $0x1100] ss:$16 sps:$4 sm:$0xff]  }
 0x2e9   :  { %6413 = vmatpush1.bf16.msra.mxu0 %v8697_v3  ;;  %v2574_v3 = vmax.f32 %v9721_v1, %v9817_v14  ;;  %v8757_v14 = vld [vmem:[#allocation6 + $0x2c8] ss:$16 sps:$4 sm:$0xff]  }
 0x2ea   :  { %6414 = vmatprep.subr.bf16.mxu0 %v8705_v12  ;;  %6388 = vmatpush2.bf16.msra.mxu1 %v8700_v38  ;;  %v8748_v12 = vld [vmem:[#allocation6 + $0x8] ss:$16 sps:$4 sm:$0xff]   ;;  %v8756_v38 = vld [vmem:[#allocation6 + $0x1ec] ss:$16 sps:$4 sm:$0xff]  }
 0x2eb   :  { %6439 = vmatprep.subr.bf16.mxu1 %v8708_v56  ;;  %v9852_v56 = vpack.c.bf16 %v2574_v3, %v2574_v3 }
 0x2ed   :  { %6415 = vmatpush2.bf16.msra.mxu0 %v8703_v52  ;;  %6390 = vmatmul.mubr.bf16.vlgmr.msra.gmra.mxu1 %v9840_v37  ;;  %v6145_v0 = vpop.f32.mrf.mxu1  ;;  %v8754_v52 = vld [vmem:[#allocation6 + $0x1e8] ss:$16 sps:$4 sm:$0xff]  }
 0x2ee   :  { %6416 = vmatprep.subr.bf16.mxu0 %v8711_v45  ;;  %v9845_v41 = vadd.f32 %v6145_v0, %v6105_v26  ;;  %6440 = vmatpush1.bf16.msra.mxu1 %v8706_v6 }
 0x2ef   :  { %6471 = vmatprep.mubr.bf16.mxu1 %v9562_v53  ;;  %v6147_v55 = vpop.f32.mrf.mxu1  ;;  %6441 = vmatprep.subr.bf16.mxu1 %v8714_v21  ;;  %v8729_v53 = vld [vmem:[#allocation6 + $0x1164] ss:$16 sps:$4 sm:$0xff]   ;;  %v8765_v21 = vld [vmem:[#allocation6 + $0x2ac] ss:$16 sps:$4 sm:$0xff]  }
 0x2f0   :  { %v9848_v5 = vadd.f32 %v6147_v55, %v6107_v32  ;;  %v8763_v32 = vld [vmem:[#allocation6 + $0x2a8] ss:$16 sps:$4 sm:$0xff]  }
 0x2f1   :  { %6417 = vmatpush2.bf16.msra.mxu0 %v8709_v27  ;;  %v6149_v17 = vpop.f32.mrf.mxu1  ;;  %v8760_v27 = vld [vmem:[#allocation6 + $0x1c8] ss:$16 sps:$4 sm:$0xff]  }
 0x2f2   :  { %6418 = vmatprep.subr.bf16.mxu0 %v8717_v24  ;;  %6442 = vmatpush1.bf16.msra.mxu1 %v8712_v31  ;;  %v8768_v24 = vld [vmem:[#allocation6 + $0x1ac] ss:$16 sps:$4 sm:$0xff]   ;;  %v8766_v55 = vld [vmem:[#allocation6 + $0x1a8] ss:$16 sps:$4 sm:$0xff]  }
 0x2f3   :  { %v6150_v47 = vpop.f32.mrf.mxu1  ;;  %6443 = vmatprep.subr.bf16.mxu1 %v8720_v9  ;;  %v8769_v9 = vld [vmem:[#allocation6 + $0x288] ss:$16 sps:$4 sm:$0xff]   ;;  %v8780_v17 = vld [vmem:[#allocation6 + $0x16c] ss:$16 sps:$4 sm:$0xff]  }
 0x2f4   :  { %v8778_v47 = vld [vmem:[#allocation6 + $0x168] ss:$16 sps:$4 sm:$0xff]  }
 0x2f5   :  { %6419 = vmatpush2.bf16.msra.mxu0 %v8715_v50  ;;  %v8777_v50 = vld [vmem:[#allocation6 + $0x26c] ss:$16 sps:$4 sm:$0xff]  }
 0x2f6   :  { %6420 = vmatprep.subr.bf16.mxu0 %v8723_v10  ;;  %6444 = vmatpush1.bf16.msra.mxu1 %v8718_v54  ;;  %v8775_v10 = vld [vmem:[#allocation6 + $0x268] ss:$16 sps:$4 sm:$0xff]   ;;  %v8783_v54 = vld [vmem:[#allocation6 + $0x24c] ss:$16 sps:$4 sm:$0xff]  }
 0x2f7   :  { %6445 = vmatprep.subr.bf16.mxu1 %v8726_v49  ;;  %v8786_v49 = vld [vmem:[#allocation6 + $0x14c] ss:$16 sps:$4 sm:$0xff]  }
 0x2f9   :  { %6421 = vmatpush2.bf16.msra.mxu0 %v8721_v20  ;;  %v8781_v20 = vld [vmem:[#allocation6 + $0x248] ss:$16 sps:$4 sm:$0xff]  }
 0x2fa   :  { %6422 = vmatprep.subr.bf16.mxu0 %v8729_v53  ;;  %6446 = vmatpush1.bf16.msra.mxu1 %v8724_v15  ;;  %v8789_v53 = vld [vmem:[#allocation6 + $0x22c] ss:$16 sps:$4 sm:$0xff]   ;;  %v8784_v15 = vld [vmem:[#allocation6 + $0x148] ss:$16 sps:$4 sm:$0xff]  }
 0x2fb   :  { %6447 = vmatprep.subr.bf16.mxu1 %v8732_v59  ;;  %v8792_v59 = vld [vmem:[#allocation6 + $0x12c] ss:$16 sps:$4 sm:$0xff]  }
 0x2fd   :  { %6423 = vmatpush2.bf16.msra.mxu0 %v8727_v62  ;;  %v8787_v62 = vld [vmem:[#allocation6 + $0x228] ss:$16 sps:$4 sm:$0xff]  }
 0x2fe   :  { %6424 = vmatprep.subr.bf16.mxu0 %v8735_v16  ;;  %6448 = vmatpush1.bf16.msra.mxu1 %v8730_v18  ;;  %v8795_v16 = vld [vmem:[#allocation6 + $0x20c] ss:$16 sps:$4 sm:$0xff]   ;;  %v8790_v18 = vld [vmem:[#allocation6 + $0x128] ss:$16 sps:$4 sm:$0xff]  }
 0x2ff   :  { %6449 = vmatprep.subr.bf16.mxu1 %v8738_v2  ;;  %v8798_v2 = vld [vmem:[#allocation6 + $0x10c] ss:$16 sps:$4 sm:$0xff]  }
 0x301   :  { %6425 = vmatpush2.bf16.msra.mxu0 %v8733_v25  ;;  %v8793_v25 = vld [vmem:[#allocation6 + $0x208] ss:$16 sps:$4 sm:$0xff]  }
 0x302   :  { %6426 = vmatprep.subr.bf16.mxu0 %v8741_v28  ;;  %6450 = vmatpush1.bf16.msra.mxu1 %v8736_v44  ;;  %v8801_v28 = vld [vmem:[#allocation6 + $0x3ec] ss:$16 sps:$4 sm:$0xff]   ;;  %v8796_v44 = vld [vmem:[#allocation6 + $0x108] ss:$16 sps:$4 sm:$0xff]  }
 0x303   :  { %6451 = vmatprep.subr.bf16.mxu1 %v8744_v34  ;;  %v8804_v34 = vld [vmem:[#allocation6 + $0x4ec] ss:$16 sps:$4 sm:$0xff]  }
 0x305   :  { %6427 = vmatpush2.bf16.msra.mxu0 %v8739_v35  ;;  %v8799_v35 = vld [vmem:[#allocation6 + $0x3e8] ss:$16 sps:$4 sm:$0xff]  }
 0x306   :  { %6428 = vmatprep.subr.bf16.mxu0 %v8747_v40  ;;  %6452 = vmatpush1.bf16.msra.mxu1 %v8742_v19  ;;  %v8807_v40 = vld [vmem:[#allocation6 + $0x3cc] ss:$16 sps:$4 sm:$0xff]   ;;  %v8802_v19 = vld [vmem:[#allocation6 + $0x4e8] ss:$16 sps:$4 sm:$0xff]  }
 0x307   :  { %6453 = vmatprep.subr.bf16.mxu1 %v8750_v13  ;;  %v8810_v13 = vld [vmem:[#allocation6 + $0x4cc] ss:$16 sps:$4 sm:$0xff]  }
 0x309   :  { %6429 = vmatpush2.bf16.msra.mxu0 %v8745_v39  ;;  %v8805_v39 = vld [vmem:[#allocation6 + $0x3c8] ss:$16 sps:$4 sm:$0xff]  }
 0x30a   :  { %6480 = vmatprep.subr.bf16.mxu0 %v8753_v58  ;;  %6454 = vmatpush1.bf16.msra.mxu1 %v8748_v12  ;;  %v8813_v58 = vld [vmem:[#allocation6 + $0x3ac] ss:$16 sps:$4 sm:$0xff]  }
 0x30b   :  { %6455 = vmatprep.subr.bf16.mxu1 %v8756_v38  ;;  %v8808_v38 = vld [vmem:[#allocation6 + $0x4c8] ss:$16 sps:$4 sm:$0xff]  }
 0x30c   :  { %6431 = vmatmul.mubr.bf16.vlgmr.msra.gmra.mxu0 %v9852_v56  ;;  %v6186_v45 = vpop.f32.mrf.mxu0 }
 0x30d   :  { %v9856_v1 = vadd.f32 %v6186_v45, %v9845_v41  ;;  %6481 = vmatpush1.bf16.msra.mxu0 %v8751_v51  ;;  %6512 = vmatprep.mubr.bf16.mxu0 %v9714_v48  ;;  %v8771_v41 = vld [vmem:[#allocation6 + $0x28c] ss:$16 sps:$4 sm:$0xff]   ;;  %v8811_v45 = vld [vmem:[#allocation6 + $0x3a8] ss:$16 sps:$4 sm:$0xff]  }
 0x30e   :  { %v6188_v6 = vpop.f32.mrf.mxu0  ;;  %6482 = vmatprep.subr.bf16.mxu0 %v8759_v36  ;;  %6456 = vmatpush2.bf16.msra.mxu1 %v8754_v52  ;;  %v8774_v48 = vld [vmem:[#allocation6 + $0x18c] ss:$16 sps:$4 sm:$0xff]  }
 0x30f   :  { %v9860_v26 = vadd.f32 %v6188_v6, %v9848_v5  ;;  %6457 = vmatprep.subr.bf16.mxu1 %v8762_v22  ;;  %v8772_v5 = vld [vmem:[#allocation6 + $0x188] ss:$16 sps:$4 sm:$0xff]   ;;  %v8816_v36 = vld [vmem:[#allocation6 + $0x4ac] ss:$16 sps:$4 sm:$0xff]  }
 0x310   :  { %v6190_v0 = vpop.f32.mrf.mxu0 }
 0x311   :  { %6483 = vmatpush1.bf16.msra.mxu0 %v8757_v14  ;;  %v8814_v14 = vld [vmem:[#allocation6 + $0x4a8] ss:$16 sps:$4 sm:$0xff]   ;;  %v8828_v0 = vld [vmem:[#allocation6 + $0x46c] ss:$16 sps:$4 sm:$0xff]  }
 0x312   :  { %v6191_v31 = vpop.f32.mrf.mxu0  ;;  %6484 = vmatprep.subr.bf16.mxu0 %v8765_v21  ;;  %6458 = vmatpush2.bf16.msra.mxu1 %v8760_v27  ;;  %v8817_v21 = vld [vmem:[#allocation6 + $0x388] ss:$16 sps:$4 sm:$0xff]  }
 0x313   :  { %6459 = vmatprep.subr.bf16.mxu1 %v8768_v24  ;;  %v8820_v27 = vld [vmem:[#allocation6 + $0x488] ss:$16 sps:$4 sm:$0xff]   ;;  %v8831_v24 = vld [vmem:[#allocation6 + $0x34c] ss:$16 sps:$4 sm:$0xff]  }
 0x314   :  { %v8834_v31 = vld [vmem:[#allocation6 + $0x44c] ss:$16 sps:$4 sm:$0xff]  }
 0x315   :  { %6485 = vmatpush1.bf16.msra.mxu0 %v8763_v32  ;;  %v8826_v32 = vld [vmem:[#allocation6 + $0x468] ss:$16 sps:$4 sm:$0xff]  }
 0x316   :  { %6486 = vmatprep.subr.bf16.mxu0 %v8771_v41  ;;  %6460 = vmatpush2.bf16.msra.mxu1 %v8766_v55  ;;  %v8829_v41 = vld [vmem:[#allocation6 + $0x348] ss:$16 sps:$4 sm:$0xff]   ;;  %v8837_v55 = vld [vmem:[#allocation6 + $0x32c] ss:$16 sps:$4 sm:$0xff]  }
 0x317   :  { %6461 = vmatprep.subr.bf16.mxu1 %v8774_v48  ;;  %v8832_v48 = vld [vmem:[#allocation6 + $0x448] ss:$16 sps:$4 sm:$0xff]  }
 0x319   :  { %6487 = vmatpush1.bf16.msra.mxu0 %v8769_v9  ;;  %v8840_v9 = vld [vmem:[#allocation6 + $0x42c] ss:$16 sps:$4 sm:$0xff]  }
 0x31a   :  { %6488 = vmatprep.subr.bf16.mxu0 %v8777_v50  ;;  %6462 = vmatpush2.bf16.msra.mxu1 %v8772_v5  ;;  %v8835_v50 = vld [vmem:[#allocation6 + $0x328] ss:$16 sps:$4 sm:$0xff]   ;;  %v8843_v5 = vld [vmem:[#allocation6 + $0x30c] ss:$16 sps:$4 sm:$0xff]  }
 0x31b   :  { %6463 = vmatprep.subr.bf16.mxu1 %v8780_v17  ;;  %v8838_v17 = vld [vmem:[#allocation6 + $0x428] ss:$16 sps:$4 sm:$0xff]  }
 0x31d   :  { %6489 = vmatpush1.bf16.msra.mxu0 %v8775_v10  ;;  %v8846_v10 = vld [vmem:[#allocation6 + $0x40c] ss:$16 sps:$4 sm:$0xff]  }
 0x31e   :  { %6490 = vmatprep.subr.bf16.mxu0 %v8783_v54  ;;  %6464 = vmatpush2.bf16.msra.mxu1 %v8778_v47  ;;  %v8841_v54 = vld [vmem:[#allocation6 + $0x308] ss:$16 sps:$4 sm:$0xff]   ;;  %v8849_v47 = vld [vmem:[#allocation6 + $0x6ec] ss:$16 sps:$4 sm:$0xff]  }
 0x31f   :  { %6465 = vmatprep.subr.bf16.mxu1 %v8786_v49  ;;  %v8844_v49 = vld [vmem:[#allocation6 + $0x408] ss:$16 sps:$4 sm:$0xff]  }
 0x321   :  { %6491 = vmatpush1.bf16.msra.mxu0 %v8781_v20  ;;  %v8852_v20 = vld [vmem:[#allocation6 + $0x5ec] ss:$16 sps:$4 sm:$0xff]  }
 0x322   :  { %6492 = vmatprep.subr.bf16.mxu0 %v8789_v53  ;;  %6466 = vmatpush2.bf16.msra.mxu1 %v8784_v15  ;;  %v8847_v53 = vld [vmem:[#allocation6 + $0x6e8] ss:$16 sps:$4 sm:$0xff]   ;;  %v8855_v15 = vld [vmem:[#allocation6 + $0x6cc] ss:$16 sps:$4 sm:$0xff]  }
 0x323   :  { %6467 = vmatprep.subr.bf16.mxu1 %v8792_v59  ;;  %v8850_v59 = vld [vmem:[#allocation6 + $0x5e8] ss:$16 sps:$4 sm:$0xff]  }
 0x325   :  { %6493 = vmatpush1.bf16.msra.mxu0 %v8787_v62 }
 0x326   :  { %6494 = vmatprep.subr.bf16.mxu0 %v8795_v16  ;;  %6468 = vmatpush2.bf16.msra.mxu1 %v8790_v18  ;;  %v8858_v16 = vld [vmem:[#allocation6 + $0x5cc] ss:$16 sps:$4 sm:$0xff]  }
 0x327   :  { %6469 = vmatprep.subr.bf16.mxu1 %v8798_v2  ;;  %v8853_v2 = vld [vmem:[#allocation6 + $0x6c8] ss:$16 sps:$4 sm:$0xff]  }
 0x329   :  { %6495 = vmatpush1.bf16.msra.mxu0 %v8793_v25 }
 0x32a   :  { %6496 = vmatprep.subr.bf16.mxu0 %v8801_v28  ;;  %6470 = vmatpush2.bf16.msra.mxu1 %v8796_v44  ;;  %v8861_v28 = vld [vmem:[#allocation6 + $0x6ac] ss:$16 sps:$4 sm:$0xff]  }
 0x32b   :  { %6521 = vmatprep.subr.bf16.mxu1 %v8804_v34  ;;  %v8856_v34 = vld [vmem:[#allocation6 + $0x5c8] ss:$16 sps:$4 sm:$0xff]  }
 0x32d   :  { %6497 = vmatpush2.bf16.msra.mxu0 %v8799_v35  ;;  %v6227_v3 = vpop.f32.mrf.mxu1  ;;  %6472 = vmatmul.mubr.bf16.vlgmr.msra.gmra.mxu1 %v9598_v42  ;;  %v8819_v42 = vld [vmem:[#allocation6 + $0x38c] ss:$16 sps:$4 sm:$0xff]  }
 0x32e   :  { %6498 = vmatprep.subr.bf16.mxu0 %v8807_v40  ;;  %v9864_v12 = vadd.f32 %v6227_v3, %v9856_v1  ;;  %6522 = vmatpush1.bf16.msra.mxu1 %v8802_v19  ;;  %v8822_v1 = vld [vmem:[#allocation6 + $0x48c] ss:$16 sps:$4 sm:$0xff]   ;;  %v8859_v40 = vld [vmem:[#allocation6 + $0x6a8] ss:$16 sps:$4 sm:$0xff]  }
 0x32f   :  { %6553 = vmatprep.mubr.bf16.mxu1 %v9742_v30  ;;  %v6229_v51 = vpop.f32.mrf.mxu1  ;;  %6523 = vmatprep.subr.bf16.mxu1 %v8810_v13  ;;  %v8825_v30 = vld [vmem:[#allocation6 + $0x36c] ss:$16 sps:$4 sm:$0xff]   ;;  %v8865_v3 = vld [vmem:[#allocation6 + $0x688] ss:$16 sps:$4 sm:$0xff]  }
 0x330   :  { %v9868_v52 = vadd.f32 %v6229_v51, %v9860_v26  ;;  %v8823_v26 = vld [vmem:[#allocation6 + $0x368] ss:$16 sps:$4 sm:$0xff]   ;;  %v8867_v13 = vld [vmem:[#allocation6 + $0x68c] ss:$16 sps:$4 sm:$0xff]  }
 0x331   :  { %6499 = vmatpush2.bf16.msra.mxu0 %v8805_v39  ;;  %v6231_v22 = vpop.f32.mrf.mxu1  ;;  %v8862_v39 = vld [vmem:[#allocation6 + $0x5a8] ss:$16 sps:$4 sm:$0xff]  }
 0x332   :  { %6500 = vmatprep.subr.bf16.mxu0 %v8813_v58  ;;  %6524 = vmatpush1.bf16.msra.mxu1 %v8808_v38  ;;  %v8873_v58 = vld [vmem:[#allocation6 + $0x66c] ss:$16 sps:$4 sm:$0xff]   ;;  %v8871_v51 = vld [vmem:[#allocation6 + $0x668] ss:$16 sps:$4 sm:$0xff]  }
 0x333   :  { %v6232_v6 = vpop.f32.mrf.mxu1  ;;  %6525 = vmatprep.subr.bf16.mxu1 %v8816_v36  ;;  %v8876_v38 = vld [vmem:[#allocation6 + $0x56c] ss:$16 sps:$4 sm:$0xff]   ;;  %v8877_v22 = vld [vmem:[#allocation6 + $0x648] ss:$16 sps:$4 sm:$0xff]  }
 0x334   :  { %v8879_v36 = vld [vmem:[#allocation6 + $0x64c] ss:$16 sps:$4 sm:$0xff]  }
 0x335   :  { %6501 = vmatpush2.bf16.msra.mxu0 %v8811_v45  ;;  %v8882_v45 = vld [vmem:[#allocation6 + $0x54c] ss:$16 sps:$4 sm:$0xff]  }
 0x336   :  { %6502 = vmatprep.subr.bf16.mxu0 %v8819_v42  ;;  %6526 = vmatpush1.bf16.msra.mxu1 %v8814_v14  ;;  %v8885_v42 = vld [vmem:[#allocation6 + $0x62c] ss:$16 sps:$4 sm:$0xff]   ;;  %v8880_v14 = vld [vmem:[#allocation6 + $0x548] ss:$16 sps:$4 sm:$0xff]  }
 0x337   :  { %6527 = vmatprep.subr.bf16.mxu1 %v8822_v1  ;;  %v8888_v6 = vld [vmem:[#allocation6 + $0x52c] ss:$16 sps:$4 sm:$0xff]   ;;  %v8883_v1 = vld [vmem:[#allocation6 + $0x628] ss:$16 sps:$4 sm:$0xff]  }
 0x339   :  { %6503 = vmatpush2.bf16.msra.mxu0 %v8817_v21  ;;  %v8891_v21 = vld [vmem:[#allocation6 + $0x60c] ss:$16 sps:$4 sm:$0xff]  }
 0x33a   :  { %6504 = vmatprep.subr.bf16.mxu0 %v8825_v30  ;;  %6528 = vmatpush1.bf16.msra.mxu1 %v8820_v27  ;;  %v8886_v30 = vld [vmem:[#allocation6 + $0x528] ss:$16 sps:$4 sm:$0xff]   ;;  %v8894_v27 = vld [vmem:[#allocation6 + $0x50c] ss:$16 sps:$4 sm:$0xff]  }
 0x33b   :  { %6529 = vmatprep.subr.bf16.mxu1 %v8828_v0  ;;  %v8889_v0 = vld [vmem:[#allocation6 + $0x608] ss:$16 sps:$4 sm:$0xff]  }
 0x33d   :  { %6505 = vmatpush2.bf16.msra.mxu0 %v8823_v26  ;;  %v8897_v26 = vld [vmem:[#allocation6 + $0x7ec] ss:$16 sps:$4 sm:$0xff]  }
 0x33e   :  { %6506 = vmatprep.subr.bf16.mxu0 %v8831_v24  ;;  %6530 = vmatpush1.bf16.msra.mxu1 %v8826_v32  ;;  %v8892_v24 = vld [vmem:[#allocation6 + $0x508] ss:$16 sps:$4 sm:$0xff]   ;;  %v8900_v32 = vld [vmem:[#allocation6 + $0x8ec] ss:$16 sps:$4 sm:$0xff]  }
 0x33f   :  { %6531 = vmatprep.subr.bf16.mxu1 %v8834_v31  ;;  %v8895_v31 = vld [vmem:[#allocation6 + $0x7e8] ss:$16 sps:$4 sm:$0xff]  }
 0x341   :  { %6507 = vmatpush2.bf16.msra.mxu0 %v8829_v41  ;;  %v8903_v41 = vld [vmem:[#allocation6 + $0x7cc] ss:$16 sps:$4 sm:$0xff]  }
 0x342   :  { %6508 = vmatprep.subr.bf16.mxu0 %v8837_v55  ;;  %6532 = vmatpush1.bf16.msra.mxu1 %v8832_v48  ;;  %v8898_v55 = vld [vmem:[#allocation6 + $0x8e8] ss:$16 sps:$4 sm:$0xff]   ;;  %v8906_v48 = vld [vmem:[#allocation6 + $0x8cc] ss:$16 sps:$4 sm:$0xff]  }
 0x343   :  { %6533 = vmatprep.subr.bf16.mxu1 %v8840_v9  ;;  %v8901_v9 = vld [vmem:[#allocation6 + $0x7c8] ss:$16 sps:$4 sm:$0xff]  }
 0x345   :  { %6509 = vmatpush2.bf16.msra.mxu0 %v8835_v50 }
 0x346   :  { %6510 = vmatprep.subr.bf16.mxu0 %v8843_v5  ;;  %6534 = vmatpush1.bf16.msra.mxu1 %v8838_v17  ;;  %v8909_v5 = vld [vmem:[#allocation6 + $0x7ac] ss:$16 sps:$4 sm:$0xff]  }
 0x347   :  { %6535 = vmatprep.subr.bf16.mxu1 %v8846_v10  ;;  %v8904_v10 = vld [vmem:[#allocation6 + $0x8c8] ss:$16 sps:$4 sm:$0xff]  }
 0x349   :  { %6511 = vmatpush2.bf16.msra.mxu0 %v8841_v54 }
 0x34a   :  { %6562 = vmatprep.subr.bf16.mxu0 %v8849_v47  ;;  %6536 = vmatpush1.bf16.msra.mxu1 %v8844_v49  ;;  %v8912_v47 = vld [vmem:[#allocation6 + $0x8ac] ss:$16 sps:$4 sm:$0xff]  }
 0x34b   :  { %6537 = vmatprep.subr.bf16.mxu1 %v8852_v20  ;;  %v8907_v20 = vld [vmem:[#allocation6 + $0x7a8] ss:$16 sps:$4 sm:$0xff]  }
 0x34c   :  { %v6268_v62 = vpop.f32.mrf.mxu0  ;;  %6513 = vmatmul.mubr.bf16.vlgmr.msra.gmra.mxu0 %v9716_v61  ;;  %v8864_v61 = vld [vmem:[#allocation6 + $0x5ac] ss:$16 sps:$4 sm:$0xff]  }
 0x34d   :  { %v9872_v18 = vadd.f32 %v6268_v62, %v9864_v12  ;;  %6563 = vmatpush1.bf16.msra.mxu0 %v8847_v53  ;;  %6594 = vmatprep.mubr.bf16.mxu0 %v9755_v43  ;;  %v8870_v43 = vld [vmem:[#allocation6 + $0x58c] ss:$16 sps:$4 sm:$0xff]   ;;  %v8868_v12 = vld [vmem:[#allocation6 + $0x588] ss:$16 sps:$4 sm:$0xff]  }
 0x34e   :  { %v6270_v25 = vpop.f32.mrf.mxu0  ;;  %6564 = vmatprep.subr.bf16.mxu0 %v8855_v15  ;;  %6538 = vmatpush2.bf16.msra.mxu1 %v8850_v59  ;;  %v8910_v15 = vld [vmem:[#allocation6 + $0x8a8] ss:$16 sps:$4 sm:$0xff]   ;;  %v8918_v62 = vld [vmem:[#allocation6 + $0x88c] ss:$16 sps:$4 sm:$0xff]  }
 0x34f   :  { %v9876_v44 = vadd.f32 %v6270_v25, %v9868_v52  ;;  %6539 = vmatprep.subr.bf16.mxu1 %v8858_v16  ;;  %v8874_v52 = vld [vmem:[#allocation6 + $0x568] ss:$16 sps:$4 sm:$0xff]  }
 0x350   :  { %v6272_v35 = vpop.f32.mrf.mxu0  ;;  %v8913_v16 = vld [vmem:[#allocation6 + $0x788] ss:$16 sps:$4 sm:$0xff]  }
 0x351   :  { %6565 = vmatpush1.bf16.msra.mxu0 %v8853_v2  ;;  %v8924_v2 = vld [vmem:[#allocation6 + $0x86c] ss:$16 sps:$4 sm:$0xff]   ;;  %v8919_v25 = vld [vmem:[#allocation6 + $0x768] ss:$16 sps:$4 sm:$0xff]  }
 0x352   :  { %v6273_v19 = vpop.f32.mrf.mxu0  ;;  %6566 = vmatprep.subr.bf16.mxu0 %v8861_v28  ;;  %6540 = vmatpush2.bf16.msra.mxu1 %v8856_v34  ;;  %v8927_v28 = vld [vmem:[#allocation6 + $0x74c] ss:$16 sps:$4 sm:$0xff]   ;;  %v8925_v35 = vld [vmem:[#allocation6 + $0x748] ss:$16 sps:$4 sm:$0xff]  }
 0x353   :  { %6541 = vmatprep.subr.bf16.mxu1 %v8864_v61  ;;  %v8930_v34 = vld [vmem:[#allocation6 + $0x84c] ss:$16 sps:$4 sm:$0xff]  }
 0x354   :  { %v8933_v61 = vld [vmem:[#allocation6 + $0x72c] ss:$16 sps:$4 sm:$0xff]  }
 0x355   :  { %6567 = vmatpush1.bf16.msra.mxu0 %v8859_v40  ;;  %v8928_v40 = vld [vmem:[#allocation6 + $0x848] ss:$16 sps:$4 sm:$0xff]   ;;  %v8936_v19 = vld [vmem:[#allocation6 + $0x82c] ss:$16 sps:$4 sm:$0xff]  }
 0x356   :  { %6568 = vmatprep.subr.bf16.mxu0 %v8867_v13  ;;  %6542 = vmatpush2.bf16.msra.mxu1 %v8862_v39  ;;  %v8931_v13 = vld [vmem:[#allocation6 + $0x728] ss:$16 sps:$4 sm:$0xff]   ;;  %v8939_v39 = vld [vmem:[#allocation6 + $0x70c] ss:$16 sps:$4 sm:$0xff]  }
 0x357   :  { %6543 = vmatprep.subr.bf16.mxu1 %v8870_v43  ;;  %v8934_v43 = vld [vmem:[#allocation6 + $0x828] ss:$16 sps:$4 sm:$0xff]  }
 0x359   :  { %6569 = vmatpush1.bf16.msra.mxu0 %v8865_v3  ;;  %v8942_v3 = vld [vmem:[#allocation6 + $0x80c] ss:$16 sps:$4 sm:$0xff]  }
 0x35a   :  { %6570 = vmatprep.subr.bf16.mxu0 %v8873_v58  ;;  %6544 = vmatpush2.bf16.msra.mxu1 %v8868_v12  ;;  %v8937_v58 = vld [vmem:[#allocation6 + $0x708] ss:$16 sps:$4 sm:$0xff]   ;;  %v8945_v12 = vld [vmem:[#allocation6 + $0xaec] ss:$16 sps:$4 sm:$0xff]  }
 0x35b   :  { %6545 = vmatprep.subr.bf16.mxu1 %v8876_v38  ;;  %v8940_v38 = vld [vmem:[#allocation6 + $0x808] ss:$16 sps:$4 sm:$0xff]  }
 0x35d   :  { %6571 = vmatpush1.bf16.msra.mxu0 %v8871_v51  ;;  %v8948_v51 = vld [vmem:[#allocation6 + $0x9ec] ss:$16 sps:$4 sm:$0xff]  }
 0x35e   :  { %6572 = vmatprep.subr.bf16.mxu0 %v8879_v36  ;;  %6546 = vmatpush2.bf16.msra.mxu1 %v8874_v52  ;;  %v8943_v36 = vld [vmem:[#allocation6 + $0xae8] ss:$16 sps:$4 sm:$0xff]   ;;  %v8951_v52 = vld [vmem:[#allocation6 + $0xacc] ss:$16 sps:$4 sm:$0xff]  }
 0x35f   :  { %6547 = vmatprep.subr.bf16.mxu1 %v8882_v45  ;;  %v8946_v45 = vld [vmem:[#allocation6 + $0x9e8] ss:$16 sps:$4 sm:$0xff]  }
 0x361   :  { %6573 = vmatpush1.bf16.msra.mxu0 %v8877_v22 }
 0x362   :  { %6574 = vmatprep.subr.bf16.mxu0 %v8885_v42  ;;  %6548 = vmatpush2.bf16.msra.mxu1 %v8880_v14  ;;  %v8954_v42 = vld [vmem:[#allocation6 + $0x9cc] ss:$16 sps:$4 sm:$0xff]  }
 0x363   :  { %6549 = vmatprep.subr.bf16.mxu1 %v8888_v6  ;;  %v8949_v6 = vld [vmem:[#allocation6 + $0xac8] ss:$16 sps:$4 sm:$0xff]  }
 0x365   :  { %6575 = vmatpush1.bf16.msra.mxu0 %v8883_v1 }
 0x366   :  { %6576 = vmatprep.subr.bf16.mxu0 %v8891_v21  ;;  %6550 = vmatpush2.bf16.msra.mxu1 %v8886_v30  ;;  %v8957_v21 = vld [vmem:[#allocation6 + $0xaac] ss:$16 sps:$4 sm:$0xff]  }
 0x367   :  { %6551 = vmatprep.subr.bf16.mxu1 %v8894_v27  ;;  %v8952_v27 = vld [vmem:[#allocation6 + $0x9c8] ss:$16 sps:$4 sm:$0xff]  }
 0x369   :  { %6577 = vmatpush1.bf16.msra.mxu0 %v8889_v0 }
 0x36a   :  { %6578 = vmatprep.subr.bf16.mxu0 %v8897_v26  ;;  %6552 = vmatpush2.bf16.msra.mxu1 %v8892_v24  ;;  %v8955_v26 = vld [vmem:[#allocation6 + $0xaa8] ss:$16 sps:$4 sm:$0xff]  }
 0x36b   :  { %6603 = vmatprep.subr.bf16.mxu1 %v8900_v32  ;;  %v8963_v32 = vld [vmem:[#allocation6 + $0xa8c] ss:$16 sps:$4 sm:$0xff]  }
 0x36d   :  { %6579 = vmatpush2.bf16.msra.mxu0 %v8895_v31  ;;  %v6309_v50 = vpop.f32.mrf.mxu1  ;;  %6554 = vmatmul.mubr.bf16.vlgmr.msra.gmra.mxu1 %v9744_v46  ;;  %v8915_v46 = vld [vmem:[#allocation6 + $0x78c] ss:$16 sps:$4 sm:$0xff]   ;;  %v8958_v31 = vld [vmem:[#allocation6 + $0x9a8] ss:$16 sps:$4 sm:$0xff]  }
 0x36e   :  { %6580 = vmatprep.subr.bf16.mxu0 %v8903_v41  ;;  %v9880_v17 = vadd.f32 %v6309_v50, %v9872_v18  ;;  %6604 = vmatpush1.bf16.msra.mxu1 %v8898_v55  ;;  %v8916_v18 = vld [vmem:[#allocation6 + $0x888] ss:$16 sps:$4 sm:$0xff]   ;;  %v8969_v55 = vld [vmem:[#allocation6 + $0xa6c] ss:$16 sps:$4 sm:$0xff]  }
 0x36f   :  { %6635 = vmatprep.mubr.bf16.mxu1 %v9787_v11  ;;  %v6311_v54 = vpop.f32.mrf.mxu1  ;;  %6605 = vmatprep.subr.bf16.mxu1 %v8906_v48  ;;  %v8921_v11 = vld [vmem:[#allocation6 + $0x76c] ss:$16 sps:$4 sm:$0xff]   ;;  %v8961_v41 = vld [vmem:[#allocation6 + $0xa88] ss:$16 sps:$4 sm:$0xff]  }
 0x370   :  { %v9884_v49 = vadd.f32 %v6311_v54, %v9876_v44  ;;  %v8922_v44 = vld [vmem:[#allocation6 + $0x868] ss:$16 sps:$4 sm:$0xff]  }
 0x371   :  { %6581 = vmatpush2.bf16.msra.mxu0 %v8901_v9  ;;  %v6313_v53 = vpop.f32.mrf.mxu1  ;;  %v8964_v48 = vld [vmem:[#allocation6 + $0x988] ss:$16 sps:$4 sm:$0xff]   ;;  %v8972_v9 = vld [vmem:[#allocation6 + $0x96c] ss:$16 sps:$4 sm:$0xff]  }
 0x372   :  { %6582 = vmatprep.subr.bf16.mxu0 %v8909_v5  ;;  %6606 = vmatpush1.bf16.msra.mxu1 %v8904_v10  ;;  %v8967_v50 = vld [vmem:[#allocation6 + $0xa68] ss:$16 sps:$4 sm:$0xff]   ;;  %v8975_v5 = vld [vmem:[#allocation6 + $0xa4c] ss:$16 sps:$4 sm:$0xff]  }
 0x373   :  { %v6314_v59 = vpop.f32.mrf.mxu1  ;;  %6607 = vmatprep.subr.bf16.mxu1 %v8912_v47  ;;  %v8978_v10 = vld [vmem:[#allocation6 + $0x94c] ss:$16 sps:$4 sm:$0xff]   ;;  %v8973_v54 = vld [vmem:[#allocation6 + $0xa48] ss:$16 sps:$4 sm:$0xff]  }
 0x374   :  { %v8981_v47 = vld [vmem:[#allocation6 + $0xa2c] ss:$16 sps:$4 sm:$0xff]   ;;  %v8979_v53 = vld [vmem:[#allocation6 + $0xa28] ss:$16 sps:$4 sm:$0xff]  }
 0x375   :  { %6583 = vmatpush2.bf16.msra.mxu0 %v8907_v20  ;;  %v8984_v20 = vld [vmem:[#allocation6 + $0x92c] ss:$16 sps:$4 sm:$0xff]  }
 0x376   :  { %6584 = vmatprep.subr.bf16.mxu0 %v8915_v46  ;;  %6608 = vmatpush1.bf16.msra.mxu1 %v8910_v15  ;;  %v8987_v46 = vld [vmem:[#allocation6 + $0xa0c] ss:$16 sps:$4 sm:$0xff]   ;;  %v8982_v15 = vld [vmem:[#allocation6 + $0x928] ss:$16 sps:$4 sm:$0xff]  }
 0x377   :  { %6609 = vmatprep.subr.bf16.mxu1 %v8918_v62  ;;  %v8990_v59 = vld [vmem:[#allocation6 + $0x90c] ss:$16 sps:$4 sm:$0xff]   ;;  %v8985_v62 = vld [vmem:[#allocation6 + $0xa08] ss:$16 sps:$4 sm:$0xff]  }
 0x379   :  { %6585 = vmatpush2.bf16.msra.mxu0 %v8913_v16  ;;  %v8993_v16 = vld [vmem:[#allocation6 + $0xbec] ss:$16 sps:$4 sm:$0xff]  }
 0x37a   :  { %6586 = vmatprep.subr.bf16.mxu0 %v8921_v11  ;;  %6610 = vmatpush1.bf16.msra.mxu1 %v8916_v18  ;;  %v8988_v11 = vld [vmem:[#allocation6 + $0x908] ss:$16 sps:$4 sm:$0xff]   ;;  %v8996_v18 = vld [vmem:[#allocation6 + $0xcec] ss:$16 sps:$4 sm:$0xff]  }
 0x37b   :  { %6611 = vmatprep.subr.bf16.mxu1 %v8924_v2  ;;  %v8991_v2 = vld [vmem:[#allocation6 + $0xbe8] ss:$16 sps:$4 sm:$0xff]  }
 0x37d   :  { %6587 = vmatpush2.bf16.msra.mxu0 %v8919_v25  ;;  %v8999_v25 = vld [vmem:[#allocation6 + $0xbcc] ss:$16 sps:$4 sm:$0xff]  }
 0x37e   :  { %6588 = vmatprep.subr.bf16.mxu0 %v8927_v28  ;;  %6612 = vmatpush1.bf16.msra.mxu1 %v8922_v44  ;;  %v8994_v28 = vld [vmem:[#allocation6 + $0xce8] ss:$16 sps:$4 sm:$0xff]   ;;  %v9002_v44 = vld [vmem:[#allocation6 + $0xccc] ss:$16 sps:$4 sm:$0xff]  }
 0x37f   :  { %6613 = vmatprep.subr.bf16.mxu1 %v8930_v34  ;;  %v8997_v34 = vld [vmem:[#allocation6 + $0xbc8] ss:$16 sps:$4 sm:$0xff]  }
 0x381   :  { %6589 = vmatpush2.bf16.msra.mxu0 %v8925_v35 }
 0x382   :  { %6590 = vmatprep.subr.bf16.mxu0 %v8933_v61  ;;  %6614 = vmatpush1.bf16.msra.mxu1 %v8928_v40  ;;  %v9005_v61 = vld [vmem:[#allocation6 + $0xbac] ss:$16 sps:$4 sm:$0xff]  }
 0x383   :  { %6615 = vmatprep.subr.bf16.mxu1 %v8936_v19  ;;  %v9000_v19 = vld [vmem:[#allocation6 + $0xcc8] ss:$16 sps:$4 sm:$0xff]  }
 0x385   :  { %6591 = vmatpush2.bf16.msra.mxu0 %v8931_v13 }
 0x386   :  { %6592 = vmatprep.subr.bf16.mxu0 %v8939_v39  ;;  %6616 = vmatpush1.bf16.msra.mxu1 %v8934_v43  ;;  %v9008_v39 = vld [vmem:[#allocation6 + $0xcac] ss:$16 sps:$4 sm:$0xff]  }
 0x387   :  { %6617 = vmatprep.subr.bf16.mxu1 %v8942_v3  ;;  %v9003_v3 = vld [vmem:[#allocation6 + $0xba8] ss:$16 sps:$4 sm:$0xff]  }
 0x389   :  { %6593 = vmatpush2.bf16.msra.mxu0 %v8937_v58 }
 0x38a   :  { %6644 = vmatprep.subr.bf16.mxu0 %v8945_v12  ;;  %6618 = vmatpush1.bf16.msra.mxu1 %v8940_v38  ;;  %v9006_v12 = vld [vmem:[#allocation6 + $0xca8] ss:$16 sps:$4 sm:$0xff]  }
 0x38b   :  { %6619 = vmatprep.subr.bf16.mxu1 %v8948_v51  ;;  %v9014_v51 = vld [vmem:[#allocation6 + $0xc8c] ss:$16 sps:$4 sm:$0xff]  }
 0x38c   :  { %v6350_v22 = vpop.f32.mrf.mxu0  ;;  %6595 = vmatmul.mubr.bf16.vlgmr.msra.gmra.mxu0 %v9793_v63  ;;  %v8960_v63 = vld [vmem:[#allocation6 + $0x9ac] ss:$16 sps:$4 sm:$0xff]  }
 0x38d   :  { %v9888_v14 = vadd.f32 %v6350_v22, %v9880_v17  ;;  %6645 = vmatpush1.bf16.msra.mxu0 %v8943_v36  ;;  %6676 = vmatprep.mubr.bf16.mxu0 %v9795_v4  ;;  %v8966_v4 = vld [vmem:[#allocation6 + $0x98c] ss:$16 sps:$4 sm:$0xff]   ;;  %v8970_v17 = vld [vmem:[#allocation6 + $0x968] ss:$16 sps:$4 sm:$0xff]  }
 0x38e   :  { %v6352_v1 = vpop.f32.mrf.mxu0  ;;  %6646 = vmatprep.subr.bf16.mxu0 %v8951_v52  ;;  %6620 = vmatpush2.bf16.msra.mxu1 %v8946_v45  ;;  %v9009_v36 = vld [vmem:[#allocation6 + $0xb88] ss:$16 sps:$4 sm:$0xff]   ;;  %v9020_v45 = vld [vmem:[#allocation6 + $0xc6c] ss:$16 sps:$4 sm:$0xff]  }
 0x38f   :  { %v9892_v30 = vadd.f32 %v6352_v1, %v9884_v49  ;;  %6621 = vmatprep.subr.bf16.mxu1 %v8954_v42  ;;  %v8976_v49 = vld [vmem:[#allocation6 + $0x948] ss:$16 sps:$4 sm:$0xff]   ;;  %v9023_v42 = vld [vmem:[#allocation6 + $0xb4c] ss:$16 sps:$4 sm:$0xff]  }
 0x390   :  { %v6354_v0 = vpop.f32.mrf.mxu0  ;;  %v9012_v52 = vld [vmem:[#allocation6 + $0xc88] ss:$16 sps:$4 sm:$0xff]  }
 0x391   :  { %6647 = vmatpush1.bf16.msra.mxu0 %v8949_v6  ;;  %v9015_v22 = vld [vmem:[#allocation6 + $0xb68] ss:$16 sps:$4 sm:$0xff]   ;;  %v9026_v6 = vld [vmem:[#allocation6 + $0xc4c] ss:$16 sps:$4 sm:$0xff]  }
 0x392   :  { %v6355_v24 = vpop.f32.mrf.mxu0  ;;  %6648 = vmatprep.subr.bf16.mxu0 %v8957_v21  ;;  %6622 = vmatpush2.bf16.msra.mxu1 %v8952_v27  ;;  %v9021_v1 = vld [vmem:[#allocation6 + $0xb48] ss:$16 sps:$4 sm:$0xff]   ;;  %v9029_v21 = vld [vmem:[#allocation6 + $0xb2c] ss:$16 sps:$4 sm:$0xff]  }
 0x393   :  { %6623 = vmatprep.subr.bf16.mxu1 %v8960_v63  ;;  %v9032_v27 = vld [vmem:[#allocation6 + $0xc2c] ss:$16 sps:$4 sm:$0xff]   ;;  %v9027_v0 = vld [vmem:[#allocation6 + $0xb28] ss:$16 sps:$4 sm:$0xff]  }
 0x394   :  { %v9035_v63 = vld [vmem:[#allocation6 + $0xb0c] ss:$16 sps:$4 sm:$0xff]  }
 0x395   :  { %6649 = vmatpush1.bf16.msra.mxu0 %v8955_v26  ;;  %v9030_v26 = vld [vmem:[#allocation6 + $0xc28] ss:$16 sps:$4 sm:$0xff]   ;;  %v9038_v24 = vld [vmem:[#allocation6 + $0xc0c] ss:$16 sps:$4 sm:$0xff]  }
 0x396   :  { %6650 = vmatprep.subr.bf16.mxu0 %v8963_v32  ;;  %6624 = vmatpush2.bf16.msra.mxu1 %v8958_v31  ;;  %v9033_v32 = vld [vmem:[#allocation6 + $0xb08] ss:$16 sps:$4 sm:$0xff]   ;;  %v9041_v31 = vld [vmem:[#allocation6 + $0xeec] ss:$16 sps:$4 sm:$0xff]  }
 0x397   :  { %6625 = vmatprep.subr.bf16.mxu1 %v8966_v4  ;;  %v9036_v4 = vld [vmem:[#allocation6 + $0xc08] ss:$16 sps:$4 sm:$0xff]  }
 0x399   :  { %6651 = vmatpush1.bf16.msra.mxu0 %v8961_v41  ;;  %v9044_v41 = vld [vmem:[#allocation6 + $0xdec] ss:$16 sps:$4 sm:$0xff]  }
 0x39a   :  { %6652 = vmatprep.subr.bf16.mxu0 %v8969_v55  ;;  %6626 = vmatpush2.bf16.msra.mxu1 %v8964_v48  ;;  %v9039_v55 = vld [vmem:[#allocation6 + $0xee8] ss:$16 sps:$4 sm:$0xff]   ;;  %v9047_v48 = vld [vmem:[#allocation6 + $0xecc] ss:$16 sps:$4 sm:$0xff]  }
 0x39b   :  { %6627 = vmatprep.subr.bf16.mxu1 %v8972_v9  ;;  %v9042_v9 = vld [vmem:[#allocation6 + $0xde8] ss:$16 sps:$4 sm:$0xff]  }
 0x39d   :  { %6653 = vmatpush1.bf16.msra.mxu0 %v8967_v50 }
 0x39e   :  { %6654 = vmatprep.subr.bf16.mxu0 %v8975_v5  ;;  %6628 = vmatpush2.bf16.msra.mxu1 %v8970_v17  ;;  %v9050_v5 = vld [vmem:[#allocation6 + $0xdcc] ss:$16 sps:$4 sm:$0xff]  }
 0x39f   :  { %6629 = vmatprep.subr.bf16.mxu1 %v8978_v10  ;;  %v9045_v10 = vld [vmem:[#allocation6 + $0xec8] ss:$16 sps:$4 sm:$0xff]  }
 0x3a1   :  { %6655 = vmatpush1.bf16.msra.mxu0 %v8973_v54 }
 0x3a2   :  { %6656 = vmatprep.subr.bf16.mxu0 %v8981_v47  ;;  %6630 = vmatpush2.bf16.msra.mxu1 %v8976_v49  ;;  %v9053_v47 = vld [vmem:[#allocation6 + $0xeac] ss:$16 sps:$4 sm:$0xff]   ;;  %v9048_v49 = vld [vmem:[#allocation6 + $0xdc8] ss:$16 sps:$4 sm:$0xff]  }
 0x3a3   :  { %6631 = vmatprep.subr.bf16.mxu1 %v8984_v20 }
 0x3a5   :  { %6657 = vmatpush1.bf16.msra.mxu0 %v8979_v53  ;;  %v9056_v53 = vld [vmem:[#allocation6 + $0xdac] ss:$16 sps:$4 sm:$0xff]  }
 0x3a6   :  { %6658 = vmatprep.subr.bf16.mxu0 %v8987_v46  ;;  %6632 = vmatpush2.bf16.msra.mxu1 %v8982_v15  ;;  %v9059_v15 = vld [vmem:[#allocation6 + $0xe8c] ss:$16 sps:$4 sm:$0xff]  }
 0x3a7   :  { %6633 = vmatprep.subr.bf16.mxu1 %v8990_v59  ;;  %v9054_v59 = vld [vmem:[#allocation6 + $0xda8] ss:$16 sps:$4 sm:$0xff]  }
 0x3a9   :  { %6659 = vmatpush1.bf16.msra.mxu0 %v8985_v62  ;;  %v9062_v62 = vld [vmem:[#allocation6 + $0xd8c] ss:$16 sps:$4 sm:$0xff]  }
 0x3aa   :  { %6660 = vmatprep.subr.bf16.mxu0 %v8993_v16  ;;  %6634 = vmatpush2.bf16.msra.mxu1 %v8988_v11  ;;  %v9065_v16 = vld [vmem:[#allocation6 + $0xe6c] ss:$16 sps:$4 sm:$0xff]   ;;  %v9060_v11 = vld [vmem:[#allocation6 + $0xd88] ss:$16 sps:$4 sm:$0xff]  }
 0x3ab   :  { %6685 = vmatprep.subr.bf16.mxu1 %v8996_v18  ;;  %v9068_v18 = vld [vmem:[#allocation6 + $0xd6c] ss:$16 sps:$4 sm:$0xff]  }
 0x3ad   :  { %6661 = vmatpush2.bf16.msra.mxu0 %v8991_v2  ;;  %v6391_v35 = vpop.f32.mrf.mxu1  ;;  %6636 = vmatmul.mubr.bf16.vlgmr.msra.gmra.mxu1 %v9810_v60  ;;  %v9011_v60 = vld [vmem:[#allocation6 + $0xb8c] ss:$16 sps:$4 sm:$0xff]   ;;  %v9063_v2 = vld [vmem:[#allocation6 + $0xe68] ss:$16 sps:$4 sm:$0xff]  }
 0x3ae   :  { %6662 = vmatprep.subr.bf16.mxu0 %v8999_v25  ;;  %v9896_v40 = vadd.f32 %v6391_v35, %v9888_v14  ;;  %6686 = vmatpush1.bf16.msra.mxu1 %v8994_v28  ;;  %v9018_v14 = vld [vmem:[#allocation6 + $0xc68] ss:$16 sps:$4 sm:$0xff]   ;;  %v9071_v25 = vld [vmem:[#allocation6 + $0xe4c] ss:$16 sps:$4 sm:$0xff]  }
 0x3af   :  { %6717 = vmatprep.mubr.bf16.mxu1 %v9812_v57  ;;  %v6393_v13 = vpop.f32.mrf.mxu1  ;;  %6687 = vmatprep.subr.bf16.mxu1 %v9002_v44  ;;  %v9017_v57 = vld [vmem:[#allocation6 + $0xb6c] ss:$16 sps:$4 sm:$0xff]   ;;  %v9066_v28 = vld [vmem:[#allocation6 + $0xd68] ss:$16 sps:$4 sm:$0xff]  }
 0x3b0   :  { %v9900_v43 = vadd.f32 %v6393_v13, %v9892_v30  ;;  %v9024_v30 = vld [vmem:[#allocation6 + $0xc48] ss:$16 sps:$4 sm:$0xff]   ;;  %v9074_v44 = vld [vmem:[#allocation6 + $0xd4c] ss:$16 sps:$4 sm:$0xff]  }
 0x3b1   :  { %6663 = vmatpush2.bf16.msra.mxu0 %v8997_v34  ;;  %v6395_v58 = vpop.f32.mrf.mxu1  ;;  %v9069_v34 = vld [vmem:[#allocation6 + $0xe48] ss:$16 sps:$4 sm:$0xff]   ;;  %v9077_v35 = vld [vmem:[#allocation6 + $0xe2c] ss:$16 sps:$4 sm:$0xff]  }
 0x3b2   :  { %6664 = vmatprep.subr.bf16.mxu0 %v9005_v61  ;;  %6688 = vmatpush1.bf16.msra.mxu1 %v9000_v19  ;;  %v9072_v61 = vld [vmem:[#allocation6 + $0xd48] ss:$16 sps:$4 sm:$0xff]   ;;  %v9083_v13 = vld [vmem:[#allocation6 + $0xe0c] ss:$16 sps:$4 sm:$0xff]  }
 0x3b3   :  { %v6396_v38 = vpop.f32.mrf.mxu1  ;;  %6689 = vmatprep.subr.bf16.mxu1 %v9008_v39  ;;  %v9075_v19 = vld [vmem:[#allocation6 + $0xe28] ss:$16 sps:$4 sm:$0xff]  }
 0x3b4   :  { %v9078_v39 = vld [vmem:[#allocation6 + $0xd28] ss:$16 sps:$4 sm:$0xff]   ;;  %v9092_v38 = vld [vmem:[#allocation6 + $0x10ec] ss:$16 sps:$4 sm:$0xff]  }
 0x3b5   :  { %6665 = vmatpush2.bf16.msra.mxu0 %v9003_v3  ;;  %v9086_v3 = vld [vmem:[#allocation6 + $0xd0c] ss:$16 sps:$4 sm:$0xff]   ;;  %v9081_v58 = vld [vmem:[#allocation6 + $0xe08] ss:$16 sps:$4 sm:$0xff]  }
 0x3b6   :  { %6666 = vmatprep.subr.bf16.mxu0 %v9011_v60  ;;  %6690 = vmatpush1.bf16.msra.mxu1 %v9006_v12  ;;  %v9089_v60 = vld [vmem:[#allocation6 + $0xfec] ss:$16 sps:$4 sm:$0xff]   ;;  %v9084_v12 = vld [vmem:[#allocation6 + $0xd08] ss:$16 sps:$4 sm:$0xff]  }
 0x3b7   :  { %6691 = vmatprep.subr.bf16.mxu1 %v9014_v51  ;;  %v9087_v51 = vld [vmem:[#allocation6 + $0xfe8] ss:$16 sps:$4 sm:$0xff]  }
 0x3b9   :  { %6667 = vmatpush2.bf16.msra.mxu0 %v9009_v36  ;;  %v9095_v36 = vld [vmem:[#allocation6 + $0xfcc] ss:$16 sps:$4 sm:$0xff]  }
 0x3ba   :  { %6668 = vmatprep.subr.bf16.mxu0 %v9017_v57  ;;  %6692 = vmatpush1.bf16.msra.mxu1 %v9012_v52  ;;  %v9090_v57 = vld [vmem:[#allocation6 + $0x10e8] ss:$16 sps:$4 sm:$0xff]   ;;  %v9098_v52 = vld [vmem:[#allocation6 + $0x10cc] ss:$16 sps:$4 sm:$0xff]  }
 0x3bb   :  { %6693 = vmatprep.subr.bf16.mxu1 %v9020_v45  ;;  %v9093_v45 = vld [vmem:[#allocation6 + $0xfc8] ss:$16 sps:$4 sm:$0xff]  }
 0x3bd   :  { %6669 = vmatpush2.bf16.msra.mxu0 %v9015_v22 }
 0x3be   :  { %6670 = vmatprep.subr.bf16.mxu0 %v9023_v42  ;;  %6694 = vmatpush1.bf16.msra.mxu1 %v9018_v14  ;;  %v9101_v42 = vld [vmem:[#allocation6 + $0xfac] ss:$16 sps:$4 sm:$0xff]   ;;  %v9096_v14 = vld [vmem:[#allocation6 + $0x10c8] ss:$16 sps:$4 sm:$0xff]  }
 0x3bf   :  { %6695 = vmatprep.subr.bf16.mxu1 %v9026_v6  ;;  %v9206_v6 = vld [vmem:[%s9932_s0] sm:$0xf] }
 0x3c1   :  { %6671 = vmatpush2.bf16.msra.mxu0 %v9021_v1 }
 0x3c2   :  { %6672 = vmatprep.subr.bf16.mxu0 %v9029_v21  ;;  %6696 = vmatpush1.bf16.msra.mxu1 %v9024_v30  ;;  %v9104_v21 = vld [vmem:[#allocation6 + $0x10ac] ss:$16 sps:$4 sm:$0xff]   ;;  %v9099_v30 = vld [vmem:[#allocation6 + $0xfa8] ss:$16 sps:$4 sm:$0xff]  }
 0x3c3   :  { %6697 = vmatprep.subr.bf16.mxu1 %v9032_v27 }
 0x3c5   :  { %6673 = vmatpush2.bf16.msra.mxu0 %v9027_v0  ;;  %v9107_v0 = vld [vmem:[#allocation6 + $0xf8c] ss:$16 sps:$4 sm:$0xff]  }
 0x3c6   :  { %6674 = vmatprep.subr.bf16.mxu0 %v9035_v63  ;;  %6698 = vmatpush1.bf16.msra.mxu1 %v9030_v26  ;;  %v9110_v26 = vld [vmem:[#allocation6 + $0x108c] ss:$16 sps:$4 sm:$0xff]  }
 0x3c7   :  { %6699 = vmatprep.subr.bf16.mxu1 %v9038_v24  ;;  %v9105_v24 = vld [vmem:[#allocation6 + $0xf88] ss:$16 sps:$4 sm:$0xff]  }
 0x3c9   :  { %6675 = vmatpush2.bf16.msra.mxu0 %v9033_v32  ;;  %v9113_v32 = vld [vmem:[#allocation6 + $0xf6c] ss:$16 sps:$4 sm:$0xff]  }
 0x3ca   :  { %6726 = vmatprep.subr.bf16.mxu0 %v9041_v31  ;;  %6700 = vmatpush1.bf16.msra.mxu1 %v9036_v4  ;;  %v9108_v31 = vld [vmem:[#allocation6 + $0x1088] ss:$16 sps:$4 sm:$0xff]   ;;  %v9116_v4 = vld [vmem:[#allocation6 + $0x106c] ss:$16 sps:$4 sm:$0xff]  }
 0x3cb   :  { %6701 = vmatprep.subr.bf16.mxu1 %v9044_v41  ;;  %v9111_v41 = vld [vmem:[#allocation6 + $0xf68] ss:$16 sps:$4 sm:$0xff]  }
 0x3cc   :  { %v6432_v50 = vpop.f32.mrf.mxu0  ;;  %6677 = vmatmul.mubr.bf16.vlgmr.msra.gmra.mxu0 %v9822_v7  ;;  %v9051_v7 = vld [vmem:[#allocation6 + $0xea8] ss:$16 sps:$4 sm:$0xff]  }
 0x3cd   :  { %v9904_v17 = vadd.f32 %v6432_v50, %v9896_v40  ;;  %6727 = vmatpush1.bf16.msra.mxu0 %v9039_v55  ;;  %6758 = vmatprep.mubr.bf16.mxu0 %v9824_v8  ;;  %v9057_v8 = vld [vmem:[#allocation6 + $0xe88] ss:$16 sps:$4 sm:$0xff]   ;;  %v9080_v40 = vld [vmem:[#allocation6 + $0xd2c] ss:$16 sps:$4 sm:$0xff]  }
 0x3ce   :  { %v9907_v54 = vpop.f32.mrf.mxu0  ;;  %6728 = vmatprep.subr.bf16.mxu0 %v9047_v48  ;;  %6702 = vmatpush2.bf16.msra.mxu1 %v9042_v9  ;;  %v9119_v55 = vld [vmem:[#allocation6 + $0xf4c] ss:$16 sps:$4 sm:$0xff]   ;;  %v9114_v48 = vld [vmem:[#allocation6 + $0x1068] ss:$16 sps:$4 sm:$0xff]  }
 0x3cf   :  { %6703 = vmatprep.subr.bf16.mxu1 %v9050_v5  ;;  %v9122_v9 = vld [vmem:[#allocation6 + $0x104c] ss:$16 sps:$4 sm:$0xff]   ;;  %v9117_v50 = vld [vmem:[#allocation6 + $0xf48] ss:$16 sps:$4 sm:$0xff]  }
 0x3d0   :  { %v6436_v20 = vpop.f32.mrf.mxu0  ;;  %v9125_v5 = vld [vmem:[#allocation6 + $0xf2c] ss:$16 sps:$4 sm:$0xff]  }
 0x3d1   :  { %6729 = vmatpush1.bf16.msra.mxu0 %v9045_v10  ;;  %v9120_v10 = vld [vmem:[#allocation6 + $0x1048] ss:$16 sps:$4 sm:$0xff]   ;;  %v9131_v20 = vld [vmem:[#allocation6 + $0xf0c] ss:$16 sps:$4 sm:$0xff]  }
 0x3d2   :  { %v6437_v46 = vpop.f32.mrf.mxu0  ;;  %6730 = vmatprep.subr.bf16.mxu0 %v9053_v47  ;;  %6704 = vmatpush2.bf16.msra.mxu1 %v9048_v49  ;;  %v9128_v47 = vld [vmem:[#allocation6 + $0x102c] ss:$16 sps:$4 sm:$0xff]   ;;  %v9123_v49 = vld [vmem:[#allocation6 + $0xf28] ss:$16 sps:$4 sm:$0xff]  }
 0x3d3   :  { %6705 = vmatprep.subr.bf16.mxu1 %v9056_v53  ;;  %v6435_v53 = vadd.f32 %v9907_v54, %v9900_v43  ;;  %v9134_v46 = vld [vmem:[#allocation6 + $0x100c] ss:$16 sps:$4 sm:$0xff]   ;;  %v9140_v54 = vld [vmem:[#allocation9 + $0x70] sm:$0xff]  }
 0x3d4   :  { %v9139_v43 = vld [vmem:[#allocation9 + $0x38] sm:$0xff]  }
 0x3d5   :  { %6731 = vmatpush1.bf16.msra.mxu0 %v9051_v7  ;;  %v9126_v7 = vld [vmem:[#allocation6 + $0x1028] ss:$16 sps:$4 sm:$0xff]  }
 0x3d6   :  { %6732 = vmatprep.subr.bf16.mxu0 %v9059_v15  ;;  %6706 = vmatpush2.bf16.msra.mxu1 %v9054_v59  ;;  %v9129_v15 = vld [vmem:[#allocation6 + $0xf08] ss:$16 sps:$4 sm:$0xff]   ;;  %v9135_v59 = vld [vmem:[#allocation9 + $0x78] sm:$0xff]  }
 0x3d7   :  { %6707 = vmatprep.subr.bf16.mxu1 %v9062_v62  ;;  %v6809_v62 = vmax.f32 %v6435_v53, 0.0 }
 0x3d9   :  { %6733 = vmatpush1.bf16.msra.mxu0 %v9057_v8  ;;  %v9207_v8 = vld [vmem:[#allocation7] sm:$0xf] }
 0x3da   :  { %6734 = vmatprep.subr.bf16.mxu0 %v9065_v16  ;;  %6708 = vmatpush2.bf16.msra.mxu1 %v9060_v11  ;;  %v3181_v16 = vrot.slane %v9207_v8, %v9517_v23  ;;  %v9132_v11 = vld [vmem:[#allocation6 + $0x1008] ss:$16 sps:$4 sm:$0xff]   ;;  %v9143_v23 = vld [vmem:[#allocation6 + $0x11cc] ss:$16 sps:$4 sm:$0xff]  }
 0x3db   :  { %6709 = vmatprep.subr.bf16.mxu1 %v9068_v18  ;;  %v9138_v18 = vld [vmem:[#allocation6 + $0x11ec] ss:$16 sps:$4 sm:$0xff]  }
 0x3dd   :  { %6735 = vmatpush1.bf16.msra.mxu0 %v9063_v2  ;;  %v3185_v2 = vrot.slane %v9207_v8, %v9520_v29  ;;  %v9144_v29 = vld [vmem:[#allocation9 + $0x30] sm:$0xff]   ;;  %v9181_v8 = vld [vmem:[#allocation9 + $0xe0] sm:$0xff]  }
 0x3de   :  { %6736 = vmatprep.subr.bf16.mxu0 %v9071_v25  ;;  %6710 = vmatpush2.bf16.msra.mxu1 %v9066_v28  ;;  %v6813_v25 = vpack.c.bf16 %v6809_v62, %v6809_v62  ;;  %v9180_v62 = vld [vmem:[#allocation9 + $0xa8] sm:$0xff]  }
 0x3df   :  { %6711 = vmatprep.subr.bf16.mxu1 %v9074_v44  ;;  %v9136_v44 = vld [vmem:[#allocation6 + $0x11e8] ss:$16 sps:$4 sm:$0xff]  }
 0x3e1   :  { %6737 = vmatpush1.bf16.msra.mxu0 %v9069_v34 }
 0x3e2   :  { %6738 = vmatprep.subr.bf16.mxu0 %v9077_v35  ;;  %6712 = vmatpush2.bf16.msra.mxu1 %v9072_v61 }
 0x3e3   :  { %6713 = vmatprep.subr.bf16.mxu1 %v9080_v40 }
 0x3e5   :  { %6739 = vmatpush1.bf16.msra.mxu0 %v9075_v19  ;;  %v9145_v19 = vld [vmem:[#allocation9 + $0x68] sm:$0xff]  }
 0x3e6   :  { %6740 = vmatprep.subr.bf16.mxu0 %v9083_v13  ;;  %6714 = vmatpush2.bf16.msra.mxu1 %v9078_v39  ;;  %v9141_v39 = vld [vmem:[#allocation6 + $0x11c8] ss:$16 sps:$4 sm:$0xff]  }
 0x3e7   :  { %6715 = vmatprep.subr.bf16.mxu1 %v9086_v3 }
 0x3e9   :  { %6741 = vmatpush1.bf16.msra.mxu0 %v9081_v58  ;;  %v9148_v58 = vld [vmem:[#allocation6 + $0x11ac] ss:$16 sps:$4 sm:$0xff]  }
 0x3ea   :  { %6742 = vmatprep.subr.bf16.mxu0 %v9089_v60  ;;  %6716 = vmatpush2.bf16.msra.mxu1 %v9084_v12  ;;  %v9150_v12 = vld [vmem:[#allocation9 + $0x60] sm:$0xff]  }
 0x3eb   :  { %6767 = vmatprep.subr.bf16.mxu1 %v9092_v38  ;;  %v9146_v38 = vld [vmem:[#allocation6 + $0x11a8] ss:$16 sps:$4 sm:$0xff]  }
 0x3ed   :  { %6743 = vmatpush2.bf16.msra.mxu0 %v9087_v51  ;;  %v9909_v22 = vpop.f32.mrf.mxu1  ;;  %6718 = vmatmul.mubr.bf16.vlgmr.msra.gmra.mxu1 %v9830_v33  ;;  %v9102_v33 = vld [vmem:[#allocation6 + $0x10a8] ss:$16 sps:$4 sm:$0xff]   ;;  %v9153_v51 = vld [vmem:[#allocation6 + $0x118c] ss:$16 sps:$4 sm:$0xff]  }
 0x3ee   :  { %6744 = vmatprep.subr.bf16.mxu0 %v9095_v36  ;;  %6768 = vmatpush1.bf16.msra.mxu1 %v9090_v57  ;;  %v6474_v28 = vadd.f32 %v9909_v22, %v3181_v16  ;;  %v9154_v36 = vld [vmem:[#allocation9 + $0x20] sm:$0xff]   ;;  %v9155_v57 = vld [vmem:[#allocation9 + $0x58] sm:$0xff]  }
 0x3ef   :  { %6799 = vmatprep.mubr.bf16.mxu1 %v9206_v6  ;;  %v9915_v1 = vpop.f32.mrf.mxu1  ;;  %6769 = vmatprep.subr.bf16.mxu1 %v9098_v52  ;;  %v9151_v52 = vld [vmem:[#allocation6 + $0x1188] ss:$16 sps:$4 sm:$0xff]   ;;  %v9159_v22 = vld [vmem:[#allocation9 + $0x18] sm:$0xff]  }
 0x3f0   :  { %v6476_v35 = vadd.f32 %v9915_v1, %v3185_v2  ;;  %v9163_v6 = vld [vmem:[#allocation6 + $0x114c] ss:$16 sps:$4 sm:$0xff]   ;;  %v9164_v1 = vld [vmem:[#allocation9 + $0x10] sm:$0xff]   ;;  %v9182_v16 = vld [vmem:[#allocation9 + $0xa0] sm:$0xff]  }
 0x3f1   :  { %6745 = vmatpush2.bf16.msra.mxu0 %v9093_v45  ;;  %v6477_v27 = vpop.f32.mrf.mxu1  ;;  %v9158_v45 = vld [vmem:[#allocation6 + $0x116c] ss:$16 sps:$4 sm:$0xff]   ;;  %v9185_v2 = vld [vmem:[#allocation9 + $0xd0] sm:$0xff]  }
 0x3f2   :  { %6746 = vmatprep.subr.bf16.mxu0 %v9101_v42  ;;  %6770 = vmatpush1.bf16.msra.mxu1 %v9096_v14  ;;  %v9160_v42 = vld [vmem:[#allocation9 + $0x50] sm:$0xff]   ;;  %v9168_v27 = vld [vmem:[#allocation6 + $0x112c] ss:$16 sps:$4 sm:$0xff]  }
 0x3f3   :  { %v6478_v63 = vpop.f32.mrf.mxu1  ;;  %6771 = vmatprep.subr.bf16.mxu1 %v9104_v21  ;;  %v9156_v14 = vld [vmem:[#allocation6 + $0x1168] ss:$16 sps:$4 sm:$0xff]   ;;  %v9165_v21 = vld [vmem:[#allocation9 + $0x48] sm:$0xff]  }
 0x3f4   :  { %v9166_v63 = vld [vmem:[#allocation6 + $0x1128] ss:$16 sps:$4 sm:$0xff]  }
 0x3f5   :  { %6747 = vmatpush2.bf16.msra.mxu0 %v9099_v30  ;;  %v9161_v30 = vld [vmem:[#allocation6 + $0x1148] ss:$16 sps:$4 sm:$0xff]  }
 0x3f6   :  { %6748 = vmatprep.subr.bf16.mxu0 %v9107_v0  ;;  %6772 = vmatpush1.bf16.msra.mxu1 %v9102_v33  ;;  %v9169_v0 = vld [vmem:[#allocation9 + $0x8] sm:$0xff]   ;;  %v9170_v33 = vld [vmem:[#allocation9 + $0x40] sm:$0xff]  }
 0x3f7   :  { %6773 = vmatprep.subr.bf16.mxu1 %v9110_v26  ;;  %v9173_v26 = vld [vmem:[#allocation6 + $0x110c] ss:$16 sps:$4 sm:$0xff]  }
 0x3f9   :  { %6749 = vmatpush2.bf16.msra.mxu0 %v9105_v24  ;;  %v9174_v24 = vld [vmem:[#allocation9] sm:$0xff]  }
 0x3fa   :  { %6750 = vmatprep.subr.bf16.mxu0 %v9113_v32  ;;  %6774 = vmatpush1.bf16.msra.mxu1 %v9108_v31  ;;  %v6808_v32 = vmax.f32 %v9904_v17, 0.0  ;;  %v9171_v31 = vld [vmem:[#allocation6 + $0x1108] ss:$16 sps:$4 sm:$0xff]  }
 0x3fb   :  { %6775 = vmatprep.subr.bf16.mxu1 %v9116_v4 }
 0x3fc   :  { %v6812_v4 = vpack.c.bf16 %v6808_v32, %v6808_v32 }
 0x3fd   :  { %6751 = vmatpush2.bf16.msra.mxu0 %v9111_v41 }
 0x3fe   :  { %6752 = vmatprep.subr.bf16.mxu0 %v9119_v55  ;;  %6776 = vmatpush1.bf16.msra.mxu1 %v9114_v48 }
 0x3ff   :  { %6777 = vmatprep.subr.bf16.mxu1 %v9122_v9 }
 0x401   :  { %6753 = vmatpush2.bf16.msra.mxu0 %v9117_v50 }
 0x402   :  { %6754 = vmatprep.subr.bf16.mxu0 %v9125_v5  ;;  %6778 = vmatpush1.bf16.msra.mxu1 %v9120_v10 }
 0x403   :  { %6779 = vmatprep.subr.bf16.mxu1 %v9128_v47 }
 0x405   :  { %6755 = vmatpush2.bf16.msra.mxu0 %v9123_v49 }
 0x406   :  { %6756 = vmatprep.subr.bf16.mxu0 %v9131_v20  ;;  %6780 = vmatpush1.bf16.msra.mxu1 %v9126_v7  ;;  %v9175_v7 = vld [vmem:[#allocation9 + $0xf8] sm:$0xff]  }
 0x407   :  { %6781 = vmatprep.subr.bf16.mxu1 %v9134_v46  ;;  %v9176_v46 = vld [vmem:[#allocation9 + $0xb8] sm:$0xff]  }
 0x409   :  { %6757 = vmatpush2.bf16.msra.mxu0 %v9129_v15  ;;  %v9177_v15 = vld [vmem:[#allocation9 + $0xf0] sm:$0xff]  }
 0x40a   :  { %8168 = vmatprep.subr.bf16.mxu0 %v9135_v59  ;;  %6782 = vmatpush1.bf16.msra.mxu1 %v9132_v11  ;;  %v9178_v59 = vld [vmem:[#allocation9 + $0xb0] sm:$0xff]   ;;  %v9183_v11 = vld [vmem:[#allocation9 + $0xd8] sm:$0xff]  }
 0x40b   :  { %6783 = vmatprep.subr.bf16.mxu1 %v9138_v18  ;;  %v9184_v18 = vld [vmem:[#allocation9 + $0x98] sm:$0xff]  }
 0x40c   :  { %v6514_v34 = vpop.f32.mrf.mxu0  ;;  %6759 = vmatmul.mubr.bf16.vlgmr.msra.gmra.mxu0 %v9840_v37  ;;  %v9149_v37 = vld [vmem:[#allocation9 + $0x28] sm:$0xff]  }
 0x40d   :  { %v9924_v61 = vadd.f32 %v6514_v34, %v6474_v28  ;;  %8169 = vmatpush3.bf16.msra.mxu0 %v9139_v43  ;;  %7111 = vmatprep.mubr.bf16.mxu0 %v6813_v25  ;;  %v9186_v43 = vld [vmem:[#allocation9 + $0x90] sm:$0xff]   ;;  %v9187_v25 = vld [vmem:[#allocation9 + $0xc8] sm:$0xff]  }
 0x40e   :  { %v6516_v40 = vpop.f32.mrf.mxu0  ;;  %8170 = vmatprep.subr.bf16.mxu0 %v9140_v54  ;;  %6784 = vmatpush2.bf16.msra.mxu1 %v9136_v44  ;;  %v9188_v44 = vld [vmem:[#allocation9 + $0x88] sm:$0xff]  }
 0x40f   :  { %v6517_v13 = vadd.f32 %v6516_v40, %v6476_v35  ;;  %6785 = vmatprep.subr.bf16.mxu1 %v9143_v23 }
 0x410   :  { %v6518_v3 = vpop.f32.mrf.mxu0 }
 0x411   :  { %8171 = vmatpush3.bf16.msra.mxu0 %v9144_v29  ;;  %v9190_v29 = vld [vmem:[#allocation9 + $0x80] sm:$0xff]   ;;  %v9193_v3 = vld [vmem:[#allocation12 + $0x28] sm:$0xff]  }
 0x412   :  { %v6519_v60 = vpop.f32.mrf.mxu0  ;;  %8172 = vmatprep.subr.bf16.mxu0 %v9145_v19  ;;  %6786 = vmatpush2.bf16.msra.mxu1 %v9141_v39  ;;  %v9191_v19 = vld [vmem:[#allocation12 + $0x38] sm:$0xff]   ;;  %v9192_v39 = vld [vmem:[#allocation12 + $0x30] sm:$0xff]  }
 0x413   :  { %6787 = vmatprep.subr.bf16.mxu1 %v9148_v58  ;;  %v9194_v58 = vld [vmem:[#allocation12 + $0x20] sm:$0xff]  }
 0x415   :  { %8173 = vmatpush3.bf16.msra.mxu0 %v9149_v37  ;;  %v9195_v37 = vld [vmem:[#allocation12 + $0x18] sm:$0xff]  }
 0x416   :  { %8174 = vmatprep.subr.bf16.mxu0 %v9150_v12  ;;  %6788 = vmatpush2.bf16.msra.mxu1 %v9146_v38 }
 0x417   :  { %6789 = vmatprep.subr.bf16.mxu1 %v9153_v51 }
 0x419   :  { %8175 = vmatpush3.bf16.msra.mxu0 %v9154_v36 }
 0x41a   :  { %8176 = vmatprep.subr.bf16.mxu0 %v9155_v57  ;;  %6790 = vmatpush2.bf16.msra.mxu1 %v9151_v52 }
 0x41b   :  { %6791 = vmatprep.subr.bf16.mxu1 %v9158_v45 }
 0x41d   :  { %8177 = vmatpush3.bf16.msra.mxu0 %v9159_v22 }
 0x41e   :  { %8178 = vmatprep.subr.bf16.mxu0 %v9160_v42  ;;  %6792 = vmatpush2.bf16.msra.mxu1 %v9156_v14 }
 0x41f   :  { %6793 = vmatprep.subr.bf16.mxu1 %v9163_v6 }
 0x421   :  { %8179 = vmatpush3.bf16.msra.mxu0 %v9164_v1 }
 0x422   :  { %8180 = vmatprep.subr.bf16.mxu0 %v9165_v21  ;;  %6794 = vmatpush2.bf16.msra.mxu1 %v9161_v30 }
 0x423   :  { %6795 = vmatprep.subr.bf16.mxu1 %v9168_v27 }
 0x425   :  { %8181 = vmatpush3.bf16.msra.mxu0 %v9169_v0 }
 0x426   :  { %8182 = vmatprep.subr.bf16.mxu0 %v9170_v33  ;;  %6796 = vmatpush2.bf16.msra.mxu1 %v9166_v63 }
 0x427   :  { %6797 = vmatprep.subr.bf16.mxu1 %v9173_v26 }
 0x429   :  { %8183 = vmatpush3.bf16.msra.mxu0 %v9174_v24 }
 0x42a   :  { %6798 = vmatpush2.bf16.msra.mxu1 %v9171_v31 }
 0x42b   :  { %8190 = vmatprep.subr.bf16.mxu1 %v9175_v7  ;;  %v8126_v7 = vld [vmem:[#allocation10] ss:$0 sm:$0xff] }
 0x42c   :  { %7112 = vmatmul.mubr.bf16.vlgmr.msra.gmra.mxu0 %v6812_v4 }
 0x42d   :  { %v6555_v41 = vpop.f32.mrf.mxu1  ;;  %6800 = vmatmul.mubr.bf16.vlgmr.msra.gmra.mxu1 %v9852_v56  ;;  %v9179_v56 = vld [vmem:[#allocation9 + $0xe8] sm:$0xff]  }
 0x42e   :  { %v6556_v55 = vadd.f32 %v6555_v41, %v9924_v61  ;;  %8191 = vmatpush3.bf16.msra.mxu1 %v9176_v46  ;;  %v9189_v61 = vld [vmem:[#allocation9 + $0xc0] sm:$0xff]  }
 0x42f   :  { %v6557_v48 = vpop.f32.mrf.mxu1  ;;  %8192 = vmatprep.subr.bf16.mxu1 %v9177_v15 }
 0x430   :  { %v6558_v9 = vadd.f32 %v6557_v48, %v6517_v13  ;;  %v9395_v13 = vmov 0.0  }
 0x431   :  { %v6559_v50 = vpop.f32.mrf.mxu1  ;;  %8221 = vmatprep.subr.bf16.mxu0 %v9395_v13  ;;  %8237 = vmatprep.mubr.msk.bf16.mxu0 %vm9396_vm3, %v9395_v13 }
 0x432   :  { %8193 = vmatpush3.bf16.msra.mxu1 %v9178_v59  ;;  %8222 = vmatpush3.bf16.msra.mxu0 %v9191_v19 }
 0x433   :  { %v6560_v5 = vpop.f32.mrf.mxu1  ;;  %8194 = vmatprep.subr.bf16.mxu1 %v9179_v56  ;;  %8223 = vmatprep.subr.bf16.mxu0 %v9395_v13 }
 0x436   :  { %8195 = vmatpush3.bf16.msra.mxu1 %v9180_v62  ;;  %8224 = vmatpush3.bf16.msra.mxu0 %v9192_v39 }
 0x437   :  { %8196 = vmatprep.subr.bf16.mxu1 %v9181_v8  ;;  %8225 = vmatprep.subr.bf16.mxu0 %v9395_v13 }
 0x43a   :  { %8197 = vmatpush3.bf16.msra.mxu1 %v9182_v16  ;;  %8226 = vmatpush3.bf16.msra.mxu0 %v9193_v3 }
 0x43b   :  { %8198 = vmatprep.subr.bf16.mxu1 %v9183_v11  ;;  %8227 = vmatprep.subr.bf16.mxu0 %v9395_v13 }
 0x43e   :  { %8199 = vmatpush3.bf16.msra.mxu1 %v9184_v18  ;;  %8228 = vmatpush3.bf16.msra.mxu0 %v9194_v58 }
 0x43f   :  { %8200 = vmatprep.subr.bf16.mxu1 %v9185_v2  ;;  %8229 = vmatprep.subr.bf16.mxu0 %v9395_v13  ;;  %v8159_v2 = vld [vmem:[#allocation13] ss:$0 sm:$0xff] }
 0x442   :  { %8201 = vmatpush3.bf16.msra.mxu1 %v9186_v43  ;;  %8230 = vmatpush3.bf16.msra.mxu0 %v9195_v37 }
 0x443   :  { %8202 = vmatprep.subr.bf16.mxu1 %v9187_v25  ;;  %8231 = vmatprep.subr.bf16.mxu0 %v9395_v13 }
 0x446   :  { %8203 = vmatpush3.bf16.msra.mxu1 %v9188_v44 }
 0x447   :  { %8204 = vmatprep.subr.bf16.mxu1 %v9189_v61 }
 0x44a   :  { %8205 = vmatpush3.bf16.msra.mxu1 %v9190_v29 }
 0x44c   :  { %v6596_v10 = vpop.f32.mrf.mxu0 }
 0x44d   :  { %v6597_v47 = vadd.f32 %v6596_v10, %v6556_v55 }
 0x44e   :  { %v6598_v17 = vpop.f32.mrf.mxu0 }
 0x44f   :  { %v6599_v49 = vadd.f32 %v6598_v17, %v6558_v9 }
 0x450   :  { %v6600_v20 = vpop.f32.mrf.mxu0 }
 0x451   :  { %v9197_v20 = vld [vmem:[#allocation12 + $0x8] sm:$0xff]  }
 0x452   :  { %v6601_v53 = vpop.f32.mrf.mxu0 }
 0x453   :  { %v9198_v53 = vld [vmem:[#allocation12] sm:$0xff]  }
 0x46d   :  { %v6637_v54 = vpop.f32.mrf.mxu1 }
 0x46e   :  { %v6638_v28 = vadd.f32 %v6637_v54, %v6597_v47 }
 0x46f   :  { %v6639_v34 = vpop.f32.mrf.mxu1 }
 0x470   :  { %v6640_v23 = vadd.f32 %v6639_v34, %v6599_v49  ;;  %v9196_v49 = vld [vmem:[#allocation12 + $0x10] sm:$0xff]  }
 0x471   :  { %v6641_v35 = vpop.f32.mrf.mxu1  ;;  %8232 = vmatpush3.bf16.msra.mxu0 %v9196_v49 }
 0x472   :  { %8233 = vmatprep.subr.bf16.mxu0 %v9395_v13 }
 0x473   :  { %v6642_v40 = vpop.f32.mrf.mxu1 }
 0x475   :  { %8234 = vmatpush3.bf16.msra.mxu0 %v9197_v20 }
 0x476   :  { %8235 = vmatprep.subr.bf16.mxu0 %v9395_v13 }
 0x479   :  { %8236 = vmatpush3.bf16.msra.mxu0 %v9198_v53 }
 0x48c   :  { %v6678_v60 = vpop.f32.mrf.mxu0 }
 0x48d   :  { %v6679_v12 = vadd.f32 %v6678_v60, %v6638_v28 }
 0x48e   :  { %v6680_v38 = vpop.f32.mrf.mxu0 }
 0x48f   :  { %v6681_v51 = vadd.f32 %v6680_v38, %v6640_v23 }
 0x490   :  { %v6682_v36 = vpop.f32.mrf.mxu0 }
 0x492   :  { %v6683_v57 = vpop.f32.mrf.mxu0 }
 0x4ad   :  { %v6719_v52 = vpop.f32.mrf.mxu1 }
 0x4ae   :  { %v6720_v30 = vadd.f32 %v6719_v52, %v6679_v12 }
 0x4af   :  { %v6721_v45 = vpop.f32.mrf.mxu1 }
 0x4b0   :  { %v6722_v0 = vadd.f32 %v6721_v45, %v6681_v51 }
 0x4b1   :  { %v6723_v22 = vpop.f32.mrf.mxu1 }
 0x4b3   :  { %v6724_v42 = vpop.f32.mrf.mxu1 }
 0x4cc   :  { %v6760_v14 = vpop.f32.mrf.mxu0 }
 0x4cd   :  { %v6761_v33 = vadd.f32 %v6760_v14, %v6720_v30 }
 0x4ce   :  { %v6762_v6 = vpop.f32.mrf.mxu0 }
 0x4cf   :  { %v6763_v24 = vadd.f32 %v6762_v6, %v6722_v0 }
 0x4d0   :  { %v6764_v1 = vpop.f32.mrf.mxu0 }
 0x4d2   :  { %v6765_v21 = vpop.f32.mrf.mxu0 }
 0x4ec   :  { %v8184_v27 = vpop.f32.mrf.mxu0 }
 0x4ed   :  { %v6801_v63 = vpop.f32.mrf.mxu1 }
 0x4ee   :  { %v8185_v26 = vpop.f32.mrf.mxu0  ;;  %v6802_v32 = vadd.f32 %v6801_v63, %v6761_v33 }
 0x4ef   :  { %v8186_v31 = vadd.f32 %v8185_v26, %v8184_v27  ;;  %v6803_v4 = vpop.f32.mrf.mxu1 }
 0x4f0   :  { %v8187_v41 = vpop.f32.mrf.mxu0  ;;  %v6804_v55 = vadd.f32 %v6803_v4, %v6763_v24  ;;  %v6810_v48 = vmax.f32 %v6802_v32, 0.0 }
 0x4f1   :  { %v6805_v9 = vpop.f32.mrf.mxu1  ;;  %v7114_v59 = vadd.f32 %v8186_v31, %v8126_v7 }
 0x4f2   :  { %v8188_v50 = vpop.f32.mrf.mxu0  ;;  %v6811_v5 = vmax.f32 %v6804_v55, 0.0  ;;  %v6814_v17 = vpack.c.bf16 %v6810_v48, %v6810_v48 }
 0x4f3   :  { %v6806_v10 = vpop.f32.mrf.mxu1 }
 0x4f4   :  { %v6815_v47 = vpack.c.bf16 %v6811_v5, %v6811_v5 }
 0x4f6   :  { %7151 = vmatprep.mubr.bf16.mxu1 %v6815_v47 }
 0x4f7   :  { %7152 = vmatmul.mubr.bf16.vlgmr.msra.gmra.mxu1 %v6814_v17 }
 0x5b7   :  { %v8206_v46 = vpop.f32.mrf.mxu1 }
 0x5b9   :  { %v8207_v15 = vpop.f32.mrf.mxu1 }
 0x5ba   :  { %v8208_v56 = vadd.f32 %v8207_v15, %v8206_v46 }
 0x5bb   :  { %v8209_v62 = vpop.f32.mrf.mxu1 }
 0x5bc   :  { %v7154_v8 = vadd.f32 %v8208_v56, %v7114_v59 }
 0x5bd   :  { %v8210_v16 = vpop.f32.mrf.mxu1 }
 0x5be   :  { %v7159_v11 = vmax.f32 %v7154_v8, 0.0 }
 0x5c0   :  { %v7160_v18 = vpack.c.bf16 %v7159_v11, %v7159_v11 }
 0x5c2   :  { %8238 = vmatmul.mubr.bf16.vlgmr.msra.gmra.mxu0 %v7160_v18 }
 0x682   :  { %v7266_v43 = vpop.f32.mrf.mxu0 }
 0x683   :  { %v7267_v54 = vadd.f32 %v8159_v2, %v7266_v43 }
 0x684   :  { %v8239_v25 = vpop.f32.mrf.mxu0 }
 0x685   :  { %7272 = vmax.xlane.f32.xlu0 %v7267_v54 }
 0x686   :  { %v7269_v28 = vpop.f32.mrf.mxu0 }
 0x688   :  { %v8240_v44 = vpop.f32.mrf.mxu0 }
 0x70e   :  { %v7273_v34 = vpop.xlane.xlu0 %7272 }
 0x70f   :  { %v7274_v23 = vsub.f32 %v7267_v54, %v7273_v34 }
 0x711   :  { %v7275_v35 = vmul.f32 1.442695, %v7274_v23 }
 0x713   :  { %9199 = vpow2.f32 %v7275_v35 }
 0x720   :  { %v9200_v61 = vpop.eup %9199 }
 0x721   :  { %7277 = vadd.xlane.f32.xlu1 %v9200_v61 }
 0x7aa   :  { %v7278_v29 = vpop.xlane.xlu1 %7277 }
 0x7ab   :  { %9201 = vrcp.f32 %v7278_v29 }
 0x7b8   :  { %v9202_v40 = vpop.eup %9201 }
 0x7b9   :  { %v7280_v19 = vmul.f32 %v9202_v40, %v7278_v29 }
 0x7bb   :  { %v7281_v13 = vsub.f32 2.0, %v7280_v19 }
 0x7bd   :  { %v7282_v39 = vmul.f32 %v9202_v40, %v7281_v13 }
 0x7bf   :  { %v7283_v3 = vmul.f32 %v9200_v61, %v7282_v39 }
 0x7c1   :  { %7284 = vst [vmem:[%s9941_s9] sm:$0xff] %v7283_v3 }
 0x7c2   :  { %7289 = vsyncpa [#allocation3], 1 }
 0x7c3   :  { %7290 = vsyncpa [#allocation5], 1 }
 0x7c4   :  { %7291 = vsyncpa [#allocation8], 1 }
 0x7c5   :  { %7292 = vsyncpa [#allocation11], 1 }
 0x7c6   :  { %7293 = vsyncpa [#allocation14], 1 }

</bundles_post_ra>
